<compile_context>
chip_gen: v7x
topology: tpu7x:2x2x1
jax: 0.10.0
libtpu: 0.0.40
codegen_flags: <defaults>
</compile_context>

<pallas_src>
import jax
import jax.numpy as jnp
from jax.experimental import pallas as pl
from jax.experimental.pallas import tpu as pltpu

_BN_EPS = 1e-5


def _silu(z):
    # Guarded z * sigmoid(z): the exp argument is always <= 0 so it never overflows.
    e = jnp.exp(-jnp.abs(z))
    r = 1.0 / (1.0 + e)
    return z * jnp.where(z >= 0, r, e * r)


# -----------------------------------------------------------------------------
# Pallas kernels
# -----------------------------------------------------------------------------
def _stage1_kernel(xpad_ref, scale_ref, shift_ref, w_ref, bias_ref,
                   h_ref, sum_ref, ssq_ref):
    """h = conv3x3(SiLU(xpad*scale + shift)) + bias, plus fused BN2 statistics.

    xpad_ref : (Bb, H+2, W+2, Cin)  spatially pre-padded input tile
    scale_ref, shift_ref : (1, 1, 1, Cin)  folded BN1 scale / shift
    w_ref    : (9, Cin, Cout)       conv taps, index = ky*3 + kx
    bias_ref : (Bb, 1, 1, Cout)     conv bias + per-sample time embedding
    h_ref    : (Bb, H, W, Cout)
    sum_ref, ssq_ref : (1, Cout)    resident per-channel accumulators (BN2 stats)
    """
    Bb, Hp, Wp, Cin = xpad_ref.shape
    H, W = Hp - 2, Wp - 2
    Cout = w_ref.shape[2]

    # Fused BN affine + SiLU (VPU/EUP).  The border evaluates to ~0 by
    # construction of the wrapper-side neutral pad value, reproducing zero
    # padding applied after the activation in the PyTorch module.
    a = _silu(xpad_ref[...].astype(jnp.float32) * scale_ref[...] + shift_ref[...])

    acc = jnp.zeros((Bb * H * W, Cout), jnp.float32)
    for kx in range(3):                           # width shift hoisted: 3 slabs total
        slab = a[:, :, kx:kx + W, :]              # (Bb, H+2, W, Cin)
        for ky in range(3):                       # height shift: major-axis slice
            patch = slab[:, ky:ky + H].reshape(Bb * H * W, Cin)
            acc = acc + jnp.dot(patch, w_ref[ky * 3 + kx],
                                preferred_element_type=jnp.float32)

    h = acc.reshape(Bb, H, W, Cout) + bias_ref[...]
    h_ref[...] = h.astype(h_ref.dtype)

    # Fused BatchNorm-2 statistics (saves a full HBM re-read of h).
    @pl.when(pl.program_id(0) == 0)
    def _init():
        sum_ref[...] = jnp.zeros_like(sum_ref)
        ssq_ref[...] = jnp.zeros_like(ssq_ref)

    h2d = h.reshape(Bb * H * W, Cout)
    sum_ref[...] += jnp.sum(h2d, axis=0, keepdims=True)
    ssq_ref[...] += jnp.sum(h2d * h2d, axis=0, keepdims=True)


def _stage2_kernel(hpad_ref, scale_ref, shift_ref, w_ref, bias_ref,
                   xold_ref, wres_ref, out_ref):
    """out = conv3x3(SiLU(hpad*scale + shift)) + bias + conv1x1(x_old).

    bias_ref already holds (conv2 bias + residual conv bias).
    """
    Bb, Hp, Wp, C = hpad_ref.shape
    H, W = Hp - 2, Wp - 2
    Cout = w_ref.shape[2]
    Cold = xold_ref.shape[3]

    a = _silu(hpad_ref[...].astype(jnp.float32) * scale_ref[...] + shift_ref[...])

    # 1x1 residual conv of the original input seeds the accumulator.
    acc = jnp.dot(xold_ref[...].astype(jnp.float32).reshape(Bb * H * W, Cold),
                  wres_ref[...], preferred_element_type=jnp.float32)

    for kx in range(3):
        slab = a[:, :, kx:kx + W, :]
        for ky in range(3):
            patch = slab[:, ky:ky + H].reshape(Bb * H * W, C)
            acc = acc + jnp.dot(patch, w_ref[ky * 3 + kx],
                                preferred_element_type=jnp.float32)

    out_ref[...] = (acc.reshape(Bb, H, W, Cout) + bias_ref[...]).astype(out_ref.dtype)


# -----------------------------------------------------------------------------
# pallas_call wrappers (grid over batch blocks)
# -----------------------------------------------------------------------------
def _stage1(xpad, scale, shift, w_taps, bias_b, *, block_b):
    B, Hp, Wp, Cin = xpad.shape
    H, W = Hp - 2, Wp - 2
    Cout = w_taps.shape[2]
    assert B % block_b == 0
    return pl.pallas_call(
        _stage1_kernel,
        out_shape=(
            jax.ShapeDtypeStruct((B, H, W, Cout), jnp.float32),
            jax.ShapeDtypeStruct((1, Cout), jnp.float32),
            jax.ShapeDtypeStruct((1, Cout), jnp.float32),
        ),
        grid_spec=pltpu.PrefetchScalarGridSpec(
            num_scalar_prefetch=0,
            grid=(B // block_b,),
            in_specs=[
                pl.BlockSpec((block_b, Hp, Wp, Cin), lambda b: (b, 0, 0, 0)),
                pl.BlockSpec((1, 1, 1, Cin), lambda b: (0, 0, 0, 0)),
                pl.BlockSpec((1, 1, 1, Cin), lambda b: (0, 0, 0, 0)),
                pl.BlockSpec((9, Cin, Cout), lambda b: (0, 0, 0)),
                pl.BlockSpec((block_b, 1, 1, Cout), lambda b: (b, 0, 0, 0)),
            ],
            out_specs=(
                pl.BlockSpec((block_b, H, W, Cout), lambda b: (b, 0, 0, 0)),
                pl.BlockSpec((1, Cout), lambda b: (0, 0)),
                pl.BlockSpec((1, Cout), lambda b: (0, 0)),
            ),
        ),
        # The stats outputs accumulate across the batch axis -> "arbitrary".
        compiler_params=pltpu.CompilerParams(dimension_semantics=("arbitrary",)),
    )(xpad, scale.reshape(1, 1, 1, Cin), shift.reshape(1, 1, 1, Cin),
      w_taps, bias_b.reshape(B, 1, 1, Cout))


def _stage2(hpad, scale, shift, w_taps, bias, xold, wr, *, block_b):
    B, Hp, Wp, C = hpad.shape
    H, W = Hp - 2, Wp - 2
    Cout = w_taps.shape[2]
    Cold = xold.shape[3]
    assert B % block_b == 0
    return pl.pallas_call(
        _stage2_kernel,
        out_shape=jax.ShapeDtypeStruct((B, H, W, Cout), jnp.float32),
        grid_spec=pltpu.PrefetchScalarGridSpec(
            num_scalar_prefetch=0,
            grid=(B // block_b,),
            in_specs=[
                pl.BlockSpec((block_b, Hp, Wp, C), lambda b: (b, 0, 0, 0)),
                pl.BlockSpec((1, 1, 1, C), lambda b: (0, 0, 0, 0)),
                pl.BlockSpec((1, 1, 1, C), lambda b: (0, 0, 0, 0)),
                pl.BlockSpec((9, C, Cout), lambda b: (0, 0, 0)),
                pl.BlockSpec((1, 1, 1, Cout), lambda b: (0, 0, 0, 0)),
                pl.BlockSpec((block_b, H, W, Cold), lambda b: (b, 0, 0, 0)),
                pl.BlockSpec((Cold, Cout), lambda b: (0, 0)),
            ],
            out_specs=pl.BlockSpec((block_b, H, W, Cout), lambda b: (b, 0, 0, 0)),
        ),
        compiler_params=pltpu.CompilerParams(dimension_semantics=("parallel",)),
    )(hpad, scale.reshape(1, 1, 1, C), shift.reshape(1, 1, 1, C),
      w_taps, bias.reshape(1, 1, 1, Cout), xold, wr)


# -----------------------------------------------------------------------------
# Wrapper glue
# -----------------------------------------------------------------------------
def _pad_neutral(x_nhwc, scale, shift):
    """Pad H/W by 1 with the per-channel value v s.t. SiLU(v*scale + shift) == 0,
    so the in-kernel activation of the border reproduces post-activation zero
    padding.  (Degenerate gamma == 0 channels are guarded but not exact.)"""
    B, H, W, C = x_nhwc.shape
    v = -shift / jnp.where(scale == 0.0, 1.0, scale)
    base = jnp.broadcast_to(v.reshape(1, 1, 1, C), (B, H + 2, W + 2, C))
    return base.at[:, 1:H + 1, 1:W + 1, :].set(x_nhwc)


def prepare_params(p):
    """One-time parameter re-layout (run once, outside the per-step forward)."""
    c_out, c_in = p["w1"].shape[0], p["w1"].shape[1]
    f32 = jnp.float32
    return {
        "bn1_gamma": p["bn1_gamma"].astype(f32),
        "bn1_beta": p["bn1_beta"].astype(f32),
        "bn2_gamma": p["bn2_gamma"].astype(f32),
        "bn2_beta": p["bn2_beta"].astype(f32),
        # (Cout, Cin, 3, 3) -> (3, 3, Cin, Cout) -> (9, Cin, Cout); tap = ky*3+kx.
        "w1_taps": jnp.transpose(p["w1"], (2, 3, 1, 0)).reshape(9, c_in, c_out).astype(f32),
        "w2_taps": jnp.transpose(p["w2"], (2, 3, 1, 0)).reshape(9, c_out, c_out).astype(f32),
        "b1": p["b1"].astype(f32),
        "bias2": (p["b2"] + p["br"]).astype(f32),             # conv2 bias + residual bias
        "wr_mat": p["wr"][:, :, 0, 0].T.astype(f32),           # (Cin, Cout)
        "we_t": p["we"].T.astype(f32),                         # (emb, Cout)
        "be": p["be"].astype(f32),
    }


def double_conv_forward(x_nchw, time_vec, pp, *, block_b=1):
    B, Cin, H, W = x_nchw.shape
    x = jnp.transpose(x_nchw, (0, 2, 3, 1)).astype(jnp.float32)          # NHWC

    # ---- BN1 (training-mode batch statistics, biased variance), folded.
    mean1 = jnp.mean(x, axis=(0, 1, 2))
    var1 = jnp.mean(jnp.square(x - mean1), axis=(0, 1, 2))
    scale1 = pp["bn1_gamma"] / jnp.sqrt(var1 + _BN_EPS)
    shift1 = pp["bn1_beta"] - mean1 * scale1

    # ---- time embedding: Linear(SiLU(t))  (tiny matmul, plain JAX glue)
    t = jnp.dot(jax.nn.silu(time_vec.astype(jnp.float32)), pp["we_t"],
                precision=jax.lax.Precision.HIGHEST) + pp["be"]          # (B, Cout)
    bias1 = pp["b1"][None, :] + t

    # ---- stage 1: fused BN1+SiLU+conv3x3 (+time bias) and BN2 statistics.
    xpad = _pad_neutral(x, scale1, shift1)
    h, hsum, hssq = _stage1(xpad, scale1, shift1, pp["w1_taps"], bias1,
                            block_b=block_b)

    # ---- BN2 from the fused in-kernel statistics (biased variance).
    n = jnp.float32(B * H * W)
    mean2 = hsum[0] / n
    var2 = jnp.maximum(hssq[0] / n - jnp.square(mean2), 0.0)
    scale2 = pp["bn2_gamma"] / jnp.sqrt(var2 + _BN_EPS)
    shift2 = pp["bn2_beta"] - mean2 * scale2

    # ---- stage 2: fused BN2+SiLU+conv3x3 + 1x1 residual conv of the input.
    hpad = _pad_neutral(h, scale2, shift2)
    out = _stage2(hpad, scale2, shift2, pp["w2_taps"], pp["bias2"], x,
                  pp["wr_mat"], block_b=block_b)
    return jnp.transpose(out, (0, 3, 1, 2))                              # NCHW


# -----------------------------------------------------------------------------
# Deterministic parameter init + pure-JAX reference (sanity check)
# -----------------------------------------------------------------------------
def init_params(key, c_in, c_out, emb):
    ks = jax.random.split(key, 12)
    return {
        "bn1_gamma": 1.0 + 0.1 * jax.random.normal(ks[0], (c_in,), jnp.float32),
        "bn1_beta": 0.1 * jax.random.normal(ks[1], (c_in,), jnp.float32),
        "w1": 0.2 * jax.random.normal(ks[2], (c_out, c_in, 3, 3), jnp.float32),
        "b1": 0.05 * jax.random.normal(ks[3], (c_out,), jnp.float32),
        "bn2_gamma": 1.0 + 0.1 * jax.random.normal(ks[4], (c_out,), jnp.float32),
        "bn2_beta": 0.1 * jax.random.normal(ks[5], (c_out,), jnp.float32),
        "w2": 0.2 * jax.random.normal(ks[6], (c_out, c_out, 3, 3), jnp.float32),
        "b2": 0.05 * jax.random.normal(ks[7], (c_out,), jnp.float32),
        "we": 0.05 * jax.random.normal(ks[8], (c_out, emb), jnp.float32),
        "be": 0.05 * jax.random.normal(ks[9], (c_out,), jnp.float32),
        "wr": 0.2 * jax.random.normal(ks[10], (c_out, c_in, 1, 1), jnp.float32),
        "br": 0.05 * jax.random.normal(ks[11], (c_out,), jnp.float32),
    }


def reference_forward(x, tv, p):
    """Pure-JAX NCHW reference mirroring the PyTorch forward (training-mode BN)."""
    def bn(z, g, b):
        m = jnp.mean(z, axis=(0, 2, 3), keepdims=True)
        v = jnp.mean((z - m) ** 2, axis=(0, 2, 3), keepdims=True)
        return (z - m) / jnp.sqrt(v + _BN_EPS) * g.reshape(1, -1, 1, 1) + b.reshape(1, -1, 1, 1)

    def conv(z, w, b, pad):
        y = jax.lax.conv_general_dilated(
            z, w, (1, 1), [(pad, pad), (pad, pad)],
            dimension_numbers=("NCHW", "OIHW", "NCHW"),
            precision=jax.lax.Precision.HIGHEST)
        return y + b.reshape(1, -1, 1, 1)

    h = conv(jax.nn.silu(bn(x, p["bn1_gamma"], p["bn1_beta"])), p["w1"], p["b1"], 1)
    t = jnp.dot(jax.nn.silu(tv), p["we"].T,
                precision=jax.lax.Precision.HIGHEST) + p["be"]
    h = h + t[:, :, None, None]
    y = conv(jax.nn.silu(bn(h, p["bn2_gamma"], p["bn2_beta"])), p["w2"], p["b2"], 1)
    y = y + conv(x, p["wr"], p["br"], 0)
    return y


if __name__ == "__main__":
    B, Cin, Cout, H, W, EMB = 2, 4, 8, 16, 16, 256
    key = jax.random.PRNGKey(0)
    kx, kt, kp = jax.random.split(key, 3)
    x = jax.random.normal(kx, (B, Cin, H, W), jnp.float32)
    tv = jax.random.normal(kt, (B, EMB), jnp.float32)
    params = init_params(kp, Cin, Cout, EMB)
    prepped = prepare_params(params)          # one-time weight re-layout

    fwd = jax.jit(double_conv_forward)
    out = jax.block_until_ready(fwd(x, tv, prepped))
    assert out.shape == (B, Cout, H, W)

    ref = reference_forward(x, tv, params)
    err = float(jnp.max(jnp.abs(out - ref)))
    assert err < 2e-3, f"max abs err too large: {err}"

    print("KERNEL_OK")
</pallas_src>

<mosaic_0001>
module attributes {stable_mosaic.version = 11 : i64} {
  func.func @_stage1_kernel(%arg0: i32, %arg1: memref<1x18x18x4xf32, #tpu.memory_space<vmem>>, %arg2: memref<1x1x1x4xf32, #tpu.memory_space<vmem>>, %arg3: memref<1x1x1x4xf32, #tpu.memory_space<vmem>>, %arg4: memref<9x4x8xf32, #tpu.memory_space<vmem>>, %arg5: memref<1x1x1x8xf32, #tpu.memory_space<vmem>>, %arg6: memref<1x16x16x8xf32, #tpu.memory_space<vmem>>, %arg7: memref<1x8xf32, #tpu.memory_space<vmem>>, %arg8: memref<1x8xf32, #tpu.memory_space<vmem>>) attributes {dimension_semantics = [#tpu.dimension_semantics<arbitrary>], iteration_bounds = array<i64: 2>, scalar_prefetch = 0 : i64, scratch_operands = 0 : i64, tpu.core_type = #tpu.core_type<tc>, window_params = [{transform_indices = @transform_0, window_bounds = array<i64: 1, 18, 18, 4>}, {pipeline_mode = #tpu.pipeline_mode<synchronous>, transform_indices = @transform_1, window_bounds = array<i64: 1, 1, 1, 4>}, {pipeline_mode = #tpu.pipeline_mode<synchronous>, transform_indices = @transform_2, window_bounds = array<i64: 1, 1, 1, 4>}, {pipeline_mode = #tpu.pipeline_mode<synchronous>, transform_indices = @transform_3, window_bounds = array<i64: 9, 4, 8>}, {transform_indices = @transform_4, window_bounds = array<i64: 1, 1, 1, 8>}, {transform_indices = @transform_5, window_bounds = array<i64: 1, 16, 16, 8>}, {pipeline_mode = #tpu.pipeline_mode<synchronous>, transform_indices = @transform_6, window_bounds = array<i64: 1, 8>}, {pipeline_mode = #tpu.pipeline_mode<synchronous>, transform_indices = @transform_7, window_bounds = array<i64: 1, 8>}]} {
    %c0 = arith.constant 0 : index
    %c0_0 = arith.constant 0 : index
    %c0_1 = arith.constant 0 : index
    %c0_2 = arith.constant 0 : index
    %0 = vector.load %arg1[%c0, %c0_0, %c0_1, %c0_2] : memref<1x18x18x4xf32, #tpu.memory_space<vmem>>, vector<1x18x18x4xf32>
    %c0_3 = arith.constant 0 : index
    %c0_4 = arith.constant 0 : index
    %c0_5 = arith.constant 0 : index
    %c0_6 = arith.constant 0 : index
    %1 = vector.load %arg2[%c0_3, %c0_4, %c0_5, %c0_6] : memref<1x1x1x4xf32, #tpu.memory_space<vmem>>, vector<1x1x1x4xf32>
    %2 = vector.broadcast %1 : vector<1x1x1x4xf32> to vector<1x18x18x4xf32>
    %3 = arith.mulf %0, %2 : vector<1x18x18x4xf32>
    %c0_7 = arith.constant 0 : index
    %c0_8 = arith.constant 0 : index
    %c0_9 = arith.constant 0 : index
    %c0_10 = arith.constant 0 : index
    %4 = vector.load %arg3[%c0_7, %c0_8, %c0_9, %c0_10] : memref<1x1x1x4xf32, #tpu.memory_space<vmem>>, vector<1x1x1x4xf32>
    %5 = vector.broadcast %4 : vector<1x1x1x4xf32> to vector<1x18x18x4xf32>
    %6 = arith.addf %3, %5 : vector<1x18x18x4xf32>
    %7 = math.absf %6 : vector<1x18x18x4xf32>
    %cst = arith.constant 0.000000e+00 : f32
    %8 = vector.broadcast %cst : f32 to vector<1x18x18x4xf32>
    %9 = arith.subf %8, %7 : vector<1x18x18x4xf32>
    %10 = math.exp %9 : vector<1x18x18x4xf32>
    %cst_11 = arith.constant 1.000000e+00 : f32
    %11 = vector.broadcast %cst_11 : f32 to vector<1x18x18x4xf32>
    %12 = arith.addf %11, %10 : vector<1x18x18x4xf32>
    %cst_12 = arith.constant 1.000000e+00 : f32
    %13 = vector.broadcast %cst_12 : f32 to vector<1x18x18x4xf32>
    %14 = arith.divf %13, %12 : vector<1x18x18x4xf32>
    %cst_13 = arith.constant 0.000000e+00 : f32
    %15 = vector.broadcast %cst_13 : f32 to vector<1x18x18x4xf32>
    %16 = arith.cmpf oge, %6, %15 : vector<1x18x18x4xf32>
    %17 = arith.mulf %10, %14 : vector<1x18x18x4xf32>
    %18 = arith.select %16, %14, %17 : vector<1x18x18x4xi1>, vector<1x18x18x4xf32>
    %19 = arith.mulf %6, %18 : vector<1x18x18x4xf32>
    %cst_14 = arith.constant 0.000000e+00 : f32
    %20 = vector.broadcast %cst_14 : f32 to vector<256x8xf32>
    %21 = vector.extract_strided_slice %19 {offsets = [0, 0, 0, 0], sizes = [1, 18, 16, 4], strides = [1, 1, 1, 1]} : vector<1x18x18x4xf32> to vector<1x18x16x4xf32>
    %22 = vector.extract_strided_slice %21 {offsets = [0, 0, 0, 0], sizes = [1, 16, 16, 4], strides = [1, 1, 1, 1]} : vector<1x18x16x4xf32> to vector<1x16x16x4xf32>
    %23 = vector.shape_cast %22 : vector<1x16x16x4xf32> to vector<256x4xf32>
    %c0_15 = arith.constant 0 : index
    %c0_16 = arith.constant 0 : index
    %c0_17 = arith.constant 0 : index
    %24 = vector.load %arg4[%c0_15, %c0_16, %c0_17] : memref<9x4x8xf32, #tpu.memory_space<vmem>>, vector<1x4x8xf32>
    %25 = vector.shape_cast %24 : vector<1x4x8xf32> to vector<4x8xf32>
    %cst_18 = arith.constant dense<0.000000e+00> : vector<256x8xf32>
    %26 = tpu.matmul %23, %25, %cst_18 {dimension_numbers = #tpu.dot_dimension_numbers<[1], [0], [0], [1], [0, 0, 1, 1], [], []>} : vector<256x4xf32>, vector<4x8xf32>, vector<256x8xf32> -> vector<256x8xf32>
    %27 = arith.addf %20, %26 : vector<256x8xf32>
    %28 = vector.extract_strided_slice %21 {offsets = [0, 1, 0, 0], sizes = [1, 16, 16, 4], strides = [1, 1, 1, 1]} : vector<1x18x16x4xf32> to vector<1x16x16x4xf32>
    %29 = vector.shape_cast %28 : vector<1x16x16x4xf32> to vector<256x4xf32>
    %c3 = arith.constant 3 : index
    %c0_19 = arith.constant 0 : index
    %c0_20 = arith.constant 0 : index
    %30 = vector.load %arg4[%c3, %c0_19, %c0_20] : memref<9x4x8xf32, #tpu.memory_space<vmem>>, vector<1x4x8xf32>
    %31 = vector.shape_cast %30 : vector<1x4x8xf32> to vector<4x8xf32>
    %cst_21 = arith.constant dense<0.000000e+00> : vector<256x8xf32>
    %32 = tpu.matmul %29, %31, %cst_21 {dimension_numbers = #tpu.dot_dimension_numbers<[1], [0], [0], [1], [0, 0, 1, 1], [], []>} : vector<256x4xf32>, vector<4x8xf32>, vector<256x8xf32> -> vector<256x8xf32>
    %33 = arith.addf %27, %32 : vector<256x8xf32>
    %34 = vector.extract_strided_slice %21 {offsets = [0, 2, 0, 0], sizes = [1, 16, 16, 4], strides = [1, 1, 1, 1]} : vector<1x18x16x4xf32> to vector<1x16x16x4xf32>
    %35 = vector.shape_cast %34 : vector<1x16x16x4xf32> to vector<256x4xf32>
    %c6 = arith.constant 6 : index
    %c0_22 = arith.constant 0 : index
    %c0_23 = arith.constant 0 : index
    %36 = vector.load %arg4[%c6, %c0_22, %c0_23] : memref<9x4x8xf32, #tpu.memory_space<vmem>>, vector<1x4x8xf32>
    %37 = vector.shape_cast %36 : vector<1x4x8xf32> to vector<4x8xf32>
    %cst_24 = arith.constant dense<0.000000e+00> : vector<256x8xf32>
    %38 = tpu.matmul %35, %37, %cst_24 {dimension_numbers = #tpu.dot_dimension_numbers<[1], [0], [0], [1], [0, 0, 1, 1], [], []>} : vector<256x4xf32>, vector<4x8xf32>, vector<256x8xf32> -> vector<256x8xf32>
    %39 = arith.addf %33, %38 : vector<256x8xf32>
    %40 = vector.extract_strided_slice %19 {offsets = [0, 0, 1, 0], sizes = [1, 18, 16, 4], strides = [1, 1, 1, 1]} : vector<1x18x18x4xf32> to vector<1x18x16x4xf32>
    %41 = vector.extract_strided_slice %40 {offsets = [0, 0, 0, 0], sizes = [1, 16, 16, 4], strides = [1, 1, 1, 1]} : vector<1x18x16x4xf32> to vector<1x16x16x4xf32>
    %42 = vector.shape_cast %41 : vector<1x16x16x4xf32> to vector<256x4xf32>
    %c1 = arith.constant 1 : index
    %c0_25 = arith.constant 0 : index
    %c0_26 = arith.constant 0 : index
    %43 = vector.load %arg4[%c1, %c0_25, %c0_26] : memref<9x4x8xf32, #tpu.memory_space<vmem>>, vector<1x4x8xf32>
    %44 = vector.shape_cast %43 : vector<1x4x8xf32> to vector<4x8xf32>
    %cst_27 = arith.constant dense<0.000000e+00> : vector<256x8xf32>
    %45 = tpu.matmul %42, %44, %cst_27 {dimension_numbers = #tpu.dot_dimension_numbers<[1], [0], [0], [1], [0, 0, 1, 1], [], []>} : vector<256x4xf32>, vector<4x8xf32>, vector<256x8xf32> -> vector<256x8xf32>
    %46 = arith.addf %39, %45 : vector<256x8xf32>
    %47 = vector.extract_strided_slice %40 {offsets = [0, 1, 0, 0], sizes = [1, 16, 16, 4], strides = [1, 1, 1, 1]} : vector<1x18x16x4xf32> to vector<1x16x16x4xf32>
    %48 = vector.shape_cast %47 : vector<1x16x16x4xf32> to vector<256x4xf32>
    %c4 = arith.constant 4 : index
    %c0_28 = arith.constant 0 : index
    %c0_29 = arith.constant 0 : index
    %49 = vector.load %arg4[%c4, %c0_28, %c0_29] : memref<9x4x8xf32, #tpu.memory_space<vmem>>, vector<1x4x8xf32>
    %50 = vector.shape_cast %49 : vector<1x4x8xf32> to vector<4x8xf32>
    %cst_30 = arith.constant dense<0.000000e+00> : vector<256x8xf32>
    %51 = tpu.matmul %48, %50, %cst_30 {dimension_numbers = #tpu.dot_dimension_numbers<[1], [0], [0], [1], [0, 0, 1, 1], [], []>} : vector<256x4xf32>, vector<4x8xf32>, vector<256x8xf32> -> vector<256x8xf32>
    %52 = arith.addf %46, %51 : vector<256x8xf32>
    %53 = vector.extract_strided_slice %40 {offsets = [0, 2, 0, 0], sizes = [1, 16, 16, 4], strides = [1, 1, 1, 1]} : vector<1x18x16x4xf32> to vector<1x16x16x4xf32>
    %54 = vector.shape_cast %53 : vector<1x16x16x4xf32> to vector<256x4xf32>
    %c7 = arith.constant 7 : index
    %c0_31 = arith.constant 0 : index
    %c0_32 = arith.constant 0 : index
    %55 = vector.load %arg4[%c7, %c0_31, %c0_32] : memref<9x4x8xf32, #tpu.memory_space<vmem>>, vector<1x4x8xf32>
    %56 = vector.shape_cast %55 : vector<1x4x8xf32> to vector<4x8xf32>
    %cst_33 = arith.constant dense<0.000000e+00> : vector<256x8xf32>
    %57 = tpu.matmul %54, %56, %cst_33 {dimension_numbers = #tpu.dot_dimension_numbers<[1], [0], [0], [1], [0, 0, 1, 1], [], []>} : vector<256x4xf32>, vector<4x8xf32>, vector<256x8xf32> -> vector<256x8xf32>
    %58 = arith.addf %52, %57 : vector<256x8xf32>
    %59 = vector.extract_strided_slice %19 {offsets = [0, 0, 2, 0], sizes = [1, 18, 16, 4], strides = [1, 1, 1, 1]} : vector<1x18x18x4xf32> to vector<1x18x16x4xf32>
    %60 = vector.extract_strided_slice %59 {offsets = [0, 0, 0, 0], sizes = [1, 16, 16, 4], strides = [1, 1, 1, 1]} : vector<1x18x16x4xf32> to vector<1x16x16x4xf32>
    %61 = vector.shape_cast %60 : vector<1x16x16x4xf32> to vector<256x4xf32>
    %c2 = arith.constant 2 : index
    %c0_34 = arith.constant 0 : index
    %c0_35 = arith.constant 0 : index
    %62 = vector.load %arg4[%c2, %c0_34, %c0_35] : memref<9x4x8xf32, #tpu.memory_space<vmem>>, vector<1x4x8xf32>
    %63 = vector.shape_cast %62 : vector<1x4x8xf32> to vector<4x8xf32>
    %cst_36 = arith.constant dense<0.000000e+00> : vector<256x8xf32>
    %64 = tpu.matmul %61, %63, %cst_36 {dimension_numbers = #tpu.dot_dimension_numbers<[1], [0], [0], [1], [0, 0, 1, 1], [], []>} : vector<256x4xf32>, vector<4x8xf32>, vector<256x8xf32> -> vector<256x8xf32>
    %65 = arith.addf %58, %64 : vector<256x8xf32>
    %66 = vector.extract_strided_slice %59 {offsets = [0, 1, 0, 0], sizes = [1, 16, 16, 4], strides = [1, 1, 1, 1]} : vector<1x18x16x4xf32> to vector<1x16x16x4xf32>
    %67 = vector.shape_cast %66 : vector<1x16x16x4xf32> to vector<256x4xf32>
    %c5 = arith.constant 5 : index
    %c0_37 = arith.constant 0 : index
    %c0_38 = arith.constant 0 : index
    %68 = vector.load %arg4[%c5, %c0_37, %c0_38] : memref<9x4x8xf32, #tpu.memory_space<vmem>>, vector<1x4x8xf32>
    %69 = vector.shape_cast %68 : vector<1x4x8xf32> to vector<4x8xf32>
    %cst_39 = arith.constant dense<0.000000e+00> : vector<256x8xf32>
    %70 = tpu.matmul %67, %69, %cst_39 {dimension_numbers = #tpu.dot_dimension_numbers<[1], [0], [0], [1], [0, 0, 1, 1], [], []>} : vector<256x4xf32>, vector<4x8xf32>, vector<256x8xf32> -> vector<256x8xf32>
    %71 = arith.addf %65, %70 : vector<256x8xf32>
    %72 = vector.extract_strided_slice %59 {offsets = [0, 2, 0, 0], sizes = [1, 16, 16, 4], strides = [1, 1, 1, 1]} : vector<1x18x16x4xf32> to vector<1x16x16x4xf32>
    %73 = vector.shape_cast %72 : vector<1x16x16x4xf32> to vector<256x4xf32>
    %c8 = arith.constant 8 : index
    %c0_40 = arith.constant 0 : index
    %c0_41 = arith.constant 0 : index
    %74 = vector.load %arg4[%c8, %c0_40, %c0_41] : memref<9x4x8xf32, #tpu.memory_space<vmem>>, vector<1x4x8xf32>
    %75 = vector.shape_cast %74 : vector<1x4x8xf32> to vector<4x8xf32>
    %cst_42 = arith.constant dense<0.000000e+00> : vector<256x8xf32>
    %76 = tpu.matmul %73, %75, %cst_42 {dimension_numbers = #tpu.dot_dimension_numbers<[1], [0], [0], [1], [0, 0, 1, 1], [], []>} : vector<256x4xf32>, vector<4x8xf32>, vector<256x8xf32> -> vector<256x8xf32>
    %77 = arith.addf %71, %76 : vector<256x8xf32>
    %78 = vector.shape_cast %77 : vector<256x8xf32> to vector<1x16x16x8xf32>
    %c0_43 = arith.constant 0 : index
    %c0_44 = arith.constant 0 : index
    %c0_45 = arith.constant 0 : index
    %c0_46 = arith.constant 0 : index
    %79 = vector.load %arg5[%c0_43, %c0_44, %c0_45, %c0_46] : memref<1x1x1x8xf32, #tpu.memory_space<vmem>>, vector<1x1x1x8xf32>
    %80 = vector.broadcast %79 : vector<1x1x1x8xf32> to vector<1x16x16x8xf32>
    %81 = arith.addf %78, %80 : vector<1x16x16x8xf32>
    %c0_47 = arith.constant 0 : index
    %c0_48 = arith.constant 0 : index
    %c0_49 = arith.constant 0 : index
    %c0_50 = arith.constant 0 : index
    %82 = vector.load %arg6[%c0_47, %c0_48, %c0_49, %c0_50] : memref<1x16x16x8xf32, #tpu.memory_space<vmem>>, vector<1x16x16x8xf32>
    tpu.vector_store %arg6[%c0_47, %c0_48, %c0_49, %c0_50], %81 {strides = array<i32>} : memref<1x16x16x8xf32, #tpu.memory_space<vmem>>, vector<1x16x16x8xf32>,
    %c0_i32 = arith.constant 0 : i32
    %83 = arith.cmpi eq, %arg0, %c0_i32 : i32
    %84 = arith.extui %83 : i1 to i32
    %c0_i32_51 = arith.constant 0 : i32
    %85 = arith.cmpi ne, %84, %c0_i32_51 : i32
    scf.if %85 {
      %cst_62 = arith.constant 0.000000e+00 : f32
      %98 = vector.broadcast %cst_62 : f32 to vector<1x8xf32>
      %c0_63 = arith.constant 0 : index
      %c0_64 = arith.constant 0 : index
      %99 = vector.load %arg7[%c0_63, %c0_64] : memref<1x8xf32, #tpu.memory_space<vmem>>, vector<1x8xf32>
      tpu.vector_store %arg7[%c0_63, %c0_64], %98 {strides = array<i32>} : memref<1x8xf32, #tpu.memory_space<vmem>>, vector<1x8xf32>,
      %cst_65 = arith.constant 0.000000e+00 : f32
      %100 = vector.broadcast %cst_65 : f32 to vector<1x8xf32>
      %c0_66 = arith.constant 0 : index
      %c0_67 = arith.constant 0 : index
      %101 = vector.load %arg8[%c0_66, %c0_67] : memref<1x8xf32, #tpu.memory_space<vmem>>, vector<1x8xf32>
      tpu.vector_store %arg8[%c0_66, %c0_67], %100 {strides = array<i32>} : memref<1x8xf32, #tpu.memory_space<vmem>>, vector<1x8xf32>,
    } else {
    }
    %86 = vector.shape_cast %81 : vector<1x16x16x8xf32> to vector<256x8xf32>
    %c0_52 = arith.constant 0 : index
    %c0_53 = arith.constant 0 : index
    %87 = vector.load %arg7[%c0_52, %c0_53] : memref<1x8xf32, #tpu.memory_space<vmem>>, vector<1x8xf32>
    %cst_54 = arith.constant dense<0.000000e+00> : vector<8xf32>
    %88 = vector.multi_reduction <add>, %86, %cst_54 [0] : vector<256x8xf32> to vector<8xf32>
    %89 = vector.shape_cast %88 : vector<8xf32> to vector<1x8xf32>
    %90 = arith.addf %87, %89 : vector<1x8xf32>
    %c0_55 = arith.constant 0 : index
    %c0_56 = arith.constant 0 : index
    %91 = vector.load %arg7[%c0_55, %c0_56] : memref<1x8xf32, #tpu.memory_space<vmem>>, vector<1x8xf32>
    tpu.vector_store %arg7[%c0_55, %c0_56], %90 {strides = array<i32>} : memref<1x8xf32, #tpu.memory_space<vmem>>, vector<1x8xf32>,
    %c0_57 = arith.constant 0 : index
    %c0_58 = arith.constant 0 : index
    %92 = vector.load %arg8[%c0_57, %c0_58] : memref<1x8xf32, #tpu.memory_space<vmem>>, vector<1x8xf32>
    %93 = arith.mulf %86, %86 : vector<256x8xf32>
    %cst_59 = arith.constant dense<0.000000e+00> : vector<8xf32>
    %94 = vector.multi_reduction <add>, %93, %cst_59 [0] : vector<256x8xf32> to vector<8xf32>
    %95 = vector.shape_cast %94 : vector<8xf32> to vector<1x8xf32>
    %96 = arith.addf %92, %95 : vector<1x8xf32>
    %c0_60 = arith.constant 0 : index
    %c0_61 = arith.constant 0 : index
    %97 = vector.load %arg8[%c0_60, %c0_61] : memref<1x8xf32, #tpu.memory_space<vmem>>, vector<1x8xf32>
    tpu.vector_store %arg8[%c0_60, %c0_61], %96 {strides = array<i32>} : memref<1x8xf32, #tpu.memory_space<vmem>>, vector<1x8xf32>,
    return
  }
  func.func @transform_0(%arg0: i32) -> (i32, i32, i32, i32) {
    %c0_i32 = arith.constant 0 : i32
    %c0_i32_0 = arith.constant 0 : i32
    %c0_i32_1 = arith.constant 0 : i32
    %c0_i32_2 = arith.constant 0 : i32
    return %arg0, %c0_i32, %c0_i32_0, %c0_i32_1 : i32, i32, i32, i32
  }
  func.func @transform_1(%arg0: i32) -> (i32, i32, i32, i32) {
    %c0_i32 = arith.constant 0 : i32
    %c0_i32_0 = arith.constant 0 : i32
    %c0_i32_1 = arith.constant 0 : i32
    %c0_i32_2 = arith.constant 0 : i32
    %c0_i32_3 = arith.constant 0 : i32
    return %c0_i32, %c0_i32_0, %c0_i32_1, %c0_i32_2 : i32, i32, i32, i32
  }
  func.func @transform_2(%arg0: i32) -> (i32, i32, i32, i32) {
    %c0_i32 = arith.constant 0 : i32
    %c0_i32_0 = arith.constant 0 : i32
    %c0_i32_1 = arith.constant 0 : i32
    %c0_i32_2 = arith.constant 0 : i32
    %c0_i32_3 = arith.constant 0 : i32
    return %c0_i32, %c0_i32_0, %c0_i32_1, %c0_i32_2 : i32, i32, i32, i32
  }
  func.func @transform_3(%arg0: i32) -> (i32, i32, i32) {
    %c0_i32 = arith.constant 0 : i32
    %c0_i32_0 = arith.constant 0 : i32
    %c0_i32_1 = arith.constant 0 : i32
    %c0_i32_2 = arith.constant 0 : i32
    return %c0_i32, %c0_i32_0, %c0_i32_1 : i32, i32, i32
  }
  func.func @transform_4(%arg0: i32) -> (i32, i32, i32, i32) {
    %c0_i32 = arith.constant 0 : i32
    %c0_i32_0 = arith.constant 0 : i32
    %c0_i32_1 = arith.constant 0 : i32
    %c0_i32_2 = arith.constant 0 : i32
    return %arg0, %c0_i32, %c0_i32_0, %c0_i32_1 : i32, i32, i32, i32
  }
  func.func @transform_5(%arg0: i32) -> (i32, i32, i32, i32) {
    %c0_i32 = arith.constant 0 : i32
    %c0_i32_0 = arith.constant 0 : i32
    %c0_i32_1 = arith.constant 0 : i32
    %c0_i32_2 = arith.constant 0 : i32
    return %arg0, %c0_i32, %c0_i32_0, %c0_i32_1 : i32, i32, i32, i32
  }
  func.func @transform_6(%arg0: i32) -> (i32, i32) {
    %c0_i32 = arith.constant 0 : i32
    %c0_i32_0 = arith.constant 0 : i32
    %c0_i32_1 = arith.constant 0 : i32
    return %c0_i32, %c0_i32_0 : i32, i32
  }
  func.func @transform_7(%arg0: i32) -> (i32, i32) {
    %c0_i32 = arith.constant 0 : i32
    %c0_i32_0 = arith.constant 0 : i32
    %c0_i32_1 = arith.constant 0 : i32
    return %c0_i32, %c0_i32_0 : i32, i32
  }
}

module attributes {stable_mosaic.version = 11 : i64} {
  func.func @_stage2_kernel(%arg0: i32, %arg1: memref<1x18x18x8xf32, #tpu.memory_space<vmem>>, %arg2: memref<1x1x1x8xf32, #tpu.memory_space<vmem>>, %arg3: memref<1x1x1x8xf32, #tpu.memory_space<vmem>>, %arg4: memref<9x8x8xf32, #tpu.memory_space<vmem>>, %arg5: memref<1x1x1x8xf32, #tpu.memory_space<vmem>>, %arg6: memref<1x16x16x4xf32, #tpu.memory_space<vmem>>, %arg7: memref<4x8xf32, #tpu.memory_space<vmem>>, %arg8: memref<1x16x16x8xf32, #tpu.memory_space<vmem>>) attributes {dimension_semantics = [#tpu.dimension_semantics<parallel>], iteration_bounds = array<i64: 2>, scalar_prefetch = 0 : i64, scratch_operands = 0 : i64, tpu.core_type = #tpu.core_type<tc>, window_params = [{transform_indices = @transform_0, window_bounds = array<i64: 1, 18, 18, 8>}, {pipeline_mode = #tpu.pipeline_mode<synchronous>, transform_indices = @transform_1, window_bounds = array<i64: 1, 1, 1, 8>}, {pipeline_mode = #tpu.pipeline_mode<synchronous>, transform_indices = @transform_2, window_bounds = array<i64: 1, 1, 1, 8>}, {pipeline_mode = #tpu.pipeline_mode<synchronous>, transform_indices = @transform_3, window_bounds = array<i64: 9, 8, 8>}, {pipeline_mode = #tpu.pipeline_mode<synchronous>, transform_indices = @transform_4, window_bounds = array<i64: 1, 1, 1, 8>}, {transform_indices = @transform_5, window_bounds = array<i64: 1, 16, 16, 4>}, {pipeline_mode = #tpu.pipeline_mode<synchronous>, transform_indices = @transform_6, window_bounds = array<i64: 4, 8>}, {transform_indices = @transform_7, window_bounds = array<i64: 1, 16, 16, 8>}]} {
    %c0 = arith.constant 0 : index
    %c0_0 = arith.constant 0 : index
    %c0_1 = arith.constant 0 : index
    %c0_2 = arith.constant 0 : index
    %0 = vector.load %arg1[%c0, %c0_0, %c0_1, %c0_2] : memref<1x18x18x8xf32, #tpu.memory_space<vmem>>, vector<1x18x18x8xf32>
    %c0_3 = arith.constant 0 : index
    %c0_4 = arith.constant 0 : index
    %c0_5 = arith.constant 0 : index
    %c0_6 = arith.constant 0 : index
    %1 = vector.load %arg2[%c0_3, %c0_4, %c0_5, %c0_6] : memref<1x1x1x8xf32, #tpu.memory_space<vmem>>, vector<1x1x1x8xf32>
    %2 = vector.broadcast %1 : vector<1x1x1x8xf32> to vector<1x18x18x8xf32>
    %3 = arith.mulf %0, %2 : vector<1x18x18x8xf32>
    %c0_7 = arith.constant 0 : index
    %c0_8 = arith.constant 0 : index
    %c0_9 = arith.constant 0 : index
    %c0_10 = arith.constant 0 : index
    %4 = vector.load %arg3[%c0_7, %c0_8, %c0_9, %c0_10] : memref<1x1x1x8xf32, #tpu.memory_space<vmem>>, vector<1x1x1x8xf32>
    %5 = vector.broadcast %4 : vector<1x1x1x8xf32> to vector<1x18x18x8xf32>
    %6 = arith.addf %3, %5 : vector<1x18x18x8xf32>
    %7 = math.absf %6 : vector<1x18x18x8xf32>
    %cst = arith.constant 0.000000e+00 : f32
    %8 = vector.broadcast %cst : f32 to vector<1x18x18x8xf32>
    %9 = arith.subf %8, %7 : vector<1x18x18x8xf32>
    %10 = math.exp %9 : vector<1x18x18x8xf32>
    %cst_11 = arith.constant 1.000000e+00 : f32
    %11 = vector.broadcast %cst_11 : f32 to vector<1x18x18x8xf32>
    %12 = arith.addf %11, %10 : vector<1x18x18x8xf32>
    %cst_12 = arith.constant 1.000000e+00 : f32
    %13 = vector.broadcast %cst_12 : f32 to vector<1x18x18x8xf32>
    %14 = arith.divf %13, %12 : vector<1x18x18x8xf32>
    %cst_13 = arith.constant 0.000000e+00 : f32
    %15 = vector.broadcast %cst_13 : f32 to vector<1x18x18x8xf32>
    %16 = arith.cmpf oge, %6, %15 : vector<1x18x18x8xf32>
    %17 = arith.mulf %10, %14 : vector<1x18x18x8xf32>
    %18 = arith.select %16, %14, %17 : vector<1x18x18x8xi1>, vector<1x18x18x8xf32>
    %19 = arith.mulf %6, %18 : vector<1x18x18x8xf32>
    %c0_14 = arith.constant 0 : index
    %c0_15 = arith.constant 0 : index
    %c0_16 = arith.constant 0 : index
    %c0_17 = arith.constant 0 : index
    %20 = vector.load %arg6[%c0_14, %c0_15, %c0_16, %c0_17] : memref<1x16x16x4xf32, #tpu.memory_space<vmem>>, vector<1x16x16x4xf32>
    %21 = vector.shape_cast %20 : vector<1x16x16x4xf32> to vector<256x4xf32>
    %c0_18 = arith.constant 0 : index
    %c0_19 = arith.constant 0 : index
    %22 = vector.load %arg7[%c0_18, %c0_19] : memref<4x8xf32, #tpu.memory_space<vmem>>, vector<4x8xf32>
    %cst_20 = arith.constant dense<0.000000e+00> : vector<256x8xf32>
    %23 = tpu.matmul %21, %22, %cst_20 {dimension_numbers = #tpu.dot_dimension_numbers<[1], [0], [0], [1], [0, 0, 1, 1], [], []>} : vector<256x4xf32>, vector<4x8xf32>, vector<256x8xf32> -> vector<256x8xf32>
    %24 = vector.extract_strided_slice %19 {offsets = [0, 0, 0, 0], sizes = [1, 18, 16, 8], strides = [1, 1, 1, 1]} : vector<1x18x18x8xf32> to vector<1x18x16x8xf32>
    %25 = vector.extract_strided_slice %24 {offsets = [0, 0, 0, 0], sizes = [1, 16, 16, 8], strides = [1, 1, 1, 1]} : vector<1x18x16x8xf32> to vector<1x16x16x8xf32>
    %26 = vector.shape_cast %25 : vector<1x16x16x8xf32> to vector<256x8xf32>
    %c0_21 = arith.constant 0 : index
    %c0_22 = arith.constant 0 : index
    %c0_23 = arith.constant 0 : index
    %27 = vector.load %arg4[%c0_21, %c0_22, %c0_23] : memref<9x8x8xf32, #tpu.memory_space<vmem>>, vector<1x8x8xf32>
    %28 = vector.shape_cast %27 : vector<1x8x8xf32> to vector<8x8xf32>
    %cst_24 = arith.constant dense<0.000000e+00> : vector<256x8xf32>
    %29 = tpu.matmul %26, %28, %cst_24 {dimension_numbers = #tpu.dot_dimension_numbers<[1], [0], [0], [1], [0, 0, 1, 1], [], []>} : vector<256x8xf32>, vector<8x8xf32>, vector<256x8xf32> -> vector<256x8xf32>
    %30 = arith.addf %23, %29 : vector<256x8xf32>
    %31 = vector.extract_strided_slice %24 {offsets = [0, 1, 0, 0], sizes = [1, 16, 16, 8], strides = [1, 1, 1, 1]} : vector<1x18x16x8xf32> to vector<1x16x16x8xf32>
    %32 = vector.shape_cast %31 : vector<1x16x16x8xf32> to vector<256x8xf32>
    %c3 = arith.constant 3 : index
    %c0_25 = arith.constant 0 : index
    %c0_26 = arith.constant 0 : index
    %33 = vector.load %arg4[%c3, %c0_25, %c0_26] : memref<9x8x8xf32, #tpu.memory_space<vmem>>, vector<1x8x8xf32>
    %34 = vector.shape_cast %33 : vector<1x8x8xf32> to vector<8x8xf32>
    %cst_27 = arith.constant dense<0.000000e+00> : vector<256x8xf32>
    %35 = tpu.matmul %32, %34, %cst_27 {dimension_numbers = #tpu.dot_dimension_numbers<[1], [0], [0], [1], [0, 0, 1, 1], [], []>} : vector<256x8xf32>, vector<8x8xf32>, vector<256x8xf32> -> vector<256x8xf32>
    %36 = arith.addf %30, %35 : vector<256x8xf32>
    %37 = vector.extract_strided_slice %24 {offsets = [0, 2, 0, 0], sizes = [1, 16, 16, 8], strides = [1, 1, 1, 1]} : vector<1x18x16x8xf32> to vector<1x16x16x8xf32>
    %38 = vector.shape_cast %37 : vector<1x16x16x8xf32> to vector<256x8xf32>
    %c6 = arith.constant 6 : index
    %c0_28 = arith.constant 0 : index
    %c0_29 = arith.constant 0 : index
    %39 = vector.load %arg4[%c6, %c0_28, %c0_29] : memref<9x8x8xf32, #tpu.memory_space<vmem>>, vector<1x8x8xf32>
    %40 = vector.shape_cast %39 : vector<1x8x8xf32> to vector<8x8xf32>
    %cst_30 = arith.constant dense<0.000000e+00> : vector<256x8xf32>
    %41 = tpu.matmul %38, %40, %cst_30 {dimension_numbers = #tpu.dot_dimension_numbers<[1], [0], [0], [1], [0, 0, 1, 1], [], []>} : vector<256x8xf32>, vector<8x8xf32>, vector<256x8xf32> -> vector<256x8xf32>
    %42 = arith.addf %36, %41 : vector<256x8xf32>
    %43 = vector.extract_strided_slice %19 {offsets = [0, 0, 1, 0], sizes = [1, 18, 16, 8], strides = [1, 1, 1, 1]} : vector<1x18x18x8xf32> to vector<1x18x16x8xf32>
    %44 = vector.extract_strided_slice %43 {offsets = [0, 0, 0, 0], sizes = [1, 16, 16, 8], strides = [1, 1, 1, 1]} : vector<1x18x16x8xf32> to vector<1x16x16x8xf32>
    %45 = vector.shape_cast %44 : vector<1x16x16x8xf32> to vector<256x8xf32>
    %c1 = arith.constant 1 : index
    %c0_31 = arith.constant 0 : index
    %c0_32 = arith.constant 0 : index
    %46 = vector.load %arg4[%c1, %c0_31, %c0_32] : memref<9x8x8xf32, #tpu.memory_space<vmem>>, vector<1x8x8xf32>
    %47 = vector.shape_cast %46 : vector<1x8x8xf32> to vector<8x8xf32>
    %cst_33 = arith.constant dense<0.000000e+00> : vector<256x8xf32>
    %48 = tpu.matmul %45, %47, %cst_33 {dimension_numbers = #tpu.dot_dimension_numbers<[1], [0], [0], [1], [0, 0, 1, 1], [], []>} : vector<256x8xf32>, vector<8x8xf32>, vector<256x8xf32> -> vector<256x8xf32>
    %49 = arith.addf %42, %48 : vector<256x8xf32>
    %50 = vector.extract_strided_slice %43 {offsets = [0, 1, 0, 0], sizes = [1, 16, 16, 8], strides = [1, 1, 1, 1]} : vector<1x18x16x8xf32> to vector<1x16x16x8xf32>
    %51 = vector.shape_cast %50 : vector<1x16x16x8xf32> to vector<256x8xf32>
    %c4 = arith.constant 4 : index
    %c0_34 = arith.constant 0 : index
    %c0_35 = arith.constant 0 : index
    %52 = vector.load %arg4[%c4, %c0_34, %c0_35] : memref<9x8x8xf32, #tpu.memory_space<vmem>>, vector<1x8x8xf32>
    %53 = vector.shape_cast %52 : vector<1x8x8xf32> to vector<8x8xf32>
    %cst_36 = arith.constant dense<0.000000e+00> : vector<256x8xf32>
    %54 = tpu.matmul %51, %53, %cst_36 {dimension_numbers = #tpu.dot_dimension_numbers<[1], [0], [0], [1], [0, 0, 1, 1], [], []>} : vector<256x8xf32>, vector<8x8xf32>, vector<256x8xf32> -> vector<256x8xf32>
    %55 = arith.addf %49, %54 : vector<256x8xf32>
    %56 = vector.extract_strided_slice %43 {offsets = [0, 2, 0, 0], sizes = [1, 16, 16, 8], strides = [1, 1, 1, 1]} : vector<1x18x16x8xf32> to vector<1x16x16x8xf32>
    %57 = vector.shape_cast %56 : vector<1x16x16x8xf32> to vector<256x8xf32>
    %c7 = arith.constant 7 : index
    %c0_37 = arith.constant 0 : index
    %c0_38 = arith.constant 0 : index
    %58 = vector.load %arg4[%c7, %c0_37, %c0_38] : memref<9x8x8xf32, #tpu.memory_space<vmem>>, vector<1x8x8xf32>
    %59 = vector.shape_cast %58 : vector<1x8x8xf32> to vector<8x8xf32>
    %cst_39 = arith.constant dense<0.000000e+00> : vector<256x8xf32>
    %60 = tpu.matmul %57, %59, %cst_39 {dimension_numbers = #tpu.dot_dimension_numbers<[1], [0], [0], [1], [0, 0, 1, 1], [], []>} : vector<256x8xf32>, vector<8x8xf32>, vector<256x8xf32> -> vector<256x8xf32>
    %61 = arith.addf %55, %60 : vector<256x8xf32>
    %62 = vector.extract_strided_slice %19 {offsets = [0, 0, 2, 0], sizes = [1, 18, 16, 8], strides = [1, 1, 1, 1]} : vector<1x18x18x8xf32> to vector<1x18x16x8xf32>
    %63 = vector.extract_strided_slice %62 {offsets = [0, 0, 0, 0], sizes = [1, 16, 16, 8], strides = [1, 1, 1, 1]} : vector<1x18x16x8xf32> to vector<1x16x16x8xf32>
    %64 = vector.shape_cast %63 : vector<1x16x16x8xf32> to vector<256x8xf32>
    %c2 = arith.constant 2 : index
    %c0_40 = arith.constant 0 : index
    %c0_41 = arith.constant 0 : index
    %65 = vector.load %arg4[%c2, %c0_40, %c0_41] : memref<9x8x8xf32, #tpu.memory_space<vmem>>, vector<1x8x8xf32>
    %66 = vector.shape_cast %65 : vector<1x8x8xf32> to vector<8x8xf32>
    %cst_42 = arith.constant dense<0.000000e+00> : vector<256x8xf32>
    %67 = tpu.matmul %64, %66, %cst_42 {dimension_numbers = #tpu.dot_dimension_numbers<[1], [0], [0], [1], [0, 0, 1, 1], [], []>} : vector<256x8xf32>, vector<8x8xf32>, vector<256x8xf32> -> vector<256x8xf32>
    %68 = arith.addf %61, %67 : vector<256x8xf32>
    %69 = vector.extract_strided_slice %62 {offsets = [0, 1, 0, 0], sizes = [1, 16, 16, 8], strides = [1, 1, 1, 1]} : vector<1x18x16x8xf32> to vector<1x16x16x8xf32>
    %70 = vector.shape_cast %69 : vector<1x16x16x8xf32> to vector<256x8xf32>
    %c5 = arith.constant 5 : index
    %c0_43 = arith.constant 0 : index
    %c0_44 = arith.constant 0 : index
    %71 = vector.load %arg4[%c5, %c0_43, %c0_44] : memref<9x8x8xf32, #tpu.memory_space<vmem>>, vector<1x8x8xf32>
    %72 = vector.shape_cast %71 : vector<1x8x8xf32> to vector<8x8xf32>
    %cst_45 = arith.constant dense<0.000000e+00> : vector<256x8xf32>
    %73 = tpu.matmul %70, %72, %cst_45 {dimension_numbers = #tpu.dot_dimension_numbers<[1], [0], [0], [1], [0, 0, 1, 1], [], []>} : vector<256x8xf32>, vector<8x8xf32>, vector<256x8xf32> -> vector<256x8xf32>
    %74 = arith.addf %68, %73 : vector<256x8xf32>
    %75 = vector.extract_strided_slice %62 {offsets = [0, 2, 0, 0], sizes = [1, 16, 16, 8], strides = [1, 1, 1, 1]} : vector<1x18x16x8xf32> to vector<1x16x16x8xf32>
    %76 = vector.shape_cast %75 : vector<1x16x16x8xf32> to vector<256x8xf32>
    %c8 = arith.constant 8 : index
    %c0_46 = arith.constant 0 : index
    %c0_47 = arith.constant 0 : index
    %77 = vector.load %arg4[%c8, %c0_46, %c0_47] : memref<9x8x8xf32, #tpu.memory_space<vmem>>, vector<1x8x8xf32>
    %78 = vector.shape_cast %77 : vector<1x8x8xf32> to vector<8x8xf32>
    %cst_48 = arith.constant dense<0.000000e+00> : vector<256x8xf32>
    %79 = tpu.matmul %76, %78, %cst_48 {dimension_numbers = #tpu.dot_dimension_numbers<[1], [0], [0], [1], [0, 0, 1, 1], [], []>} : vector<256x8xf32>, vector<8x8xf32>, vector<256x8xf32> -> vector<256x8xf32>
    %80 = arith.addf %74, %79 : vector<256x8xf32>
    %81 = vector.shape_cast %80 : vector<256x8xf32> to vector<1x16x16x8xf32>
    %c0_49 = arith.constant 0 : index
    %c0_50 = arith.constant 0 : index
    %c0_51 = arith.constant 0 : index
    %c0_52 = arith.constant 0 : index
    %82 = vector.load %arg5[%c0_49, %c0_50, %c0_51, %c0_52] : memref<1x1x1x8xf32, #tpu.memory_space<vmem>>, vector<1x1x1x8xf32>
    %83 = vector.broadcast %82 : vector<1x1x1x8xf32> to vector<1x16x16x8xf32>
    %84 = arith.addf %81, %83 : vector<1x16x16x8xf32>
    %c0_53 = arith.constant 0 : index
    %c0_54 = arith.constant 0 : index
    %c0_55 = arith.constant 0 : index
    %c0_56 = arith.constant 0 : index
    %85 = vector.load %arg8[%c0_53, %c0_54, %c0_55, %c0_56] : memref<1x16x16x8xf32, #tpu.memory_space<vmem>>, vector<1x16x16x8xf32>
    tpu.vector_store %arg8[%c0_53, %c0_54, %c0_55, %c0_56], %84 {strides = array<i32>} : memref<1x16x16x8xf32, #tpu.memory_space<vmem>>, vector<1x16x16x8xf32>,
    return
  }
  func.func @transform_0(%arg0: i32) -> (i32, i32, i32, i32) {
    %c0_i32 = arith.constant 0 : i32
    %c0_i32_0 = arith.constant 0 : i32
    %c0_i32_1 = arith.constant 0 : i32
    %c0_i32_2 = arith.constant 0 : i32
    return %arg0, %c0_i32, %c0_i32_0, %c0_i32_1 : i32, i32, i32, i32
  }
  func.func @transform_1(%arg0: i32) -> (i32, i32, i32, i32) {
    %c0_i32 = arith.constant 0 : i32
    %c0_i32_0 = arith.constant 0 : i32
    %c0_i32_1 = arith.constant 0 : i32
    %c0_i32_2 = arith.constant 0 : i32
    %c0_i32_3 = arith.constant 0 : i32
    return %c0_i32, %c0_i32_0, %c0_i32_1, %c0_i32_2 : i32, i32, i32, i32
  }
  func.func @transform_2(%arg0: i32) -> (i32, i32, i32, i32) {
    %c0_i32 = arith.constant 0 : i32
    %c0_i32_0 = arith.constant 0 : i32
    %c0_i32_1 = arith.constant 0 : i32
    %c0_i32_2 = arith.constant 0 : i32
    %c0_i32_3 = arith.constant 0 : i32
    return %c0_i32, %c0_i32_0, %c0_i32_1, %c0_i32_2 : i32, i32, i32, i32
  }
  func.func @transform_3(%arg0: i32) -> (i32, i32, i32) {
    %c0_i32 = arith.constant 0 : i32
    %c0_i32_0 = arith.constant 0 : i32
    %c0_i32_1 = arith.constant 0 : i32
    %c0_i32_2 = arith.constant 0 : i32
    return %c0_i32, %c0_i32_0, %c0_i32_1 : i32, i32, i32
  }
  func.func @transform_4(%arg0: i32) -> (i32, i32, i32, i32) {
    %c0_i32 = arith.constant 0 : i32
    %c0_i32_0 = arith.constant 0 : i32
    %c0_i32_1 = arith.constant 0 : i32
    %c0_i32_2 = arith.constant 0 : i32
    %c0_i32_3 = arith.constant 0 : i32
    return %c0_i32, %c0_i32_0, %c0_i32_1, %c0_i32_2 : i32, i32, i32, i32
  }
  func.func @transform_5(%arg0: i32) -> (i32, i32, i32, i32) {
    %c0_i32 = arith.constant 0 : i32
    %c0_i32_0 = arith.constant 0 : i32
    %c0_i32_1 = arith.constant 0 : i32
    %c0_i32_2 = arith.constant 0 : i32
    return %arg0, %c0_i32, %c0_i32_0, %c0_i32_1 : i32, i32, i32, i32
  }
  func.func @transform_6(%arg0: i32) -> (i32, i32) {
    %c0_i32 = arith.constant 0 : i32
    %c0_i32_0 = arith.constant 0 : i32
    %c0_i32_1 = arith.constant 0 : i32
    return %c0_i32, %c0_i32_0 : i32, i32
  }
  func.func @transform_7(%arg0: i32) -> (i32, i32, i32, i32) {
    %c0_i32 = arith.constant 0 : i32
    %c0_i32_0 = arith.constant 0 : i32
    %c0_i32_1 = arith.constant 0 : i32
    %c0_i32_2 = arith.constant 0 : i32
    return %arg0, %c0_i32, %c0_i32_0, %c0_i32_1 : i32, i32, i32, i32
  }
}

</mosaic_0001>

<bundles_post_ra>
// kernel: double_conv_forward.2
= control target key start
LH: loop header
LB: loop body
LE: loop exit
PB: predicated region body
PF: predicated region fallthrough
CT: control target
= control target key end

     0   :  { %s5741_s24 = smov 0   ;;  %s7979_s0 = inlined_call_operand.vmem [shape: f32[2,18,18,4], index: 0, kind: input, shape index: {}]   ;;  %s7980_s1 = inlined_call_operand.vmem [shape: f32[1,1,1,4], index: 1, kind: input, shape index: {}]   ;;  %s7981_s2 = inlined_call_operand.vmem [shape: f32[1,1,1,4], index: 2, kind: input, shape index: {}]   ;;  %s7982_s3 = inlined_call_operand.vmem [shape: f32[9,4,8], index: 3, kind: input, shape index: {}]   ;;  %s7983_s4 = inlined_call_operand.vmem [shape: f32[2,1,1,8], index: 4, kind: input, shape index: {}]   ;;  %s7984_s5 = inlined_call_operand.vmem [shape: f32[2,16,16,8], index: 5, kind: output, shape index: {0}]   ;;  %s7985_s6 = inlined_call_operand.vmem [shape: f32[1,8], index: 6, kind: output, shape index: {1}]   ;;  %s7986_s7 = inlined_call_operand.vmem [shape: f32[1,8], index: 7, kind: output, shape index: {2}]  }
   0x1 LB: > { %s5747_s25 = sadd.s32 4294967295, %s5698_s24   ;;  %p4141_p0 = scmp.ge.s32.totalorder %s5698_s24, 1  ;;  %s5698_s24 = sphi %s5741_s24, %s18_s24  }
   0x2   : > { %p240_p1 = scmp.lt.s32.totalorder %s5698_s24, 3 }
   0x4   : > { %p241_p2 = pnand %p4141_p0, %p240_p1 }
   0x6   : > { %244 = sbr.rel (%p241_p2) target bundleno = 716 (0x2cc), region = 40 }
   0xd   : > { %v4147_v0 = vld [vmem:[%s7982_s3 + $0xc] sm:$0xf]  ;;  %vm1158_vm0 = vcmask 1043456   ;;  %p275_p3 = scmp.lt.s32.totalorder %s5747_s25, 1  ;;  %v4282_v1 = vld [vmem:[%s7982_s3 + $0x10] sm:$0xf] }
   0xe   : > { %4754 = vmatprep.subr.msk.mxu1 %vm1158_vm0, %v4147_v0  ;;  %4954 = vmatprep.subr.msk.mxu0 %vm1158_vm0, %v4282_v1  ;;  %v5767_v2 = vld [vmem:[%s7982_s3] sm:$0xf]  ;;  %v5772_v3 = vld [vmem:[%s7982_s3 + $0x1c] sm:$0xf]  ;;  %vm1061_vm4 = vcmask 31744   ;;  %vm1905_vm8 = vcmask 1046528  }
   0xf   : > { %4755 = vmatpush3.msk.msra.mxu1 %vm1158_vm0, %v4147_v0  ;;  %s5761_s30 = scalar_select %p275_p3, %s5747_s25, 1  ;;  %4955 = vmatpush3.msk.msra.mxu0 %vm1158_vm0, %v4282_v1  ;;  %v5783_v4 = vld [vmem:[%s7980_s1] ss:$0 sm:$0xff] }
  0x10   : > { %4804 = vmatprep.subr.msk.mxu1 %vm1158_vm0, %v5767_v2  ;;  %5004 = vmatprep.subr.msk.mxu0 %vm1158_vm0, %v5772_v3  ;;  %v5793_v5 = vld [vmem:[%s7981_s2] ss:$0 sm:$0xff]  ;;  %p4453_p4 = scmp.ne.s32.totalorder %s5747_s25, 0 }
  0x11   : > { %s5462_s12 = smul.u32 432, %s5761_s30  ;;  %s282_s20 = scalar_lea.vmem %s7983_s4, %s5761_s30 }
  0x12   : > { %s4456_s21 = sshll.u32 %s5761_s30, 8 }
  0x13   : > { %s5788_s17 = scalar_lea.vmem %s7979_s0, %s5462_s12  ;;  %s7598_s26 = scalar_lea.vmem %s7984_s5, %s4456_s21 }
  0x14   : > { %v291_v6 = vld [vmem:[%s5788_s17 + $0x18] sm:$0xff]  ;;  %v292_v7 = vld [vmem:[%s5788_s17 + $0x20] sm:$0xff]  ;;  %v294_v8 = vld [vmem:[%s5788_s17 + $0x30] sm:$0xff] }
  0x15   : > { %v352_v9 = vmul.f32 %v5783_v4, %v291_v6  ;;  %v353_v10 = vmul.f32 %v5783_v4, %v292_v7  ;;  %v355_v11 = vmul.f32 %v5783_v4, %v294_v8  ;;  %v293_v12 = vld [vmem:[%s5788_s17 + $0x28] sm:$0x3]  ;;  %v295_v13 = vld [vmem:[%s5788_s17 + $0x38] sm:$0xff]  ;;  %v296_v18 = vld [vmem:[%s5788_s17 + $0x40] sm:$0x3] }
  0x16   : > { %v297_v14 = vld [vmem:[%s5788_s17 + $0x48] sm:$0xff]  ;;  %v354_v15 = vmul.f32 %v5783_v4, %v293_v12  ;;  %v356_v16 = vmul.f32 %v5783_v4, %v295_v13  ;;  %v298_v22 = vld [vmem:[%s5788_s17 + $0x50] sm:$0xff]  ;;  %v357_v28 = vmul.f32 %v5783_v4, %v296_v18  ;;  %v299_v38 = vld [vmem:[%s5788_s17 + $0x58] sm:$0x3] }
  0x17   : > { %v358_v17 = vmul.f32 %v5783_v4, %v297_v14  ;;  %v5809_v19 = vadd.f32 %v5793_v5, %v352_v9  ;;  %v5812_v20 = vadd.f32 %v5793_v5, %v353_v10  ;;  %v5815_v21 = vadd.f32 %v5793_v5, %v355_v11  ;;  %v300_v47 = vld [vmem:[%s5788_s17 + $0x60] sm:$0xff]  ;;  %v301_v50 = vld [vmem:[%s5788_s17 + $0x68] sm:$0xff]  ;;  %v303_v51 = vld [vmem:[%s5788_s17 + $0x78] sm:$0xff] }
  0x18   : > { %v5819_v23 = vadd.f32 %v5793_v5, %v354_v15  ;;  %v5822_v24 = vadd.f32 %v5793_v5, %v356_v16  ;;  %v359_v31 = vmul.f32 %v5783_v4, %v298_v22  ;;  %v5837_v42 = vadd.f32 %v5793_v5, %v357_v28  ;;  %v302_v6 = vld [vmem:[%s5788_s17 + $0x70] sm:$0x3]  ;;  %v304_v7 = vld [vmem:[%s5788_s17 + $0x80] sm:$0xff] }
  0x19   : > { %v5825_v25 = vadd.f32 %v5793_v5, %v358_v17  ;;  %v467_v26 = vand.u32 2147483647, %v5809_v19  ;;  %v468_v27 = vand.u32 2147483647, %v5812_v20  ;;  %v470_v29 = vand.u32 2147483647, %v5815_v21 }
  0x1a   : > { %v469_v30 = vand.u32 2147483647, %v5819_v23  ;;  %v471_v34 = vand.u32 2147483647, %v5822_v24  ;;  %v5840_v46 = vadd.f32 %v5793_v5, %v359_v31  ;;  %v472_v49 = vand.u32 2147483647, %v5837_v42 }
  0x1b   : > { %v521_v32 = vsub.f32 0.0, %v467_v26  ;;  %v522_v33 = vsub.f32 0.0, %v468_v27  ;;  %v524_v35 = vsub.f32 0.0, %v470_v29  ;;  %v473_v37 = vand.u32 2147483647, %v5825_v25  ;;  %v306_v8 = vld [vmem:[%s5788_s17 + $0x90] sm:$0xff] }
  0x1c   : > { %v523_v36 = vsub.f32 0.0, %v469_v30  ;;  %v525_v41 = vsub.f32 0.0, %v471_v34  ;;  %v474_v53 = vand.u32 2147483647, %v5840_v46  ;;  %v526_v54 = vsub.f32 0.0, %v472_v49 }
  0x1d   : > { %v578_v39 = vmul.f32 1.442695, %v521_v32  ;;  %v580_v40 = vmul.f32 1.442695, %v522_v33  ;;  %v584_v43 = vmul.f32 1.442695, %v524_v35  ;;  %v361_v55 = vmul.f32 %v5783_v4, %v300_v47 }
  0x1e   : > { %v582_v44 = vmul.f32 1.442695, %v523_v36  ;;  %v527_v45 = vsub.f32 0.0, %v473_v37  ;;  %v586_v48 = vmul.f32 1.442695, %v525_v41  ;;  %v360_v56 = vmul.f32 %v5783_v4, %v299_v38 }
  0x1f   : > { %5472 = vpow2.f32 %v578_v39  ;;  %v528_v57 = vsub.f32 0.0, %v474_v53  ;;  %v362_v58 = vmul.f32 %v5783_v4, %v301_v50  ;;  %v364_v59 = vmul.f32 %v5783_v4, %v303_v51  ;;  %v305_v29 = vld [vmem:[%s5788_s17 + $0x88] sm:$0x3] }
  0x20   : > { %5474 = vpow2.f32 %v580_v40  ;;  %v590_v52 = vmul.f32 1.442695, %v527_v45  ;;  %v588_v60 = vmul.f32 1.442695, %v526_v54  ;;  %v5852_v61 = vadd.f32 %v5793_v5, %v361_v55  ;;  %v309_v53 = vld [vmem:[%s5788_s17 + $0xa8] sm:$0xff] }
  0x21   : > { %5476 = vpow2.f32 %v584_v43  ;;  %v5855_v62 = vadd.f32 %v5793_v5, %v360_v56  ;;  %v592_v63 = vmul.f32 1.442695, %v528_v57  ;;  %v5858_v0 = vadd.f32 %v5793_v5, %v362_v58  ;;  %v308_v58 = vld [vmem:[%s5788_s17 + $0xa0] sm:$0x3] }
  0x22   : > { %5478 = vpow2.f32 %v582_v44  ;;  %v476_v1 = vand.u32 2147483647, %v5852_v61  ;;  %v5865_v9 = vadd.f32 %v5793_v5, %v364_v59  ;;  %v363_v13 = vmul.f32 %v5783_v4, %v302_v6 }
  0x23   : > { %5480 = vpow2.f32 %v586_v48  ;;  %v475_v11 = vand.u32 2147483647, %v5855_v62  ;;  %v477_v12 = vand.u32 2147483647, %v5858_v0  ;;  %v365_v14 = vmul.f32 %v5783_v4, %v304_v7 }
  0x24   : > { %5482 = vpow2.f32 %v590_v52  ;;  %v530_v10 = vsub.f32 0.0, %v476_v1  ;;  %v367_v15 = vmul.f32 %v5783_v4, %v306_v8  ;;  %v479_v26 = vand.u32 2147483647, %v5865_v9  ;;  %v307_v52 = vld [vmem:[%s5788_s17 + $0x98] sm:$0xff]  ;;  %v310_v8 = vld [vmem:[%s5788_s17 + $0xb0] sm:$0xff] }
  0x25   : > { %5484 = vpow2.f32 %v588_v60  ;;  %v5879_v27 = vadd.f32 %v5793_v5, %v363_v13  ;;  %v5882_v28 = vadd.f32 %v5793_v5, %v365_v14  ;;  %v529_v32 = vsub.f32 0.0, %v475_v11 }
  0x26   : > { %5486 = vpow2.f32 %v592_v63  ;;  %v596_v17 = vmul.f32 1.442695, %v530_v10  ;;  %v5889_v33 = vadd.f32 %v5793_v5, %v367_v15  ;;  %v531_v36 = vsub.f32 0.0, %v477_v12 }
  0x27   : > { %v478_v37 = vand.u32 2147483647, %v5879_v27  ;;  %v480_v40 = vand.u32 2147483647, %v5882_v28  ;;  %v366_v41 = vmul.f32 %v5783_v4, %v305_v29  ;;  %vm845_vm1 = vcmp.ge.f32.partialorder %v5809_v19, 0.0 }
  0x28   : > { %5488 = vpow2.f32 %v596_v17  ;;  %v533_v45 = vsub.f32 0.0, %v479_v26  ;;  %v482_v47 = vand.u32 2147483647, %v5889_v33  ;;  %vm846_vm2 = vcmp.ge.f32.partialorder %v5812_v20, 0.0 }
  0x29   : > { %v5872_v16 = vpop.eup %5472  ;;  %v594_v50 = vmul.f32 1.442695, %v529_v32  ;;  %v532_v51 = vsub.f32 0.0, %v478_v37  ;;  %vm848_vm3 = vcmp.ge.f32.partialorder %v5815_v21, 0.0  ;;  %v598_v56 = vmul.f32 1.442695, %v531_v36 }
  0x2a   : > { %v5874_v18 = vpop.eup %5474  ;;  %v683_v22 = vadd.f32 1.0, %v5872_v16  ;;  %v534_v57 = vsub.f32 0.0, %v480_v40  ;;  %vm847_vm5 = vcmp.ge.f32.partialorder %v5819_v23, 0.0  ;;  %v536_v60 = vsub.f32 0.0, %v482_v47 }
  0x2b   : > { %v5885_v30 = vpop.eup %5476  ;;  %v684_v31 = vadd.f32 1.0, %v5874_v18  ;;  %v5919_v63 = vadd.f32 %v5793_v5, %v366_v41  ;;  %vm849_vm6 = vcmp.ge.f32.partialorder %v5822_v24, 0.0  ;;  %v602_v1 = vmul.f32 1.442695, %v533_v45 }
  0x2c   : > { %v5891_v34 = vpop.eup %5478  ;;  %5490 = vrcp.f32 %v683_v22  ;;  %v686_v35 = vadd.f32 1.0, %v5885_v30  ;;  %v368_v6 = vmul.f32 %v5783_v4, %v307_v52  ;;  %v370_v7 = vmul.f32 %v5783_v4, %v309_v53 }
  0x2d   : > { %v5895_v38 = vpop.eup %5480  ;;  %5492 = vrcp.f32 %v684_v31  ;;  %v685_v39 = vadd.f32 1.0, %v5891_v34  ;;  %vm851_vm7 = vcmp.ge.f32.partialorder %v5825_v25, 0.0  ;;  %v600_v10 = vmul.f32 1.442695, %v532_v51  ;;  %v312_v31 = vld [vmem:[%s5788_s17 + $0xc0] sm:$0xff] }
  0x2e   : > { %v5900_v43 = vpop.eup %5482  ;;  %5494 = vrcp.f32 %v686_v35  ;;  %v687_v44 = vadd.f32 1.0, %v5895_v38  ;;  %v481_v11 = vand.u32 2147483647, %v5919_v63  ;;  %v369_v12 = vmul.f32 %v5783_v4, %v308_v58 }
  0x2f   : > { %v5905_v48 = vpop.eup %5484  ;;  %5496 = vrcp.f32 %v685_v39  ;;  %v689_v49 = vadd.f32 1.0, %v5900_v43  ;;  %vm850_vm9 = vcmp.ge.f32.partialorder %v5837_v42, 0.0  ;;  %v604_v13 = vmul.f32 1.442695, %v534_v57 }
  0x30   : > { %v5911_v54 = vpop.eup %5486  ;;  %5498 = vrcp.f32 %v687_v44  ;;  %v688_v55 = vadd.f32 1.0, %v5905_v48  ;;  %v5930_v14 = vadd.f32 %v5793_v5, %v368_v6  ;;  %v5933_v15 = vadd.f32 %v5793_v5, %v370_v7  ;;  %v4214_v7 = vld [vmem:[%s7982_s3 + $0x18] sm:$0xf] }
  0x31   : > { %5500 = vrcp.f32 %v689_v49  ;;  %v690_v59 = vadd.f32 1.0, %v5911_v54  ;;  %vm852_vm10 = vcmp.ge.f32.partialorder %v5840_v46, 0.0  ;;  %v608_v22 = vmul.f32 1.442695, %v536_v60 }
  0x32   : > { %5502 = vrcp.f32 %v688_v55  ;;  %v5935_v17 = vpop.eup %5488  ;;  %v535_v26 = vsub.f32 0.0, %v481_v11  ;;  %v5939_v29 = vmul.f32 %v5783_v4, %v310_v8  ;;  %v483_v36 = vand.u32 2147483647, %v5930_v14 }
  0x33   : > { %5504 = vrcp.f32 %v690_v59  ;;  %v692_v35 = vadd.f32 1.0, %v5935_v17  ;;  %v5945_v37 = vadd.f32 %v5793_v5, %v369_v12  ;;  %v485_v44 = vand.u32 2147483647, %v5933_v15 }
  0x34   : > { %5506 = vpow2.f32 %v594_v50  ;;  %v606_v41 = vmul.f32 1.442695, %v535_v26  ;;  %v5950_v49 = vsub.f32 0.0, %v483_v36  ;;  %v5953_v50 = vmul.f32 %v5783_v4, %v312_v31 }
  0x35   : > { %5508 = vpow2.f32 %v598_v56  ;;  %vm854_vm11 = vcmp.ge.f32.partialorder %v5852_v61, 0.0  ;;  %vm853_vm12 = vcmp.ge.f32.partialorder %v5855_v62, 0.0  ;;  %vm855_vm13 = vcmp.ge.f32.partialorder %v5858_v0, 0.0 }
  0x36   : > { %v5491_v32 = vpop.eup %5490  ;;  %5510 = vpow2.f32 %v602_v1  ;;  %vm857_vm14 = vcmp.ge.f32.partialorder %v5865_v9, 0.0  ;;  %vm856_vm15 = vcmp.ge.f32.partialorder %v5879_v27, 0.0 }
  0x37   : > { %v5493_v39 = vpop.eup %5492  ;;  %v899_v40 = vmul.f32 %v5491_v32, %v5872_v16  ;;  %5512 = vpow2.f32 %v600_v10  ;;  %v5958_v16 = vsub.f32 0.0, %v485_v44 }
  0x38   : > { %v5495_v45 = vpop.eup %5494  ;;  %v900_v47 = vmul.f32 %v5493_v39, %v5874_v18  ;;  %5514 = vrcp.f32 %v692_v35 }
  0x39   : > { %v5497_v51 = vpop.eup %5496  ;;  %v953_v52 = vsel %vm845_vm1, %v5491_v32, %v899_v40  ;;  %v902_v53 = vmul.f32 %v5495_v45, %v5885_v30  ;;  %5516 = vpow2.f32 %v604_v13  ;;  %vm858_vm1 = vcmp.ge.f32.partialorder %v5882_v28, 0.0 }
  0x3a   : > { %v5499_v55 = vpop.eup %5498  ;;  %v5961_v56 = vmul.f32 %v953_v52, %v5809_v19  ;;  %v954_v18 = vsel %vm846_vm2, %v5493_v39, %v900_v47  ;;  %v901_v57 = vmul.f32 %v5497_v51, %v5891_v34  ;;  %5518 = vpow2.f32 %v608_v22 }
  0x3b   : > { %v5501_v58 = vpop.eup %5500  ;;  %v5968_v59 = vmul.f32 %v954_v18, %v5812_v20  ;;  %v956_v30 = vsel %vm848_vm3, %v5495_v45, %v902_v53  ;;  %v903_v60 = vmul.f32 %v5499_v55, %v5895_v38  ;;  %5520 = vpow2.f32 %v606_v41  ;;  %v6045_v45 = vld [vmem:[%s7982_s3 + $0x8] sm:$0xf] }
  0x3c   : > { %v5503_v19 = vpop.eup %5502  ;;  %4756 = vmatprep.mubr.msk.f32.mxu1 %vm1061_vm4, %v5961_v56  ;;  %v1911_v1 = vrot.slane %v5961_v56, 1  ;;  %v5977_v34 = vmul.f32 %v956_v30, %v5815_v21  ;;  %v955_v6 = vsel %vm847_vm5, %v5497_v51, %v901_v57  ;;  %v905_v20 = vmul.f32 %v5501_v58, %v5900_v43 }
  0x3d   : > { %v5505_v38 = vpop.eup %5504  ;;  %4757 = vmatmul.mubr.msk.f32.vlgmr.msra.gmra.mrb[0].mxu1 %vm1061_vm4, %v5968_v59  ;;  %v1912_v8 = vrot.slane %v5968_v59, 1  ;;  %v5989_v10 = vmul.f32 %v955_v6, %v5819_v23  ;;  %v957_v21 = vsel %vm849_vm6, %v5499_v55, %v903_v60  ;;  %v904_v11 = vmul.f32 %v5503_v19, %v5905_v48  ;;  %v311_v6 = vld [vmem:[%s5788_s17 + $0xb8] sm:$0x3] }
  0x3e   : > { %v5994_v12 = vpop.eup %5506  ;;  %4759 = vmatprep.mubr.msk.f32.mxu1 %vm1061_vm4, %v5977_v34  ;;  %4805 = vmatpush3.msk.msra.mxu1 %vm1158_vm0, %v5767_v2  ;;  %v6001_v43 = vmul.f32 %v957_v21, %v5822_v24  ;;  %v1916_v13 = vrot.slane %v5977_v34, 1  ;;  %v959_v23 = vsel %vm851_vm7, %v5501_v58, %v905_v20  ;;  %v906_v22 = vmul.f32 %v5505_v38, %v5911_v54 }
  0x3f   : > { %8053 = vst [vmem:[#allocation2_spill] sm:$0xff] %v5989_v10  ;;  %v6007_v26 = vpop.eup %5508  ;;  %v6010_v48 = vsel %vm1905_vm8, %v1911_v1, %v1912_v8  ;;  %v1914_v31 = vrot.slane %v5989_v10, 1  ;;  %v6014_v32 = vmul.f32 %v959_v23, %v5825_v25  ;;  %v958_v2 = vsel %vm850_vm9, %v5503_v19, %v904_v11  ;;  %4854 = vmatprep.subr.msk.mxu1 %vm1158_vm0, %v4214_v7  ;;  %v313_v11 = vld [vmem:[%s5788_s17 + $0xc8] sm:$0xff] }
  0x40   : > { %8054 = vst [vmem:[#allocation3_spill] sm:$0xff] %v6010_v48  ;;  %v6019_v24 = vpop.eup %5510  ;;  %4956 = vmatprep.mubr.msk.f32.mxu0 %vm1061_vm4, %v6010_v48  ;;  %v1917_v54 = vrot.slane %v6001_v43, 1  ;;  %v6025_v35 = vmul.f32 %v958_v2, %v5837_v42  ;;  %v960_v36 = vsel %vm852_vm10, %v5505_v38, %v906_v22  ;;  %v691_v25 = vadd.f32 1.0, %v5994_v12 }
  0x41   : > { %v6030_v39 = vpop.eup %5512  ;;  %v6033_v40 = vsel %vm1905_vm8, %v1912_v8, %v1914_v31  ;;  %4760 = vmatmul.mubr.msk.f32.gmra.mrb[2].mxu1 %vm1061_vm4, %v6001_v43  ;;  %v6038_v41 = vmul.f32 %v960_v36, %v5840_v46  ;;  %v1921_v44 = vrot.slane %v6014_v32, 1  ;;  %v693_v42 = vadd.f32 1.0, %v6007_v26 }
  0x42   : > { %8055 = vst [vmem:[#allocation4_spill] sm:$0xff] %v6025_v35  ;;  %8056 = vst [vmem:[#allocation5_spill] sm:$0xff] %v6033_v40  ;;  %v5515_v47 = vpop.eup %5514  ;;  %4957 = vmatmul.mubr.msk.f32.vlgmr.msra.gmra.mrb[0].mxu0 %vm1061_vm4, %v6033_v40  ;;  %v6050_v51 = vsel %vm1905_vm8, %v1916_v13, %v1917_v54  ;;  %4762 = vmatprep.mubr.msk.f32.mxu1 %vm1061_vm4, %v6014_v32  ;;  %v1919_v46 = vrot.slane %v6025_v35, 1  ;;  %5522 = vrcp.f32 %v691_v25  ;;  %v695_v52 = vadd.f32 1.0, %v6019_v24  ;;  %v315_v13 = vld [vmem:[%s5788_s17 + $0xd8] sm:$0xff] }
  0x43   : > { %8057 = vst [vmem:[#allocation6_spill] sm:$0xff] %v6050_v51  ;;  %v6056_v53 = vpop.eup %5516  ;;  %5005 = vmatpush3.msk.msra.mxu0 %vm1158_vm0, %v5772_v3  ;;  %4959 = vmatprep.mubr.msk.f32.mxu0 %vm1061_vm4, %v6050_v51  ;;  %v1922_v55 = vrot.slane %v6038_v41, 1  ;;  %v908_v18 = vmul.f32 %v5515_v47, %v5935_v17  ;;  %5524 = vrcp.f32 %v693_v42  ;;  %v694_v57 = vadd.f32 1.0, %v6030_v39 }
  0x44   : > { %v6065_v58 = vpop.eup %5518  ;;  %v6068_v30 = vsel %vm1905_vm8, %v1917_v54, %v1919_v46  ;;  %5526 = vrcp.f32 %v695_v52  ;;  %v696_v3 = vadd.f32 1.0, %v6056_v53  ;;  %v610_v60 = vmul.f32 1.442695, %v5950_v49  ;;  %5054 = vmatprep.subr.msk.mxu0 %vm1158_vm0, %v6045_v45 }
  0x45   : > { %8058 = vst [vmem:[#allocation7_spill] sm:$0xff] %v6068_v30  ;;  %v6075_v17 = vpop.eup %5520  ;;  %4763 = vmatmul.mubr.msk.f32.gmra.mrb[4].mxu1 %vm1061_vm4, %v6038_v41  ;;  %v6082_v19 = vsel %vm1905_vm8, %v1921_v44, %v1922_v55  ;;  %v962_v1 = vsel %vm854_vm11, %v5515_v47, %v908_v18  ;;  %5528 = vrcp.f32 %v694_v57  ;;  %v698_v49 = vadd.f32 1.0, %v6065_v58 }
  0x46   : > { %8059 = vst [vmem:[#allocation8_spill] sm:$0xff] %v6082_v19  ;;  %4960 = vmatmul.mubr.msk.f32.gmra.mrb[2].mxu0 %vm1061_vm4, %v6068_v30  ;;  %v6092_v20 = vmul.f32 %v962_v1, %v5852_v61  ;;  %5530 = vrcp.f32 %v696_v3  ;;  %v697_v7 = vadd.f32 1.0, %v6075_v17  ;;  %v614_v38 = vmul.f32 1.442695, %v5958_v16 }
  0x47   : > { %4962 = vmatprep.mubr.msk.f32.mxu0 %vm1061_vm4, %v6082_v19  ;;  %5532 = vrcp.f32 %v698_v49  ;;  %v484_v8 = vand.u32 2147483647, %v5945_v37  ;;  %v6102_v21 = vadd.f32 %v5793_v5, %v5939_v29  ;;  %v6109_v61 = vadd.f32 %v5793_v5, %v5953_v50 }
  0x48   : > { %4765 = vmatprep.mubr.msk.f32.mxu1 %vm1061_vm4, %v6092_v20  ;;  %5534 = vrcp.f32 %v697_v7  ;;  %v372_v16 = vmul.f32 %v5783_v4, %v311_v6  ;;  %vm860_vm2 = vcmp.ge.f32.partialorder %v5889_v33, 0.0  ;;  %v374_v54 = vmul.f32 %v5783_v4, %v313_v11 }
  0x49   : > { %5536 = vpow2.f32 %v610_v60  ;;  %v538_v23 = vsub.f32 0.0, %v484_v8  ;;  %v486_v29 = vand.u32 2147483647, %v6102_v21  ;;  %v488_v22 = vand.u32 2147483647, %v6109_v61 }
  0x4a   : > { %5538 = vpow2.f32 %v614_v38  ;;  %v6119_v31 = vadd.f32 %v5793_v5, %v372_v16  ;;  %v376_v36 = vmul.f32 %v5783_v4, %v315_v13  ;;  %v1926_v44 = vrot.slane %v6092_v20, 1 }
  0x4b   : > { %v612_v50 = vmul.f32 1.442695, %v538_v23  ;;  %v540_v2 = vsub.f32 0.0, %v486_v29  ;;  %vm859_vm3 = vcmp.ge.f32.partialorder %v5919_v63, 0.0  ;;  %v542_v42 = vsub.f32 0.0, %v488_v22 }
  0x4c   : > { %v5523_v25 = vpop.eup %5522  ;;  %v487_v47 = vand.u32 2147483647, %v6119_v31  ;;  %v6128_v57 = vadd.f32 %v5793_v5, %v374_v54  ;;  %v6132_v6 = vadd.f32 %v5793_v5, %v376_v36  ;;  %vm861_vm5 = vcmp.ge.f32.partialorder %v5930_v14, 0.0 }
  0x4d   : > { %v5525_v46 = vpop.eup %5524  ;;  %v907_v52 = vmul.f32 %v5523_v25, %v5994_v12  ;;  %5540 = vpow2.f32 %v612_v50  ;;  %v616_v18 = vmul.f32 1.442695, %v540_v2  ;;  %v620_v1 = vmul.f32 1.442695, %v542_v42 }
  0x4e   : > { %v5527_v3 = vpop.eup %5526  ;;  %v909_v60 = vmul.f32 %v5525_v46, %v6007_v26  ;;  %v541_v49 = vsub.f32 0.0, %v487_v47  ;;  %v489_v12 = vand.u32 2147483647, %v6128_v57  ;;  %vm863_vm6 = vcmp.ge.f32.partialorder %v5933_v15, 0.0 }
  0x4f   : > { %v5529_v7 = vpop.eup %5528  ;;  %v961_v38 = vsel %vm853_vm12, %v5523_v25, %v907_v52  ;;  %v911_v8 = vmul.f32 %v5527_v3, %v6019_v24  ;;  %5542 = vpow2.f32 %v616_v18  ;;  %v314_v18 = vld [vmem:[%s5788_s17 + $0xd0] sm:$0x3]  ;;  %vm862_vm7 = vcmp.ge.f32.partialorder %v5945_v37, 0.0 }
  0x50   : > { %v5531_v16 = vpop.eup %5530  ;;  %v6139_v11 = vmul.f32 %v961_v38, %v5855_v62  ;;  %v963_v26 = vsel %vm855_vm13, %v5525_v46, %v909_v60  ;;  %v910_v13 = vmul.f32 %v5529_v7, %v6030_v39  ;;  %5544 = vpow2.f32 %v620_v1 }
  0x51   : > { %v5533_v23 = vpop.eup %5532  ;;  %v6145_v29 = vmul.f32 %v963_v26, %v5858_v0  ;;  %v965_v24 = vsel %vm857_vm14, %v5527_v3, %v911_v8  ;;  %v912_v22 = vmul.f32 %v5531_v16, %v6056_v53  ;;  %v618_v50 = vmul.f32 1.442695, %v541_v49 }
  0x52   : > { %8060 = vst [vmem:[#allocation9_spill] sm:$0xff] %v6139_v11  ;;  %v5535_v2 = vpop.eup %5534  ;;  %v1924_v62 = vrot.slane %v6139_v11, 1  ;;  %v6152_v54 = vmul.f32 %v965_v24, %v5865_v9  ;;  %v964_v39 = vsel %vm856_vm15, %v5529_v7, %v910_v13  ;;  %v914_v36 = vmul.f32 %v5533_v23, %v6065_v58  ;;  %v316_v13 = vld [vmem:[%s5788_s17 + $0xe0] sm:$0xff] }
  0x53   : > { %v6157_v0 = vpop.eup %5536  ;;  %4766 = vmatmul.mubr.msk.f32.gmra.mrb[6].mxu1 %vm1061_vm4, %v6145_v29  ;;  %v1927_v53 = vrot.slane %v6145_v29, 1  ;;  %v6163_v25 = vmul.f32 %v964_v39, %v5879_v27  ;;  %v966_v42 = vsel %vm858_vm1, %v5531_v16, %v912_v22  ;;  %v913_v9 = vmul.f32 %v5535_v2, %v6075_v17  ;;  %v318_v22 = vld [vmem:[%s5788_s17 + $0xf0] sm:$0xff] }
  0x54   : > { %v6168_v47 = vpop.eup %5538  ;;  %v6173_v58 = vsel %vm1905_vm8, %v1922_v55, %v1924_v62  ;;  %4768 = vmatprep.mubr.msk.f32.mxu1 %vm1061_vm4, %v6152_v54  ;;  %v6178_v46 = vmul.f32 %v966_v42, %v5882_v28  ;;  %v1931_v27 = vrot.slane %v6152_v54, 1  ;;  %v968_v52 = vsel %vm860_vm2, %v5533_v23, %v914_v36 }
  0x55   : > { %8061 = vst [vmem:[#allocation10_spill] sm:$0xff] %v6163_v25  ;;  %8062 = vst [vmem:[#allocation11_spill] sm:$0xff] %v6173_v58  ;;  %4963 = vmatmul.mubr.msk.f32.gmra.mrb[4].mxu0 %vm1061_vm4, %v6173_v58  ;;  %v6187_v17 = vsel %vm1905_vm8, %v1926_v44, %v1927_v53  ;;  %v1929_v55 = vrot.slane %v6163_v25, 1  ;;  %v6191_v3 = vmul.f32 %v968_v52, %v5889_v33  ;;  %v699_v44 = vadd.f32 1.0, %v6157_v0 }
  0x56   : > { %8063 = vst [vmem:[#allocation12_spill] sm:$0xff] %v6187_v17  ;;  %v967_v28 = vsel %vm859_vm3, %v5535_v2, %v913_v9  ;;  %4965 = vmatprep.mubr.msk.f32.mxu0 %vm1061_vm4, %v6187_v17  ;;  %v1932_v60 = vrot.slane %v6178_v46, 1  ;;  %v701_v49 = vadd.f32 1.0, %v6168_v47  ;;  %5546 = vpow2.f32 %v618_v50  ;;  %v319_v50 = vld [vmem:[%s5788_s17 + $0xf8] sm:$0xff]  ;;  %v321_v9 = vld [vmem:[%s5788_s17 + $0x108] sm:$0xff] }
  0x57   : > { %8064 = vst [vmem:[#allocation13_spill] sm:$0xff] %v6191_v3  ;;  %v6199_v1 = vmul.f32 %v967_v28, %v5919_v63  ;;  %v6203_v7 = vpop.eup %5540  ;;  %v6206_v33 = vsel %vm1905_vm8, %v1927_v53, %v1929_v55  ;;  %4769 = vmatmul.mubr.msk.f32.gmra.mrb[8].mxu1 %vm1061_vm4, %v6178_v46  ;;  %v543_v38 = vsub.f32 0.0, %v489_v12  ;;  %v375_v8 = vmul.f32 %v5783_v4, %v314_v18  ;;  %v322_v55 = vld [vmem:[%s5788_s17 + $0x110] sm:$0xff] }
  0x58   : > { %8066 = vst [vmem:[#allocation15_spill] sm:$0xff] %v6206_v33  ;;  %v6212_v63 = vsel %vm1905_vm8, %v1931_v27, %v1932_v60  ;;  %4771 = vmatprep.mubr.msk.f32.mxu1 %vm1061_vm4, %v6191_v3  ;;  %5548 = vrcp.f32 %v699_v44  ;;  %v700_v26 = vadd.f32 1.0, %v6203_v7  ;;  %v491_v24 = vand.u32 2147483647, %v6132_v6 }
  0x59   : > { %8065 = vst [vmem:[#allocation14_spill] sm:$0xff] %v6199_v1  ;;  %8067 = vst [vmem:[#allocation16_spill] sm:$0xff] %v6212_v63  ;;  %v1934_v16 = vrot.slane %v6199_v1, 1  ;;  %v6219_v23 = vpop.eup %5542  ;;  %4966 = vmatmul.mubr.msk.f32.gmra.mrb[6].mxu0 %vm1061_vm4, %v6206_v33  ;;  %5550 = vrcp.f32 %v701_v49  ;;  %v622_v12 = vmul.f32 1.442695, %v543_v38  ;;  %v6238_v42 = vadd.f32 %v5793_v5, %v375_v8 }
  0x5a   : > { %v6226_v2 = vpop.eup %5544  ;;  %4968 = vmatprep.mubr.msk.f32.mxu0 %vm1061_vm4, %v6212_v63  ;;  %5552 = vrcp.f32 %v700_v26  ;;  %v702_v39 = vadd.f32 1.0, %v6219_v23  ;;  %v545_v53 = vsub.f32 0.0, %v491_v24  ;;  %v377_v27 = vmul.f32 %v5783_v4, %v316_v13 }
  0x5b   : > { %v6231_v62 = vsel %vm1905_vm8, %v1932_v60, %v1934_v16  ;;  %v704_v36 = vadd.f32 1.0, %v6226_v2  ;;  %5554 = vpow2.f32 %v622_v12  ;;  %v379_v52 = vmul.f32 %v5783_v4, %v318_v22  ;;  %v324_v16 = vld [vmem:[%s5788_s17 + $0x120] sm:$0xff] }
  0x5c   : > { %8068 = vst [vmem:[#allocation17_spill] sm:$0xff] %v6231_v62  ;;  %5556 = vrcp.f32 %v702_v39  ;;  %v380_v18 = vmul.f32 %v5783_v4, %v319_v50  ;;  %v626_v28 = vmul.f32 1.442695, %v545_v53  ;;  %v490_v60 = vand.u32 2147483647, %v6238_v42 }
  0x5d   : > { %4969 = vmatmul.mubr.msk.f32.gmra.mrb[8].mxu0 %vm1061_vm4, %v6231_v62  ;;  %5558 = vrcp.f32 %v704_v36  ;;  %v6250_v44 = vadd.f32 %v5793_v5, %v377_v27  ;;  %v6253_v49 = vadd.f32 %v5793_v5, %v379_v52  ;;  %v382_v8 = vmul.f32 %v5783_v4, %v321_v9 }
  0x5e   : > { %v6256_v38 = vadd.f32 %v5793_v5, %v380_v18  ;;  %vm864_vm9 = vcmp.ge.f32.partialorder %v6102_v21, 0.0  ;;  %5560 = vpow2.f32 %v626_v28  ;;  %v544_v26 = vsub.f32 0.0, %v490_v60 }
  0x5f   : > { %v383_v13 = vmul.f32 %v5783_v4, %v322_v55  ;;  %v1936_v12 = vrot.slane %v6191_v3, 1  ;;  %vm866_vm10 = vcmp.ge.f32.partialorder %v6109_v61, 0.0  ;;  %v492_v24 = vand.u32 2147483647, %v6250_v44 }
  0x60   : > { %v494_v22 = vand.u32 2147483647, %v6253_v49  ;;  %v6266_v50 = vpop.eup %5546  ;;  %v624_v39 = vmul.f32 1.442695, %v544_v26  ;;  %v495_v36 = vand.u32 2147483647, %v6256_v38  ;;  %v6270_v53 = vadd.f32 %v5793_v5, %v382_v8 }
  0x61   : > { %v385_v9 = vmul.f32 %v5783_v4, %v324_v16  ;;  %v703_v52 = vadd.f32 1.0, %v6266_v50  ;;  %v546_v18 = vsub.f32 0.0, %v492_v24  ;;  %v6275_v28 = vadd.f32 %v5793_v5, %v383_v13 }
  0x62   : > { %v5549_v27 = vpop.eup %5548  ;;  %v548_v55 = vsub.f32 0.0, %v494_v22  ;;  %5562 = vpow2.f32 %v624_v39  ;;  %v549_v26 = vsub.f32 0.0, %v495_v36  ;;  %v497_v48 = vand.u32 2147483647, %v6270_v53 }
  0x63   : > { %v5551_v60 = vpop.eup %5550  ;;  %v915_v40 = vmul.f32 %v5549_v27, %v6157_v0  ;;  %5564 = vrcp.f32 %v703_v52  ;;  %v628_v16 = vmul.f32 1.442695, %v546_v18  ;;  %vm865_vm11 = vcmp.ge.f32.partialorder %v6119_v31, 0.0 }
  0x64   : > { %v5553_v1 = vpop.eup %5552  ;;  %v917_v8 = vmul.f32 %v5551_v60, %v6168_v47  ;;  %v632_v25 = vmul.f32 1.442695, %v548_v55  ;;  %v634_v22 = vmul.f32 1.442695, %v549_v26  ;;  %v551_v35 = vsub.f32 0.0, %v497_v48  ;;  %v325_v26 = vld [vmem:[%s5788_s17 + $0x128] sm:$0xff] }
  0x65   : > { %v6280_v11 = vpop.eup %5554  ;;  %v969_v24 = vsel %vm861_vm5, %v5549_v27, %v915_v40  ;;  %v916_v13 = vmul.f32 %v5553_v1, %v6203_v7  ;;  %5566 = vpow2.f32 %v628_v16  ;;  %vm867_vm12 = vcmp.ge.f32.partialorder %v6128_v57, 0.0 }
  0x66   : > { %v5557_v0 = vpop.eup %5556  ;;  %v6286_v39 = vmul.f32 %v969_v24, %v5930_v14  ;;  %v971_v36 = vsel %vm863_vm6, %v5551_v60, %v917_v8  ;;  %v705_v47 = vadd.f32 1.0, %v6280_v11  ;;  %5568 = vpow2.f32 %v632_v25 }
  0x67   : > { %v5559_v52 = vpop.eup %5558  ;;  %v6292_v18 = vmul.f32 %v971_v36, %v5933_v15  ;;  %v970_v40 = vsel %vm862_vm7, %v5553_v1, %v916_v13  ;;  %v918_v7 = vmul.f32 %v5557_v0, %v6219_v23  ;;  %v638_v23 = vmul.f32 1.442695, %v551_v35 }
  0x68   : > { %8069 = vst [vmem:[#allocation18_spill] sm:$0xff] %v6286_v39  ;;  %4772 = vmatmul.mubr.msk.f32.gmra.mrb[10].mxu1 %vm1061_vm4, %v6286_v39  ;;  %v1937_v14 = vrot.slane %v6286_v39, 1  ;;  %v6301_v48 = vmul.f32 %v970_v40, %v5945_v37  ;;  %v920_v27 = vmul.f32 %v5559_v52, %v6226_v2  ;;  %5570 = vrcp.f32 %v705_v47  ;;  %v6304_v15 = vpop.eup %5560  ;;  %v334_v39 = vld [vmem:[%s5788_s17 + $0x170] sm:$0xff] }
  0x69   : > { %8070 = vst [vmem:[#allocation19_spill] sm:$0xff] %v6292_v18  ;;  %4774 = vmatprep.mubr.msk.f32.mxu1 %vm1061_vm4, %v6292_v18  ;;  %v972_v25 = vsel %vm864_vm9, %v5557_v0, %v918_v7  ;;  %v1941_v1 = vrot.slane %v6292_v18, 1  ;;  %5572 = vpow2.f32 %v634_v22  ;;  %v707_v35 = vadd.f32 1.0, %v6304_v15 }
  0x6a   : > { %8071 = vst [vmem:[#allocation20_spill] sm:$0xff] %v6301_v48  ;;  %v6312_v55 = vsel %vm1905_vm8, %v1936_v12, %v1937_v14  ;;  %v1939_v37 = vrot.slane %v6301_v48, 1  ;;  %v6316_v2 = vmul.f32 %v972_v25, %v6102_v21  ;;  %v974_v60 = vsel %vm866_vm10, %v5559_v52, %v920_v27  ;;  %v327_v12 = vld [vmem:[%s5788_s17 + $0x138] sm:$0xff]  ;;  %v328_v27 = vld [vmem:[%s5788_s17 + $0x140] sm:$0xff]  ;;  %v330_v48 = vld [vmem:[%s5788_s17 + $0x150] sm:$0xff] }
  0x6b   : > { %8072 = vst [vmem:[#allocation21_spill] sm:$0xff] %v6312_v55  ;;  %4971 = vmatprep.mubr.msk.f32.mxu0 %vm1061_vm4, %v6312_v55  ;;  %v6324_v8 = vmul.f32 %v974_v60, %v6109_v61  ;;  %5574 = vpow2.f32 %v638_v23  ;;  %v498_v24 = vand.u32 2147483647, %v6275_v28  ;;  %v6343_v61 = vadd.f32 %v5793_v5, %v385_v9 }
  0x6c   : > { %8073 = vst [vmem:[#allocation22_spill] sm:$0xff] %v6316_v2  ;;  %v6329_v16 = vsel %vm1905_vm8, %v1937_v14, %v1939_v37  ;;  %4775 = vmatmul.mubr.msk.f32.gmra.mrb[12].mxu1 %vm1061_vm4, %v6316_v2  ;;  %v1942_v21 = vrot.slane %v6316_v2, 1  ;;  %v6335_v13 = vpop.eup %5562  ;;  %5576 = vrcp.f32 %v707_v35  ;;  %v386_v22 = vmul.f32 %v5783_v4, %v325_v26 }
  0x6d   : > { %8074 = vst [vmem:[#allocation23_spill] sm:$0xff] %v6324_v8  ;;  %8075 = vst [vmem:[#allocation24_spill] sm:$0xff] %v6329_v16  ;;  %4972 = vmatmul.mubr.msk.f32.gmra.mrb[10].mxu0 %vm1061_vm4, %v6329_v16  ;;  %4777 = vmatprep.mubr.msk.f32.mxu1 %vm1061_vm4, %v6324_v8  ;;  %v5565_v0 = vpop.eup %5564  ;;  %v706_v47 = vadd.f32 1.0, %v6335_v13  ;;  %v552_v52 = vsub.f32 0.0, %v498_v24  ;;  %v388_v40 = vmul.f32 %v5783_v4, %v327_v12  ;;  %v500_v9 = vand.u32 2147483647, %v6343_v61 }
  0x6e   : > { %v6347_v36 = vsel %vm1905_vm8, %v1941_v1, %v1942_v21  ;;  %v919_v7 = vmul.f32 %v5565_v0, %v6266_v50  ;;  %v6357_v14 = vadd.f32 %v5793_v5, %v386_v22  ;;  %vm869_vm13 = vcmp.ge.f32.partialorder %v6132_v6, 0.0 }
  0x6f   : > { %8076 = vst [vmem:[#allocation25_spill] sm:$0xff] %v6347_v36  ;;  %4974 = vmatprep.mubr.msk.f32.mxu0 %vm1061_vm4, %v6347_v36  ;;  %v6360_v25 = vpop.eup %5566  ;;  %5578 = vrcp.f32 %v706_v47  ;;  %v640_v1 = vmul.f32 1.442695, %v552_v52  ;;  %v6364_v23 = vadd.f32 %v5793_v5, %v388_v40  ;;  %v554_v26 = vsub.f32 0.0, %v500_v9 }
  0x70   : > { %v6366_v37 = vpop.eup %5568  ;;  %v973_v50 = vsel %vm865_vm11, %v5565_v0, %v919_v7  ;;  %v708_v60 = vadd.f32 1.0, %v6360_v25  ;;  %v501_v35 = vand.u32 2147483647, %v6357_v14  ;;  %vm868_vm14 = vcmp.ge.f32.partialorder %v6238_v42, 0.0 }
  0x71   : > { %v6373_v24 = vmul.f32 %v973_v50, %v6119_v31  ;;  %v710_v22 = vadd.f32 1.0, %v6366_v37  ;;  %5580 = vpow2.f32 %v640_v1  ;;  %v389_v47 = vmul.f32 %v5783_v4, %v328_v27  ;;  %v331_v1 = vld [vmem:[%s5788_s17 + $0x158] sm:$0xff] }
  0x72   : > { %v5571_v12 = vpop.eup %5570  ;;  %5582 = vrcp.f32 %v708_v60  ;;  %v644_v40 = vmul.f32 1.442695, %v554_v26  ;;  %v555_v7 = vsub.f32 0.0, %v501_v35  ;;  %v503_v50 = vand.u32 2147483647, %v6364_v23 }
  0x73   : > { %8077 = vst [vmem:[#allocation26_spill] sm:$0xff] %v6373_v24  ;;  %v6378_v52 = vpop.eup %5572  ;;  %v921_v0 = vmul.f32 %v5571_v12, %v6280_v11  ;;  %v1944_v9 = vrot.slane %v6373_v24, 1  ;;  %5584 = vrcp.f32 %v710_v22  ;;  %v1946_v27 = vrot.slane %v6324_v8, 1 }
  0x74   : > { %v711_v31 = vadd.f32 1.0, %v6378_v52  ;;  %5586 = vpow2.f32 %v644_v40  ;;  %v646_v11 = vmul.f32 1.442695, %v555_v7  ;;  %v333_v40 = vld [vmem:[%s5788_s17 + $0x168] sm:$0xff]  ;;  %vm870_vm15 = vcmp.ge.f32.partialorder %v6250_v44, 0.0 }
  0x75   : > { %v6385_v10 = vpop.eup %5574  ;;  %v975_v4 = vsel %vm867_vm12, %v5571_v12, %v921_v0  ;;  %v6392_v60 = vsel %vm1905_vm8, %v1942_v21, %v1944_v9  ;;  %v557_v12 = vsub.f32 0.0, %v503_v50  ;;  %v6401_v0 = vadd.f32 %v5793_v5, %v389_v47  ;;  %v6406_v21 = vld [vmem:[%s7980_s1] ss:$0 sm:$0xff] }
  0x76   : > { %8078 = vst [vmem:[#allocation27_spill] sm:$0xff] %v6392_v60  ;;  %v6395_v26 = vmul.f32 %v975_v4, %v6128_v57  ;;  %5588 = vrcp.f32 %v711_v31  ;;  %v713_v35 = vadd.f32 1.0, %v6385_v10  ;;  %v5577_v22 = vpop.eup %5576  ;;  %4975 = vmatmul.mubr.msk.f32.gmra.mrb[12].mxu0 %vm1061_vm4, %v6392_v60  ;;  %v391_v57 = vmul.f32 %v6406_v21, %v330_v48  ;;  %v6420_v48 = vld [vmem:[%s7981_s2] ss:$0 sm:$0xff] }
  0x77   : > { %5590 = vpow2.f32 %v646_v11  ;;  %v923_v9 = vmul.f32 %v5577_v22, %v6304_v15  ;;  %v392_v31 = vmul.f32 %v6406_v21, %v331_v1  ;;  %v650_v5 = vmul.f32 1.442695, %v557_v12 }
  0x78   : > { %8079 = vst [vmem:[#allocation28_spill] sm:$0xff] %v6395_v26  ;;  %4778 = vmatmul.mubr.msk.f32.gmra.mrb[14].mxu1 %vm1061_vm4, %v6395_v26  ;;  %v1947_v7 = vrot.slane %v6395_v26, 1  ;;  %5592 = vrcp.f32 %v713_v35  ;;  %v504_v47 = vand.u32 2147483647, %v6401_v0  ;;  %v6423_v50 = vadd.f32 %v6420_v48, %v391_v57 }
  0x79   : > { %v5579_v4 = vpop.eup %5578  ;;  %v977_v15 = vsel %vm869_vm13, %v5577_v22, %v923_v9  ;;  %v6431_v1 = vadd.f32 %v6420_v48, %v392_v31  ;;  %v394_v35 = vmul.f32 %v6406_v21, %v333_v40  ;;  %5594 = vpow2.f32 %v650_v5 }
  0x7a   : > { %v6426_v11 = vsel %vm1905_vm8, %v1946_v27, %v1947_v7  ;;  %v6437_v12 = vmul.f32 %v977_v15, %v6132_v6  ;;  %v922_v57 = vmul.f32 %v5579_v4, %v6335_v13  ;;  %v558_v24 = vsub.f32 0.0, %v504_v47 }
  0x7b   : > { %8080 = vst [vmem:[#allocation29_spill] sm:$0xff] %v6426_v11  ;;  %4977 = vmatprep.mubr.msk.f32.mxu0 %vm1061_vm4, %v6426_v11  ;;  %v6440_v27 = vpop.eup %5580  ;;  %vm872_vm1 = vcmp.ge.f32.partialorder %v6253_v49, 0.0  ;;  %vm873_vm2 = vcmp.ge.f32.partialorder %v6256_v38, 0.0  ;;  %v506_v22 = vand.u32 2147483647, %v6423_v50  ;;  %v6452_v5 = vadd.f32 %v6420_v48, %v394_v35 }
  0x7c   : > { %v507_v40 = vand.u32 2147483647, %v6431_v1  ;;  %v5583_v9 = vpop.eup %5582  ;;  %4780 = vmatprep.mubr.msk.f32.mxu1 %vm1061_vm4, %v6437_v12  ;;  %v976_v6 = vsel %vm868_vm14, %v5579_v4, %v922_v57  ;;  %v714_v13 = vadd.f32 1.0, %v6440_v27  ;;  %v652_v31 = vmul.f32 1.442695, %v558_v24 }
  0x7d   : > { %v5585_v47 = vpop.eup %5584  ;;  %v6455_v15 = vmul.f32 %v976_v6, %v6238_v42  ;;  %v924_v26 = vmul.f32 %v5583_v9, %v6360_v25  ;;  %vm875_vm3 = vcmp.ge.f32.partialorder %v6270_v53, 0.0  ;;  %v560_v8 = vsub.f32 0.0, %v506_v22 }
  0x7e   : > { %v6459_v2 = vpop.eup %5586  ;;  %v926_v4 = vmul.f32 %v5585_v47, %v6366_v37  ;;  %5596 = vrcp.f32 %v714_v13  ;;  %v561_v57 = vsub.f32 0.0, %v507_v40  ;;  %v509_v24 = vand.u32 2147483647, %v6452_v5 }
  0x7f   : > { %8081 = vst [vmem:[#allocation30_spill] sm:$0xff] %v6455_v15  ;;  %v1949_v18 = vrot.slane %v6455_v15, 1  ;;  %v978_v42 = vsel %vm870_vm15, %v5583_v9, %v924_v26  ;;  %v716_v25 = vadd.f32 1.0, %v6459_v2  ;;  %5598 = vpow2.f32 %v652_v31  ;;  %v336_v31 = vld [vmem:[%s5788_s17 + $0x180] sm:$0xff] }
  0x80   : > { %v5589_v35 = vpop.eup %5588  ;;  %v6470_v6 = vmul.f32 %v978_v42, %v6250_v44  ;;  %v980_v37 = vsel %vm872_vm1, %v5585_v47, %v926_v4  ;;  %v656_v13 = vmul.f32 1.442695, %v560_v8  ;;  %v337_v44 = vld [vmem:[%s5788_s17 + $0x188] sm:$0xff]  ;;  %v395_v47 = vmul.f32 %v6406_v21, %v334_v39  ;;  %v288_v42 = vld [vmem:[%s5788_s17] sm:$0xff] }
  0x81   : > { %v6467_v22 = vpop.eup %5590  ;;  %v927_v40 = vmul.f32 %v5589_v35, %v6378_v52  ;;  %v6477_v3 = vsel %vm1905_vm8, %v1947_v7, %v1949_v18  ;;  %v6480_v26 = vmul.f32 %v980_v37, %v6253_v49  ;;  %5600 = vrcp.f32 %v716_v25 }
  0x82   : > { %v5593_v15 = vpop.eup %5592  ;;  %8082 = vst [vmem:[#allocation31_spill] sm:$0xff] %v6477_v3  ;;  %v717_v9 = vadd.f32 1.0, %v6467_v22  ;;  %4978 = vmatmul.mubr.msk.f32.gmra.mrb[14].mxu0 %vm1061_vm4, %v6477_v3  ;;  %4781 = vmatmul.mubr.msk.f32.gmra.mrb[16].mxu1 %vm1061_vm4, %v6470_v6  ;;  %5602 = vpow2.f32 %v656_v13  ;;  %v658_v49 = vmul.f32 1.442695, %v561_v57  ;;  %v563_v7 = vsub.f32 0.0, %v509_v24 }
  0x83   : > { %v981_v8 = vsel %vm873_vm2, %v5589_v35, %v927_v40  ;;  %v929_v18 = vmul.f32 %v5593_v15, %v6385_v10  ;;  %5006 = vmatprep.mubr.msk.f32.mxu0 %vm1061_vm4, %v6050_v51  ;;  %4783 = vmatprep.mubr.msk.f32.mxu1 %vm1061_vm4, %v6480_v26  ;;  %v6500_v4 = vpop.eup %5594  ;;  %v397_v57 = vmul.f32 %v6406_v21, %v336_v31  ;;  %vm876_vm5 = vcmp.ge.f32.partialorder %v6275_v28, 0.0  ;;  %v8101_v51 = vld [vmem:[#allocation19_spill] sm:$0xff] }
  0x84   : > { %v6497_v52 = vmul.f32 %v981_v8, %v6256_v38  ;;  %5604 = vrcp.f32 %v717_v9  ;;  %v398_v35 = vmul.f32 %v6406_v21, %v337_v44  ;;  %v719_v38 = vadd.f32 1.0, %v6500_v4  ;;  %v317_v9 = vld [vmem:[%s5788_s17 + $0xe8] sm:$0x3] }
  0x85   : > { %v983_v10 = vsel %vm875_vm3, %v5593_v15, %v929_v18  ;;  %5606 = vpow2.f32 %v658_v49  ;;  %v662_v24 = vmul.f32 1.442695, %v563_v7  ;;  %v6512_v39 = vadd.f32 %v6420_v48, %v395_v47  ;;  %v6517_v15 = vld [vmem:[%s7982_s3 + $0x14] sm:$0xf]  ;;  %v289_v8 = vld [vmem:[%s5788_s17 + $0x8] sm:$0xff] }
  0x86   : > { %v6508_v25 = vmul.f32 %v983_v10, %v6270_v53  ;;  %5007 = vmatmul.mubr.msk.f32.vlgmr.msra.gmra.mrb[0].mxu0 %vm1061_vm4, %v6068_v30  ;;  %4784 = vmatmul.mubr.msk.f32.gmra.mrb[18].mxu1 %vm1061_vm4, %v6497_v52  ;;  %v6524_v53 = vadd.f32 %v6420_v48, %v397_v57  ;;  %v6527_v37 = vadd.f32 %v6420_v48, %v398_v35  ;;  %5608 = vrcp.f32 %v719_v38 }
  0x87   : > { %5055 = vmatpush3.msk.msra.mxu0 %vm1158_vm0, %v6045_v45  ;;  %5009 = vmatprep.mubr.msk.f32.mxu0 %vm1061_vm4, %v6082_v19  ;;  %v510_v40 = vand.u32 2147483647, %v6512_v39  ;;  %v349_v13 = vmul.f32 %v6406_v21, %v288_v42  ;;  %5610 = vpow2.f32 %v662_v24  ;;  %vm878_vm6 = vcmp.ge.f32.partialorder %v6343_v61, 0.0 }
  0x88   : > { %v5597_v31 = vpop.eup %5596  ;;  %4786 = vmatprep.mubr.msk.f32.mxu1 %vm1061_vm4, %v6508_v25  ;;  %v512_v44 = vand.u32 2147483647, %v6524_v53  ;;  %v513_v45 = vand.u32 2147483647, %v6527_v37  ;;  %5104 = vmatprep.subr.msk.mxu0 %vm1158_vm0, %v6517_v15  ;;  %vm879_vm7 = vcmp.ge.f32.partialorder %v6357_v14, 0.0  ;;  %v378_v24 = vmul.f32 %v6406_v21, %v317_v9 }
  0x89   : > { %v6544_v18 = vpop.eup %5598  ;;  %v930_v49 = vmul.f32 %v5597_v31, %v6440_v27  ;;  %v564_v7 = vsub.f32 0.0, %v510_v40  ;;  %v6553_v35 = vadd.f32 %v6420_v48, %v349_v13  ;;  %v350_v40 = vmul.f32 %v6406_v21, %v289_v8 }
  0x8a   : > { %5010 = vmatmul.mubr.msk.f32.gmra.mrb[2].mxu0 %vm1061_vm4, %v6173_v58  ;;  %v720_v47 = vadd.f32 1.0, %v6544_v18  ;;  %v566_v10 = vsub.f32 0.0, %v512_v44  ;;  %v567_v57 = vsub.f32 0.0, %v513_v45  ;;  %vm881_vm9 = vcmp.ge.f32.partialorder %v6364_v23, 0.0 }
  0x8b   : > { %v5601_v42 = vpop.eup %5600  ;;  %v984_v38 = vsel %vm876_vm5, %v5597_v31, %v930_v49  ;;  %5012 = vmatprep.mubr.msk.f32.mxu0 %vm1061_vm4, %v6187_v17  ;;  %v664_v27 = vmul.f32 1.442695, %v564_v7  ;;  %v464_v7 = vand.u32 2147483647, %v6553_v35  ;;  %vm882_vm10 = vcmp.ge.f32.partialorder %v6401_v0, 0.0 }
  0x8c   : > { %v6561_v58 = vpop.eup %5602  ;;  %v6564_v44 = vmul.f32 %v984_v38, %v6275_v28  ;;  %v932_v13 = vmul.f32 %v5601_v42, %v6459_v2  ;;  %5612 = vrcp.f32 %v720_v47  ;;  %v668_v45 = vmul.f32 1.442695, %v566_v10 }
  0x8d   : > { %v722_v31 = vadd.f32 1.0, %v6561_v58  ;;  %5614 = vpow2.f32 %v664_v27  ;;  %v670_v49 = vmul.f32 1.442695, %v567_v57  ;;  %v518_v47 = vsub.f32 0.0, %v464_v7  ;;  %v323_v7 = vld [vmem:[%s5788_s17 + $0x118] sm:$0x3] }
  0x8e   : > { %v5605_v19 = vpop.eup %5604  ;;  %4787 = vmatmul.mubr.msk.f32.gmra.mrb[20].mxu1 %vm1061_vm4, %v6564_v44  ;;  %v986_v28 = vsel %vm878_vm6, %v5601_v42, %v932_v13  ;;  %5013 = vmatmul.mubr.msk.f32.gmra.mrb[4].mxu0 %vm1061_vm4, %v6206_v33  ;;  %5616 = vpow2.f32 %v668_v45  ;;  %v6587_v57 = vadd.f32 %v6420_v48, %v378_v24  ;;  %vm884_vm11 = vcmp.ge.f32.partialorder %v6423_v50, 0.0 }
  0x8f   : > { %v6569_v17 = vpop.eup %5606  ;;  %v933_v2 = vmul.f32 %v5605_v19, %v6467_v22  ;;  %v6579_v9 = vmul.f32 %v986_v28, %v6343_v61  ;;  %5015 = vmatprep.mubr.msk.f32.mxu0 %vm1061_vm4, %v6212_v63  ;;  %5618 = vrcp.f32 %v722_v31  ;;  %v6590_v22 = vadd.f32 %v6420_v48, %v350_v40 }
  0x90   : > { %v723_v8 = vadd.f32 1.0, %v6569_v17  ;;  %5620 = vpow2.f32 %v670_v49  ;;  %v5609_v42 = vpop.eup %5608  ;;  %v572_v38 = vmul.f32 1.442695, %v518_v47  ;;  %v493_v40 = vand.u32 2147483647, %v6587_v57 }
  0x91   : > { %v987_v10 = vsel %vm879_vm7, %v5605_v19, %v933_v2  ;;  %4789 = vmatprep.mubr.msk.f32.mxu1 %vm1061_vm4, %v6579_v9  ;;  %v320_v19 = vld [vmem:[%s5788_s17 + $0x100] sm:$0x3]  ;;  %v6599_v27 = vpop.eup %5610  ;;  %v935_v24 = vmul.f32 %v5609_v42, %v6500_v4  ;;  %v465_v13 = vand.u32 2147483647, %v6590_v22  ;;  %vm885_vm12 = vcmp.ge.f32.partialorder %v6431_v1, 0.0 }
  0x92   : > { %v6595_v61 = vmul.f32 %v987_v10, %v6357_v14  ;;  %5622 = vrcp.f32 %v723_v8  ;;  %5016 = vmatmul.mubr.msk.f32.gmra.mrb[6].mxu0 %vm1061_vm4, %v6231_v62  ;;  %v725_v14 = vadd.f32 1.0, %v6599_v27  ;;  %v547_v31 = vsub.f32 0.0, %v493_v40 }
  0x93   : > { %5018 = vmatprep.mubr.msk.f32.mxu0 %vm1061_vm4, %v6312_v55  ;;  %5624 = vpow2.f32 %v572_v38  ;;  %v989_v45 = vsel %vm881_vm9, %v5609_v42, %v935_v24  ;;  %v519_v49 = vsub.f32 0.0, %v465_v13  ;;  %v381_v4 = vmul.f32 %v6406_v21, %v320_v19 }
  0x94   : > { %4790 = vmatmul.mubr.msk.f32.gmra.mrb[22].mxu1 %vm1061_vm4, %v6595_v61  ;;  %v6614_v28 = vmul.f32 %v989_v45, %v6364_v23  ;;  %5626 = vrcp.f32 %v725_v14  ;;  %v630_v8 = vmul.f32 1.442695, %v547_v31  ;;  %v1951_v38 = vrot.slane %v6437_v12, 1 }
  0x95   : > { %v574_v47 = vmul.f32 1.442695, %v519_v49  ;;  %v6620_v10 = vadd.f32 %v6420_v48, %v381_v4  ;;  %v384_v24 = vmul.f32 %v6406_v21, %v323_v7  ;;  %v326_v49 = vld [vmem:[%s5788_s17 + $0x130] sm:$0x3]  ;;  %vm887_vm13 = vcmp.ge.f32.partialorder %v6452_v5, 0.0 }
  0x96   : > { %v5613_v2 = vpop.eup %5612  ;;  %5019 = vmatmul.mubr.msk.f32.gmra.mrb[8].mxu0 %vm1061_vm4, %v6329_v16  ;;  %4792 = vmatprep.mubr.msk.f32.mxu1 %vm1061_vm4, %v6614_v28  ;;  %5628 = vpow2.f32 %v630_v8  ;;  %vm888_vm14 = vcmp.ge.f32.partialorder %v6512_v39, 0.0  ;;  %vm890_vm15 = vcmp.ge.f32.partialorder %v6524_v53, 0.0  ;;  %vm891_vm1 = vcmp.ge.f32.partialorder %v6527_v37, 0.0 }
  0x97   : > { %v6622_v42 = vpop.eup %5614  ;;  %v936_v23 = vmul.f32 %v5613_v2, %v6544_v18  ;;  %5021 = vmatprep.mubr.msk.f32.mxu0 %vm1061_vm4, %v6347_v36  ;;  %v496_v14 = vand.u32 2147483647, %v6620_v10  ;;  %5630 = vpow2.f32 %v574_v47  ;;  %v8083_v47 = vrot.slane %v6470_v6, 1 }
  0x98   : > { %v6632_v40 = vpop.eup %5616  ;;  %v726_v13 = vadd.f32 1.0, %v6622_v42  ;;  %vm842_vm2 = vcmp.ge.f32.partialorder %v6553_v35, 0.0  ;;  %vm871_vm3 = vcmp.ge.f32.partialorder %v6587_v57, 0.0  ;;  %vm843_vm5 = vcmp.ge.f32.partialorder %v6590_v22, 0.0 }
  0x99   : > { %v5619_v45 = vpop.eup %5618  ;;  %v990_v18 = vsel %vm882_vm10, %v5613_v2, %v936_v23  ;;  %v728_v31 = vadd.f32 1.0, %v6632_v40  ;;  %v550_v8 = vsub.f32 0.0, %v496_v14  ;;  %v6656_v23 = vsel %vm1905_vm8, %v1951_v38, %v8083_v47 }
  0x9a   : > { %v6642_v4 = vpop.eup %5620  ;;  %v6645_v7 = vmul.f32 %v990_v18, %v6401_v0  ;;  %v938_v19 = vmul.f32 %v5619_v45, %v6561_v58  ;;  %5022 = vmatmul.mubr.msk.f32.gmra.mrb[10].mxu0 %vm1061_vm4, %v6392_v60  ;;  %5632 = vrcp.f32 %v726_v13  ;;  %8084 = vst [vmem:[#allocation32_spill] sm:$0xff] %v6656_v23  ;;  %v6659_v58 = vadd.f32 %v6420_v48, %v384_v24  ;;  %v338_v60 = vld [vmem:[%s5788_s17 + $0x190] sm:$0x3] }
  0x9b   : > { %5024 = vmatprep.mubr.msk.f32.mxu0 %vm1061_vm4, %v6426_v11  ;;  %5634 = vrcp.f32 %v728_v31  ;;  %v729_v2 = vadd.f32 1.0, %v6642_v4  ;;  %v636_v14 = vmul.f32 1.442695, %v550_v8  ;;  %v387_v18 = vmul.f32 %v6406_v21, %v326_v49  ;;  %v332_v8 = vld [vmem:[%s5788_s17 + $0x160] sm:$0x3] }
  0x9c   : > { %v5623_v36 = vpop.eup %5622  ;;  %4793 = vmatmul.mubr.msk.f32.gmra.mrb[24].mxu1 %vm1061_vm4, %v6645_v7  ;;  %v992_v0 = vsel %vm884_vm11, %v5619_v45, %v938_v19  ;;  %v499_v24 = vand.u32 2147483647, %v6659_v58  ;;  %v329_v45 = vld [vmem:[%s5788_s17 + $0x148] sm:$0x3]  ;;  %vm874_vm6 = vcmp.ge.f32.partialorder %v6620_v10, 0.0  ;;  %vm877_vm7 = vcmp.ge.f32.partialorder %v6659_v58, 0.0 }
  0x9d   : > { %v939_v13 = vmul.f32 %v5623_v36, %v6569_v17  ;;  %v6667_v31 = vpop.eup %5624  ;;  %v6670_v38 = vmul.f32 %v992_v0, %v6423_v50  ;;  %5636 = vrcp.f32 %v729_v2  ;;  %v6679_v19 = vadd.f32 %v6420_v48, %v387_v18 }
  0x9e   : > { %5025 = vmatmul.mubr.msk.f32.gmra.mrb[12].mxu0 %vm1061_vm4, %v6477_v3  ;;  %v680_v17 = vadd.f32 1.0, %v6667_v31  ;;  %5638 = vpow2.f32 %v636_v14  ;;  %v5627_v49 = vpop.eup %5626  ;;  %v390_v14 = vmul.f32 %v6406_v21, %v329_v45  ;;  %v393_v3 = vmul.f32 %v6406_v21, %v332_v8 }
  0x9f   : > { %v993_v47 = vsel %vm885_vm12, %v5623_v36, %v939_v13  ;;  %4795 = vmatprep.mubr.msk.f32.mxu1 %vm1061_vm4, %v6670_v38  ;;  %5027 = vmatprep.mubr.msk.f32.mxu0 %vm1061_vm4, %v6656_v23  ;;  %v553_v36 = vsub.f32 0.0, %v499_v24  ;;  %v941_v2 = vmul.f32 %v5627_v49, %v6599_v27  ;;  %v502_v0 = vand.u32 2147483647, %v6679_v19 }
  0xa0   : > { %v6685_v50 = vmul.f32 %v993_v47, %v6431_v1  ;;  %5640 = vrcp.f32 %v680_v17  ;;  %v6696_v1 = vpop.eup %5628  ;;  %v6706_v17 = vadd.f32 %v6420_v48, %v390_v14  ;;  %v6711_v8 = vadd.f32 %v6420_v48, %v393_v3 }
  0xa1   : > { %v642_v13 = vmul.f32 1.442695, %v553_v36  ;;  %v995_v18 = vsel %vm887_vm13, %v5627_v49, %v941_v2  ;;  %v556_v47 = vsub.f32 0.0, %v502_v0  ;;  %v6699_v23 = vpop.eup %5630  ;;  %v709_v27 = vadd.f32 1.0, %v6696_v1 }
  0xa2   : > { %4796 = vmatmul.mubr.msk.f32.gmra.mrb[26].mxu1 %vm1061_vm4, %v6685_v50  ;;  %v6702_v24 = vmul.f32 %v995_v18, %v6452_v5  ;;  %v681_v45 = vadd.f32 1.0, %v6699_v23  ;;  %v505_v0 = vand.u32 2147483647, %v6706_v17  ;;  %v508_v14 = vand.u32 2147483647, %v6711_v8 }
  0xa3   : > { %5642 = vpow2.f32 %v642_v13  ;;  %v648_v49 = vmul.f32 1.442695, %v556_v47  ;;  %v335_v18 = vld [vmem:[%s5788_s17 + $0x178] sm:$0x3]  ;;  %vm880_vm9 = vcmp.ge.f32.partialorder %v6679_v19, 0.0  ;;  %vm883_vm10 = vcmp.ge.f32.partialorder %v6706_v17, 0.0 }
  0xa4   : > { %v5633_v36 = vpop.eup %5632  ;;  %4798 = vmatprep.mubr.msk.f32.mxu1 %vm1061_vm4, %v6702_v24  ;;  %5644 = vrcp.f32 %v709_v27  ;;  %v559_v11 = vsub.f32 0.0, %v505_v0  ;;  %vm886_vm11 = vcmp.ge.f32.partialorder %v6711_v8, 0.0 }
  0xa5   : > { %v5635_v2 = vpop.eup %5634  ;;  %v942_v5 = vmul.f32 %v5633_v36, %v6622_v42  ;;  %5646 = vrcp.f32 %v681_v45 }
  0xa6   : > { %v944_v13 = vmul.f32 %v5635_v2, %v6632_v40  ;;  %5648 = vpow2.f32 %v648_v49  ;;  %v562_v40 = vsub.f32 0.0, %v508_v14  ;;  %v396_v49 = vmul.f32 %v6406_v21, %v335_v18  ;;  %v340_v14 = vld [vmem:[%s5788_s17 + $0x1a0] sm:$0xff] }
  0xa7   : > { %v5637_v3 = vpop.eup %5636  ;;  %v996_v47 = vsel %vm888_vm14, %v5633_v36, %v942_v5  ;;  %v654_v36 = vmul.f32 1.442695, %v559_v11 }
  0xa8   : > { %v6723_v16 = vpop.eup %5638  ;;  %v6726_v42 = vmul.f32 %v996_v47, %v6512_v39  ;;  %v998_v27 = vsel %vm890_vm15, %v5635_v2, %v944_v13  ;;  %v945_v55 = vmul.f32 %v5637_v3, %v6642_v4  ;;  %v660_v2 = vmul.f32 1.442695, %v562_v40  ;;  %v339_v13 = vld [vmem:[%s5788_s17 + $0x198] sm:$0xff] }
  0xa9   : > { %v6730_v45 = vmul.f32 %v998_v27, %v6524_v53  ;;  %v712_v62 = vadd.f32 1.0, %v6723_v16  ;;  %v399_v4 = vmul.f32 %v6406_v21, %v338_v60  ;;  %v6745_v0 = vadd.f32 %v6420_v48, %v396_v49 }
  0xaa   : > { %v5641_v5 = vpop.eup %5640  ;;  %4799 = vmatmul.mubr.msk.f32.gmra.mrb[28].mxu1 %vm1061_vm4, %v6726_v42  ;;  %v999_v39 = vsel %vm891_vm1, %v5637_v3, %v945_v55  ;;  %v1956_v3 = vrot.slane %v6480_v26, 1  ;;  %v401_v49 = vmul.f32 %v6406_v21, %v340_v14 }
  0xab   : > { %4801 = vmatprep.mubr.msk.f32.mxu1 %vm1061_vm4, %v6730_v45  ;;  %v6741_v53 = vmul.f32 %v999_v39, %v6527_v37  ;;  %v896_v11 = vmul.f32 %v5641_v5, %v6667_v31  ;;  %5650 = vrcp.f32 %v712_v62  ;;  %v6748_v55 = vadd.f32 %v6420_v48, %v399_v4 }
  0xac   : > { %5652 = vpow2.f32 %v654_v36  ;;  %v511_v37 = vand.u32 2147483647, %v6745_v0  ;;  %v400_v36 = vmul.f32 %v6406_v21, %v339_v13  ;;  %v6779_v14 = vadd.f32 %v6420_v48, %v401_v49 }
  0xad   : > { %v6752_v60 = vpop.eup %5642  ;;  %v950_v18 = vsel %vm842_vm2, %v5641_v5, %v896_v11  ;;  %5654 = vpow2.f32 %v660_v2  ;;  %v514_v47 = vand.u32 2147483647, %v6748_v55  ;;  %v341_v5 = vld [vmem:[%s5788_s17 + $0x1a8] sm:$0x3]  ;;  %v8023_v2 = vrot.slane %v6497_v52, 1 }
  0xae   : > { %4802 = vmatmul.mubr.msk.f32.gmra.mrb[30].mxu1 %vm1061_vm4, %v6741_v53  ;;  %v6759_v62 = vmul.f32 %v950_v18, %v6553_v35  ;;  %v715_v31 = vadd.f32 1.0, %v6752_v60  ;;  %v5645_v27 = vpop.eup %5644  ;;  %v565_v40 = vsub.f32 0.0, %v511_v37  ;;  %v6776_v13 = vadd.f32 %v6420_v48, %v400_v36 }
  0xaf   : > { %v5647_v39 = vpop.eup %5646  ;;  %v925_v35 = vmul.f32 %v5645_v27, %v6696_v1  ;;  %v568_v4 = vsub.f32 0.0, %v514_v47  ;;  %v516_v49 = vand.u32 2147483647, %v6779_v14  ;;  %vm889_vm12 = vcmp.ge.f32.partialorder %v6745_v0, 0.0 }
  0xb0   : > { %4806 = vmatprep.mubr.msk.f32.mxu1 %vm1061_vm4, %v6759_v62  ;;  %5656 = vrcp.f32 %v715_v31  ;;  %v6772_v11 = vpop.eup %5648  ;;  %v897_v18 = vmul.f32 %v5647_v39, %v6699_v23  ;;  %v666_v37 = vmul.f32 1.442695, %v565_v40  ;;  %v402_v31 = vmul.f32 %v6406_v21, %v341_v5 }
  0xb1   : > { %v979_v63 = vsel %vm871_vm3, %v5645_v27, %v925_v35  ;;  %v718_v1 = vadd.f32 1.0, %v6772_v11  ;;  %v672_v33 = vmul.f32 1.442695, %v568_v4  ;;  %v515_v40 = vand.u32 2147483647, %v6776_v13 }
  0xb2   : > { %v6786_v47 = vmul.f32 %v979_v63, %v6587_v57  ;;  %v951_v23 = vsel %vm843_vm5, %v5647_v39, %v897_v18  ;;  %5658 = vpow2.f32 %v666_v37  ;;  %v6797_v27 = vsel %vm1905_vm8, %v1956_v3, %v8023_v2 }
  0xb3   : > { %v6792_v36 = vmul.f32 %v951_v23, %v6590_v22  ;;  %8085 = vst [vmem:[#allocation33_spill] sm:$0xff] %v6797_v27  ;;  %5660 = vrcp.f32 %v718_v1  ;;  %v569_v57 = vsub.f32 0.0, %v515_v40  ;;  %v6805_v22 = vld [vmem:[%s7982_s3 + $0x4] sm:$0xf]  ;;  %v1961_v35 = vrot.slane %v6508_v25, 1 }
  0xb4   : > { %v1954_v63 = vrot.slane %v6786_v47, 1  ;;  %5662 = vpow2.f32 %v672_v33  ;;  %v570_v4 = vsub.f32 0.0, %v516_v49  ;;  %v6814_v18 = vadd.f32 %v6420_v48, %v402_v31  ;;  %v290_v49 = vld [vmem:[%s5788_s17 + $0x10] sm:$0x3] }
  0xb5   : > { %v5651_v5 = vpop.eup %5650  ;;  %4807 = vmatmul.mubr.msk.f32.vlgmr.msra.gmra.mrb[0].mxu1 %vm1061_vm4, %v6792_v36  ;;  %v8086_v37 = vrot.slane %v6470_v6, 1  ;;  %v1962_v23 = vrot.slane %v6564_v44, 1  ;;  %v674_v40 = vmul.f32 1.442695, %v569_v57  ;;  %vm892_vm13 = vcmp.ge.f32.partialorder %v6748_v55, 0.0 }
  0xb6   : > { %v6807_v39 = vpop.eup %5652  ;;  %v928_v3 = vmul.f32 %v5651_v5, %v6723_v16  ;;  %4809 = vmatprep.mubr.msk.f32.mxu1 %vm1061_vm4, %v5961_v56  ;;  %v5690_v16 = vld [vmem:[%s7982_s3 + $0x18] sm:$0xf]  ;;  %v676_v2 = vmul.f32 1.442695, %v570_v4  ;;  %v517_v30 = vand.u32 2147483647, %v6814_v18 }
  0xb7   : > { %v6816_v33 = vpop.eup %5654  ;;  %v6821_v1 = vsel %vm1905_vm8, %v8086_v37, %v1954_v63  ;;  %4855 = vmatpush3.msk.msra.mxu1 %vm1158_vm0, %v5690_v16  ;;  %v721_v31 = vadd.f32 1.0, %v6807_v39  ;;  %vm893_vm14 = vcmp.ge.f32.partialorder %v6776_v13, 0.0  ;;  %vm894_vm15 = vcmp.ge.f32.partialorder %v6779_v14, 0.0 }
  0xb8   : > { %8087 = vst [vmem:[#allocation34_spill] sm:$0xff] %v6821_v1  ;;  %5028 = vmatmul.mubr.msk.f32.gmra.mrb[14].mxu0 %vm1061_vm4, %v6821_v1  ;;  %v982_v63 = vsel %vm874_vm6, %v5651_v5, %v928_v3  ;;  %v724_v37 = vadd.f32 1.0, %v6816_v33  ;;  %4904 = vmatprep.subr.msk.mxu1 %vm1158_vm0, %v6805_v22  ;;  %v571_v5 = vsub.f32 0.0, %v517_v30  ;;  %v351_v3 = vmul.f32 %v6406_v21, %v290_v49 }
  0xb9   : > { %5030 = vmatprep.mubr.msk.f32.mxu0 %vm1061_vm4, %v6797_v27  ;;  %v6843_v57 = vmul.f32 %v982_v63, %v6620_v10  ;;  %5664 = vrcp.f32 %v721_v31  ;;  %4810 = vmatmul.mubr.msk.f32.gmra.mrb[2].mxu1 %vm1061_vm4, %v5968_v59  ;;  %v1966_v10 = vrot.slane %v6579_v9, 1  ;;  %v6855_v31 = vsel %vm1905_vm8, %v1961_v35, %v1962_v23 }
  0xba   : > { %v5657_v16 = vpop.eup %5656  ;;  %5666 = vrcp.f32 %v724_v37  ;;  %4812 = vmatprep.mubr.msk.f32.mxu1 %vm1061_vm4, %v5977_v34  ;;  %8088 = vst [vmem:[#allocation35_spill] sm:$0xff] %v6855_v31  ;;  %v678_v63 = vmul.f32 1.442695, %v571_v5  ;;  %v6858_v37 = vadd.f32 %v6420_v48, %v351_v3  ;;  %v8089_v21 = vrot.slane %v6497_v52, 1 }
  0xbb   : > { %v1959_v4 = vrot.slane %v6843_v57, 1  ;;  %v931_v27 = vmul.f32 %v5657_v16, %v6752_v60  ;;  %5668 = vpow2.f32 %v674_v40  ;;  %v1967_v60 = vrot.slane %v6595_v61, 1 }
  0xbc   : > { %5670 = vpow2.f32 %v676_v2  ;;  %v6860_v30 = vpop.eup %5658  ;;  %v466_v35 = vand.u32 2147483647, %v6858_v37  ;;  %vm895_vm1 = vcmp.ge.f32.partialorder %v6814_v18, 0.0  ;;  %vm2856_vm2 = vcmask 1045504  }
  0xbd   : > { %v6865_v49 = vsel %vm1905_vm8, %v8089_v21, %v1959_v4  ;;  %v985_v1 = vsel %vm877_vm7, %v5657_v16, %v931_v27  ;;  %v5661_v40 = vpop.eup %5660  ;;  %4813 = vmatmul.mubr.msk.f32.gmra.mrb[4].mxu1 %vm1061_vm4, %v6001_v43  ;;  %v727_v48 = vadd.f32 1.0, %v6860_v30  ;;  %5672 = vpow2.f32 %v678_v63 }
  0xbe   : > { %8090 = vst [vmem:[#allocation36_spill] sm:$0xff] %v6865_v49  ;;  %5031 = vmatmul.mubr.msk.f32.gmra.mrb[16].mxu0 %vm1061_vm4, %v6865_v49  ;;  %v6872_v2 = vmul.f32 %v985_v1, %v6659_v58  ;;  %v6878_v27 = vpop.eup %5662  ;;  %4815 = vmatprep.mubr.msk.f32.mxu1 %vm1061_vm4, %v6014_v32  ;;  %v934_v16 = vmul.f32 %v5661_v40, %v6772_v11  ;;  %v520_v5 = vsub.f32 0.0, %v466_v35  ;;  %v1971_v63 = vrot.slane %v6614_v28, 1 }
  0xbf   : > { %5033 = vmatprep.mubr.msk.f32.mxu0 %vm1061_vm4, %v6855_v31  ;;  %5674 = vrcp.f32 %v727_v48  ;;  %v730_v1 = vadd.f32 1.0, %v6878_v27  ;;  %v6888_v3 = vsel %vm1905_vm8, %v1966_v10, %v1967_v60  ;;  %v1972_v21 = vrot.slane %v6645_v7, 1 }
  0xc0   : > { %v1964_v58 = vrot.slane %v6872_v2, 1  ;;  %8091 = vst [vmem:[#allocation37_spill] sm:$0xff] %v6888_v3  ;;  %v988_v4 = vsel %vm880_vm9, %v5661_v40, %v934_v16  ;;  %v576_v48 = vmul.f32 1.442695, %v520_v5  ;;  %vm844_vm3 = vcmp.ge.f32.partialorder %v6858_v37, 0.0 }
  0xc1   : > { %v6898_v11 = vmul.f32 %v988_v4, %v6679_v19  ;;  %4816 = vmatmul.mubr.msk.f32.gmra.mrb[6].mxu1 %vm1061_vm4, %v6038_v41  ;;  %5676 = vrcp.f32 %v730_v1  ;;  %v6913_v16 = vsel %vm1905_vm8, %v1971_v63, %v1972_v21  ;;  %v1977_v1 = vrot.slane %v6685_v50, 1 }
  0xc2   : > { %v6895_v31 = vsel %vm1905_vm8, %v1962_v23, %v1964_v58  ;;  %4818 = vmatprep.mubr.msk.f32.mxu1 %vm1061_vm4, %v6092_v20  ;;  %5678 = vpow2.f32 %v576_v48  ;;  %8093 = vst [vmem:[#allocation39_spill] sm:$0xff] %v6913_v16  ;;  %v1976_v58 = vrot.slane %v6670_v38, 1 }
  0xc3   : > { %8092 = vst [vmem:[#allocation38_spill] sm:$0xff] %v6895_v31  ;;  %v5665_v10 = vpop.eup %5664  ;;  %5034 = vmatmul.mubr.msk.f32.gmra.mrb[18].mxu0 %vm1061_vm4, %v6895_v31  ;;  %v1969_v19 = vrot.slane %v6898_v11, 1 }
  0xc4   : > { %v5667_v40 = vpop.eup %5666  ;;  %5036 = vmatprep.mubr.msk.f32.mxu0 %vm1061_vm4, %v6888_v3  ;;  %v937_v23 = vmul.f32 %v5665_v10, %v6807_v39 }
  0xc5   : > { %v5669_v35 = vpop.eup %5668  ;;  %v940_v5 = vmul.f32 %v5667_v40, %v6816_v33  ;;  %v6919_v3 = vsel %vm1905_vm8, %v1967_v60, %v1969_v19  ;;  %4819 = vmatmul.mubr.msk.f32.gmra.mrb[8].mxu1 %vm1061_vm4, %v6145_v29  ;;  %v6937_v19 = vsel %vm1905_vm8, %v1976_v58, %v1977_v1 }
  0xc6   : > { %v5671_v4 = vpop.eup %5670  ;;  %8094 = vst [vmem:[#allocation40_spill] sm:$0xff] %v6919_v3  ;;  %v991_v31 = vsel %vm883_vm10, %v5665_v10, %v937_v23  ;;  %v731_v39 = vadd.f32 1.0, %v5669_v35  ;;  %4821 = vmatprep.mubr.msk.f32.mxu1 %vm1061_vm4, %v6152_v54  ;;  %8095 = vst [vmem:[#allocation41_spill] sm:$0xff] %v6937_v19 }
  0xc7   : > { %5037 = vmatmul.mubr.msk.f32.gmra.mrb[20].mxu0 %vm1061_vm4, %v6919_v3  ;;  %v6926_v63 = vmul.f32 %v991_v31, %v6706_v17  ;;  %v994_v48 = vsel %vm886_vm11, %v5667_v40, %v940_v5  ;;  %v732_v33 = vadd.f32 1.0, %v5671_v4  ;;  %v5673_v49 = vpop.eup %5672  ;;  %v1981_v40 = vrot.slane %v6702_v24, 1 }
  0xc8   : > { %5039 = vmatprep.mubr.msk.f32.mxu0 %vm1061_vm4, %v6913_v16  ;;  %v6933_v60 = vmul.f32 %v994_v48, %v6711_v8  ;;  %5680 = vrcp.f32 %v731_v39  ;;  %v733_v17 = vadd.f32 1.0, %v5673_v49  ;;  %v1982_v5 = vrot.slane %v6726_v42, 1  ;;  %v8097_v39 = vld [vmem:[#allocation13_spill] sm:$0xff] }
  0xc9   : > { %v1974_v10 = vrot.slane %v6926_v63, 1  ;;  %5682 = vrcp.f32 %v732_v33  ;;  %v5675_v31 = vpop.eup %5674  ;;  %4822 = vmatmul.mubr.msk.f32.gmra.mrb[10].mxu1 %vm1061_vm4, %v6178_v46 }
  0xca   : > { %v1979_v23 = vrot.slane %v6933_v60, 1  ;;  %4824 = vmatprep.mubr.msk.f32.mxu1 %vm1061_vm4, %v8097_v39  ;;  %v943_v58 = vmul.f32 %v5675_v31, %v6860_v30  ;;  %5684 = vrcp.f32 %v733_v17  ;;  %v6961_v3 = vsel %vm1905_vm8, %v1981_v40, %v1982_v5  ;;  %v8100_v17 = vld [vmem:[#allocation18_spill] sm:$0xff] }
  0xcb   : > { %v6946_v8 = vsel %vm1905_vm8, %v1972_v21, %v1974_v10  ;;  %v5677_v48 = vpop.eup %5676  ;;  %8099 = vst [vmem:[#allocation43_spill] sm:$0xff] %v6961_v3 }
  0xcc   : > { %8096 = vst [vmem:[#allocation42_spill] sm:$0xff] %v6946_v8  ;;  %5040 = vmatmul.mubr.msk.f32.gmra.mrb[22].mxu0 %vm1061_vm4, %v6946_v8  ;;  %v6957_v33 = vsel %vm1905_vm8, %v1977_v1, %v1979_v23  ;;  %v997_v21 = vsel %vm889_vm12, %v5675_v31, %v943_v58  ;;  %v946_v10 = vmul.f32 %v5677_v48, %v6878_v27  ;;  %v5679_v16 = vpop.eup %5678  ;;  %v2313_v8 = vrot.slane %v6730_v45, 1 }
  0xcd   : > { %5042 = vmatprep.mubr.msk.f32.mxu0 %vm1061_vm4, %v6937_v19  ;;  %8098 = vst [vmem:[#allocation13_spill] sm:$0xff] %v6957_v33  ;;  %v6964_v30 = vmul.f32 %v997_v21, %v6745_v0  ;;  %4825 = vmatmul.mubr.msk.f32.gmra.mrb[12].mxu1 %vm1061_vm4, %v8100_v17  ;;  %v2314_v19 = vrot.slane %v6741_v53, 1  ;;  %v682_v31 = vadd.f32 1.0, %v5679_v16  ;;  %v8103_v21 = vld [vmem:[#allocation22_spill] sm:$0xff] }
  0xce   : > { %4827 = vmatprep.mubr.msk.f32.mxu1 %vm1061_vm4, %v8101_v51  ;;  %v1000_v1 = vsel %vm892_vm13, %v5677_v48, %v946_v10 }
  0xcf   : > { %v1984_v27 = vrot.slane %v6964_v30, 1  ;;  %v6976_v0 = vmul.f32 %v1000_v1, %v6748_v55  ;;  %5686 = vrcp.f32 %v682_v31  ;;  %v6984_v58 = vsel %vm1905_vm8, %v2313_v8, %v2314_v19  ;;  %v8104_v1 = vld [vmem:[#allocation23_spill] sm:$0xff] }
  0xd0   : > { %5043 = vmatmul.mubr.msk.f32.gmra.mrb[24].mxu0 %vm1061_vm4, %v6957_v33 }
  0xd1   : > { %8102 = vst [vmem:[#allocation18_spill] sm:$0xff] %v6976_v0  ;;  %5045 = vmatprep.mubr.msk.f32.mxu0 %vm1061_vm4, %v6961_v3  ;;  %v6981_v40 = vsel %vm1905_vm8, %v1982_v5, %v1984_v27  ;;  %v2316_v48 = vrot.slane %v6976_v0, 1  ;;  %4828 = vmatmul.mubr.msk.f32.gmra.mrb[14].mxu1 %vm1061_vm4, %v8103_v21  ;;  %v8106_v0 = vld [vmem:[#allocation28_spill] sm:$0xff] }
  0xd2   : > { %v5681_v23 = vpop.eup %5680  ;;  %4830 = vmatprep.mubr.msk.f32.mxu1 %vm1061_vm4, %v8104_v1 }
  0xd3   : > { %v5683_v55 = vpop.eup %5682  ;;  %v947_v10 = vmul.f32 %v5681_v23, %v5669_v35  ;;  %v6998_v31 = vsel %vm1905_vm8, %v2314_v19, %v2316_v48  ;;  %v2857_v48 = vrot.slane %v6759_v62, 2 }
  0xd4   : > { %5046 = vmatmul.mubr.msk.f32.gmra.mrb[26].mxu0 %vm1061_vm4, %v6981_v40  ;;  %v948_v5 = vmul.f32 %v5683_v55, %v5671_v4  ;;  %v5685_v8 = vpop.eup %5684  ;;  %8105 = vst [vmem:[#allocation19_spill] sm:$0xff] %v6998_v31 }
  0xd5   : > { %5048 = vmatprep.mubr.msk.f32.mxu0 %vm1061_vm4, %v6984_v58  ;;  %v1001_v27 = vsel %vm893_vm14, %v5681_v23, %v947_v10  ;;  %v949_v33 = vmul.f32 %v5685_v8, %v5673_v49  ;;  %4831 = vmatmul.mubr.msk.f32.gmra.mrb[16].mxu1 %vm1061_vm4, %v8106_v0 }
  0xd6   : > { %v1002_v3 = vsel %vm894_vm15, %v5683_v55, %v948_v5  ;;  %v7002_v35 = vmul.f32 %v1001_v27, %v6776_v13  ;;  %4833 = vmatprep.mubr.msk.f32.mxu1 %vm1061_vm4, %v6437_v12  ;;  %v2858_v13 = vrot.slane %v6792_v36, 2  ;;  %v2862_v27 = vrot.slane %v5961_v56, 2 }
  0xd7   : > { %v7007_v4 = vmul.f32 %v1002_v3, %v6779_v14  ;;  %v1003_v23 = vsel %vm895_vm1, %v5685_v8, %v949_v33 }
  0xd8   : > { %5049 = vmatmul.mubr.msk.f32.gmra.mrb[28].mxu0 %vm1061_vm4, %v6998_v31  ;;  %v2585_v19 = vrot.slane %v7002_v35, 1  ;;  %v7018_v55 = vmul.f32 %v1003_v23, %v6814_v18  ;;  %v2859_v33 = vsel %vm2856_vm2, %v2857_v48, %v2858_v13  ;;  %v1906_v23 = vrot.slane %v6759_v62, 1 }
  0xd9   : > { %v2586_v49 = vrot.slane %v7007_v4, 1  ;;  %4834 = vmatmul.mubr.msk.f32.gmra.mrb[18].mxu1 %vm1061_vm4, %v6470_v6  ;;  %v5687_v14 = vpop.eup %5686  ;;  %v2867_v62 = vrot.slane %v5977_v34, 2  ;;  %v2893_v31 = vrot.slane %v8103_v21, 2 }
  0xda   : > { %8107 = vst [vmem:[#allocation22_spill] sm:$0xff] %v7018_v55  ;;  %v2588_v10 = vrot.slane %v7018_v55, 1  ;;  %4836 = vmatprep.mubr.msk.f32.mxu1 %vm1061_vm4, %v6480_v26  ;;  %v898_v18 = vmul.f32 %v5687_v14, %v5679_v16  ;;  %v1907_v16 = vrot.slane %v6792_v36, 1  ;;  %v7058_v36 = vld [vmem:[%s7982_s3 + $0x20] sm:$0xf]  ;;  %v2892_v55 = vrot.slane %v8101_v51, 2 }
  0xdb   : > { %v2587_v3 = vsel %vm1905_vm8, %v2585_v19, %v2586_v49  ;;  %v2863_v19 = vrot.slane %v5968_v59, 2 }
  0xdc   : > { %5051 = vmatprep.mubr.msk.f32.mxu0 %vm1061_vm4, %v2587_v3  ;;  %v2589_v5 = vsel %vm1905_vm8, %v2586_v49, %v2588_v10  ;;  %v952_v8 = vsel %vm844_vm3, %v5687_v14, %v898_v18  ;;  %v8108_v49 = vld [vmem:[#allocation2_spill] sm:$0xff]  ;;  %v7043_v56 = vsel %vm1905_vm8, %v1906_v23, %v1907_v16  ;;  %v2872_v23 = vrot.slane %v6014_v32, 2 }
  0xdd   : > { %5052 = vmatmul.mubr.msk.f32.gmra.mrb[30].mxu0 %vm1061_vm4, %v2589_v5  ;;  %4837 = vmatmul.mubr.msk.f32.gmra.mrb[20].mxu1 %vm1061_vm4, %v6497_v52  ;;  %v1006_v3 = vmul.f32 %v952_v8, %v6858_v37  ;;  %v2865_v14 = vrot.slane %v8108_v49, 2  ;;  %v7046_v10 = vsel %vm2856_vm2, %v2862_v27, %v2863_v19  ;;  %v8109_v5 = vld [vmem:[#allocation4_spill] sm:$0xff]  ;;  %v2877_v49 = vrot.slane %v6092_v20, 2 }
  0xde   : > { %5056 = vmatprep.mubr.msk.f32.mxu0 %vm1061_vm4, %v2859_v33  ;;  %4839 = vmatprep.mubr.msk.f32.mxu1 %vm1061_vm4, %v6508_v25  ;;  %v2868_v33 = vrot.slane %v6001_v43, 2  ;;  %v2870_v8 = vrot.slane %v8109_v5, 2  ;;  %v2882_v5 = vrot.slane %v6152_v54, 2 }
  0xdf   : > { %v2860_v48 = vrot.slane %v1006_v3, 2  ;;  %v1909_v59 = vrot.slane %v1006_v3, 1  ;;  %v2873_v3 = vrot.slane %v6038_v41, 2 }
  0xe0   : > { %v7073_v27 = vsel %vm2856_vm2, %v2867_v62, %v2868_v33  ;;  %v8111_v62 = vld [vmem:[#allocation10_spill] sm:$0xff] }
  0xe1   : > { %4840 = vmatmul.mubr.msk.f32.gmra.mrb[22].mxu1 %vm1061_vm4, %v6564_v44  ;;  %v2861_v37 = vsel %vm2856_vm2, %v2858_v13, %v2860_v48  ;;  %v7061_v18 = vsel %vm1905_vm8, %v1907_v16, %v1909_v59  ;;  %v7069_v13 = vsel %vm2856_vm2, %v2863_v19, %v2865_v14  ;;  %v8110_v19 = vld [vmem:[#allocation9_spill] sm:$0xff]  ;;  %v7092_v48 = vsel %vm2856_vm2, %v2872_v23, %v2873_v3 }
  0xe2   : > { %4842 = vmatprep.mubr.msk.f32.mxu1 %vm1061_vm4, %v6579_v9  ;;  %5057 = vmatmul.mubr.msk.f32.vlgmr.msra.gmra.mrb[0].mxu0 %vm1061_vm4, %v2861_v37  ;;  %v2875_v16 = vrot.slane %v8110_v19, 2  ;;  %v2878_v14 = vrot.slane %v6145_v29, 2 }
  0xe3   : > { %5105 = vmatpush3.msk.msra.mxu0 %vm1158_vm0, %v6517_v15  ;;  %5059 = vmatprep.mubr.msk.f32.mxu0 %vm1061_vm4, %v7046_v10  ;;  %v7088_v15 = vsel %vm2856_vm2, %v2868_v33, %v2870_v8  ;;  %v2880_v33 = vrot.slane %v8111_v62, 2  ;;  %v2883_v8 = vrot.slane %v6178_v46, 2  ;;  %v2888_v62 = vrot.slane %v8100_v17, 2 }
  0xe4   : > { %5154 = vmatprep.subr.msk.mxu0 %vm1158_vm0, %v7058_v36  ;;  %v7105_v59 = vsel %vm2856_vm2, %v2873_v3, %v2875_v16  ;;  %v7109_v37 = vsel %vm2856_vm2, %v2877_v49, %v2878_v14  ;;  %v8112_v3 = vld [vmem:[#allocation14_spill] sm:$0xff]  ;;  %v2887_v49 = vrot.slane %v8097_v39, 2 }
  0xe5   : > { %4843 = vmatmul.mubr.msk.f32.gmra.mrb[24].mxu1 %vm1061_vm4, %v6595_v61  ;;  %v7122_v23 = vsel %vm2856_vm2, %v2878_v14, %v2880_v33  ;;  %v2885_v19 = vrot.slane %v8112_v3, 2  ;;  %v7126_v16 = vsel %vm2856_vm2, %v2882_v5, %v2883_v8  ;;  %v8113_v33 = vld [vmem:[#allocation20_spill] sm:$0xff] }
  0xe6   : > { %4845 = vmatprep.mubr.msk.f32.mxu1 %vm1061_vm4, %v6614_v28  ;;  %5060 = vmatmul.mubr.msk.f32.gmra.mrb[2].mxu0 %vm1061_vm4, %v7069_v13  ;;  %v2890_v5 = vrot.slane %v8113_v33, 2  ;;  %v7143_v3 = vsel %vm2856_vm2, %v2887_v49, %v2888_v62  ;;  %v2898_v49 = vrot.slane %v8106_v0, 2 }
  0xe7   : > { %5062 = vmatprep.mubr.msk.f32.mxu0 %vm1061_vm4, %v7073_v27  ;;  %v7139_v14 = vsel %vm2856_vm2, %v2883_v8, %v2885_v19  ;;  %v2897_v19 = vrot.slane %v8104_v1, 2 }
  0xe9   : > { %4846 = vmatmul.mubr.msk.f32.gmra.mrb[26].mxu1 %vm1061_vm4, %v6645_v7 }
  0xea   : > { %4848 = vmatprep.mubr.msk.f32.mxu1 %vm1061_vm4, %v6670_v38  ;;  %5063 = vmatmul.mubr.msk.f32.gmra.mrb[4].mxu0 %vm1061_vm4, %v7088_v15 }
  0xeb   : > { %5065 = vmatprep.mubr.msk.f32.mxu0 %vm1061_vm4, %v7092_v48 }
  0xed   : > { %4849 = vmatmul.mubr.msk.f32.gmra.mrb[28].mxu1 %vm1061_vm4, %v6685_v50 }
  0xee   : > { %4851 = vmatprep.mubr.msk.f32.mxu1 %vm1061_vm4, %v6702_v24  ;;  %5066 = vmatmul.mubr.msk.f32.gmra.mrb[6].mxu0 %vm1061_vm4, %v7105_v59 }
  0xef   : > { %5068 = vmatprep.mubr.msk.f32.mxu0 %vm1061_vm4, %v7109_v37 }
  0xf1   : > { %4852 = vmatmul.mubr.msk.f32.gmra.mrb[30].mxu1 %vm1061_vm4, %v6726_v42 }
  0xf2   : > { %4856 = vmatprep.mubr.msk.f32.mxu1 %vm1061_vm4, %v5977_v34  ;;  %5069 = vmatmul.mubr.msk.f32.gmra.mrb[8].mxu0 %vm1061_vm4, %v7122_v23  ;;  %v7158_v34 = vld [vmem:[%s7982_s3 + $0x10] sm:$0xf] }
  0xf3   : > { %5071 = vmatprep.mubr.msk.f32.mxu0 %vm1061_vm4, %v7126_v16 }
  0xf5   : > { %4857 = vmatmul.mubr.msk.f32.vlgmr.msra.gmra.mrb[0].mxu1 %vm1061_vm4, %v6001_v43  ;;  %v7165_v43 = vsel %vm2856_vm2, %v2888_v62, %v2890_v5  ;;  %v7186_v5 = vsel %vm2856_vm2, %v2897_v19, %v2898_v49  ;;  %v2907_v19 = vrot.slane %v6480_v26, 2 }
  0xf6   : > { %4859 = vmatprep.mubr.msk.f32.mxu1 %vm1061_vm4, %v6014_v32  ;;  %4905 = vmatpush3.msk.msra.mxu1 %vm1158_vm0, %v6805_v22  ;;  %v8114_v32 = vld [vmem:[#allocation26_spill] sm:$0xff]  ;;  %v7169_v22 = vsel %vm2856_vm2, %v2892_v55, %v2893_v31 }
  0xf7   : > { %5072 = vmatmul.mubr.msk.f32.gmra.mrb[10].mxu0 %vm1061_vm4, %v7139_v14  ;;  %5204 = vmatprep.subr.msk.mxu1 %vm1158_vm0, %v7158_v34  ;;  %v2895_v8 = vrot.slane %v8114_v32, 2  ;;  %v8115_v55 = vld [vmem:[#allocation30_spill] sm:$0xff]  ;;  %v2902_v32 = vrot.slane %v6437_v12, 2 }
  0xf8   : > { %5074 = vmatprep.mubr.msk.f32.mxu0 %vm1061_vm4, %v7143_v3  ;;  %v2900_v33 = vrot.slane %v8115_v55, 2  ;;  %v2912_v55 = vrot.slane %v6508_v25, 2 }
  0xf9   : > { %4860 = vmatmul.mubr.msk.f32.gmra.mrb[2].mxu1 %vm1061_vm4, %v6038_v41  ;;  %v7182_v62 = vsel %vm2856_vm2, %v2893_v31, %v2895_v8  ;;  %v2903_v41 = vrot.slane %v6470_v6, 2  ;;  %v2905_v31 = vrot.slane %v6786_v47, 2  ;;  %v2910_v47 = vrot.slane %v6843_v57, 2 }
  0xfa   : > { %4862 = vmatprep.mubr.msk.f32.mxu1 %vm1061_vm4, %v6092_v20  ;;  %v7199_v20 = vsel %vm2856_vm2, %v2898_v49, %v2900_v33 }
  0xfb   : > { %5075 = vmatmul.mubr.msk.f32.gmra.mrb[12].mxu0 %vm1061_vm4, %v7165_v43  ;;  %v7203_v8 = vsel %vm2856_vm2, %v2902_v32, %v2903_v41  ;;  %v2917_v32 = vrot.slane %v6579_v9, 2 }
  0xfc   : > { %5077 = vmatprep.mubr.msk.f32.mxu0 %vm1061_vm4, %v7169_v22 }
  0xfd   : > { %4863 = vmatmul.mubr.msk.f32.gmra.mrb[4].mxu1 %vm1061_vm4, %v6145_v29  ;;  %v2908_v29 = vrot.slane %v6497_v52, 2 }
  0xfe   : > { %4865 = vmatprep.mubr.msk.f32.mxu1 %vm1061_vm4, %v6152_v54  ;;  %v7216_v54 = vsel %vm2856_vm2, %v2903_v41, %v2905_v31  ;;  %v2922_v31 = vrot.slane %v6614_v28, 2 }
  0xff   : > { %5078 = vmatmul.mubr.msk.f32.gmra.mrb[14].mxu0 %vm1061_vm4, %v7182_v62  ;;  %v7220_v49 = vsel %vm2856_vm2, %v2907_v19, %v2908_v29  ;;  %v7233_v57 = vsel %vm2856_vm2, %v2908_v29, %v2910_v47  ;;  %v2927_v29 = vrot.slane %v6670_v38, 2 }
 0x100   : > { %5080 = vmatprep.mubr.msk.f32.mxu0 %vm1061_vm4, %v7186_v5 }
 0x101   : > { %4866 = vmatmul.mubr.msk.f32.gmra.mrb[6].mxu1 %vm1061_vm4, %v6178_v46  ;;  %v2913_v46 = vrot.slane %v6564_v44, 2 }
 0x102   : > { %4868 = vmatprep.mubr.msk.f32.mxu1 %vm1061_vm4, %v8097_v39  ;;  %v2915_v39 = vrot.slane %v6872_v2, 2  ;;  %v2920_v2 = vrot.slane %v6898_v11, 2 }
 0x103   : > { %5081 = vmatmul.mubr.msk.f32.gmra.mrb[16].mxu0 %vm1061_vm4, %v7199_v20  ;;  %v7237_v33 = vsel %vm2856_vm2, %v2912_v55, %v2913_v46  ;;  %v2932_v55 = vrot.slane %v6702_v24, 2 }
 0x104   : > { %5083 = vmatprep.mubr.msk.f32.mxu0 %vm1061_vm4, %v7203_v8 }
 0x105   : > { %4869 = vmatmul.mubr.msk.f32.gmra.mrb[8].mxu1 %vm1061_vm4, %v8100_v17  ;;  %v2918_v17 = vrot.slane %v6595_v61, 2 }
 0x106   : > { %4871 = vmatprep.mubr.msk.f32.mxu1 %vm1061_vm4, %v8101_v51  ;;  %v7250_v51 = vsel %vm2856_vm2, %v2913_v46, %v2915_v39  ;;  %v8131_v39 = vld [vmem:[#allocation31_spill] sm:$0xff] }
 0x107   : > { %5084 = vmatmul.mubr.msk.f32.gmra.mrb[18].mxu0 %vm1061_vm4, %v7216_v54  ;;  %v7254_v41 = vsel %vm2856_vm2, %v2917_v32, %v2918_v17  ;;  %v7267_v11 = vsel %vm2856_vm2, %v2918_v17, %v2920_v2  ;;  %v8132_v32 = vld [vmem:[#allocation32_spill] sm:$0xff]  ;;  %v8133_v17 = vld [vmem:[#allocation18_spill] sm:$0xff] }
 0x108   : > { %5086 = vmatprep.mubr.msk.f32.mxu0 %vm1061_vm4, %v7220_v49  ;;  %v3266_v2 = vrot.slane %v8133_v17, 2 }
 0x109   : > { %4872 = vmatmul.mubr.msk.f32.gmra.mrb[10].mxu1 %vm1061_vm4, %v8103_v21  ;;  %v2923_v21 = vrot.slane %v6645_v7, 2 }
 0x10a   : > { %4874 = vmatprep.mubr.msk.f32.mxu1 %vm1061_vm4, %v8104_v1  ;;  %v2925_v1 = vrot.slane %v6926_v63, 2  ;;  %v2930_v63 = vrot.slane %v6933_v60, 2  ;;  %v2935_v60 = vrot.slane %v6964_v30, 2  ;;  %v8126_v30 = vld [vmem:[#allocation21_spill] sm:$0xff] }
 0x10b   : > { %5087 = vmatmul.mubr.msk.f32.gmra.mrb[20].mxu0 %vm1061_vm4, %v7233_v57  ;;  %v7271_v19 = vsel %vm2856_vm2, %v2922_v31, %v2923_v21 }
 0x10c   : > { %5089 = vmatprep.mubr.msk.f32.mxu0 %vm1061_vm4, %v7237_v33 }
 0x10d   : > { %4875 = vmatmul.mubr.msk.f32.gmra.mrb[12].mxu1 %vm1061_vm4, %v8106_v0  ;;  %v2928_v0 = vrot.slane %v6685_v50, 2 }
 0x10e   : > { %4877 = vmatprep.mubr.msk.f32.mxu1 %vm1061_vm4, %v6437_v12  ;;  %v7284_v12 = vsel %vm2856_vm2, %v2923_v21, %v2925_v1  ;;  %v8136_v1 = vld [vmem:[#allocation36_spill] sm:$0xff] }
 0x10f   : > { %5090 = vmatmul.mubr.msk.f32.gmra.mrb[22].mxu0 %vm1061_vm4, %v7250_v51  ;;  %v7288_v47 = vsel %vm2856_vm2, %v2927_v29, %v2928_v0  ;;  %v8137_v29 = vld [vmem:[#allocation35_spill] sm:$0xff] }
 0x110   : > { %5092 = vmatprep.mubr.msk.f32.mxu0 %vm1061_vm4, %v7254_v41 }
 0x111   : > { %4878 = vmatmul.mubr.msk.f32.gmra.mrb[14].mxu1 %vm1061_vm4, %v6470_v6  ;;  %v2933_v6 = vrot.slane %v6726_v42, 2 }
 0x112   : > { %4880 = vmatprep.mubr.msk.f32.mxu1 %vm1061_vm4, %v6480_v26  ;;  %v7301_v26 = vsel %vm2856_vm2, %v2928_v0, %v2930_v63  ;;  %v8138_v0 = vld [vmem:[#allocation38_spill] sm:$0xff]  ;;  %v8139_v63 = vld [vmem:[#allocation37_spill] sm:$0xff] }
 0x113   : > { %5093 = vmatmul.mubr.msk.f32.gmra.mrb[24].mxu0 %vm1061_vm4, %v7267_v11  ;;  %v7305_v46 = vsel %vm2856_vm2, %v2932_v55, %v2933_v6  ;;  %v8140_v55 = vld [vmem:[#allocation40_spill] sm:$0xff] }
 0x114   : > { %5095 = vmatprep.mubr.msk.f32.mxu0 %vm1061_vm4, %v7271_v19 }
 0x115   : > { %4881 = vmatmul.mubr.msk.f32.gmra.mrb[16].mxu1 %vm1061_vm4, %v6497_v52  ;;  %v7316_v52 = vsel %vm2856_vm2, %v2933_v6, %v2935_v60  ;;  %v8141_v6 = vld [vmem:[#allocation39_spill] sm:$0xff]  ;;  %v8143_v60 = vld [vmem:[#allocation41_spill] sm:$0xff] }
 0x116   : > { %4883 = vmatprep.mubr.msk.f32.mxu1 %vm1061_vm4, %v6508_v25  ;;  %v8116_v25 = vld [vmem:[#allocation3_spill] sm:$0xff] }
 0x117   : > { %5096 = vmatmul.mubr.msk.f32.gmra.mrb[26].mxu0 %vm1061_vm4, %v7284_v12 }
 0x118   : > { %5098 = vmatprep.mubr.msk.f32.mxu0 %vm1061_vm4, %v7288_v47 }
 0x119   : > { %4884 = vmatmul.mubr.msk.f32.gmra.mrb[18].mxu1 %vm1061_vm4, %v6564_v44  ;;  %v8117_v44 = vld [vmem:[#allocation5_spill] sm:$0xff] }
 0x11a   : > { %4886 = vmatprep.mubr.msk.f32.mxu1 %vm1061_vm4, %v6579_v9  ;;  %v8118_v9 = vld [vmem:[#allocation6_spill] sm:$0xff] }
 0x11b   : > { %5099 = vmatmul.mubr.msk.f32.gmra.mrb[28].mxu0 %vm1061_vm4, %v7301_v26 }
 0x11c   : > { %5101 = vmatprep.mubr.msk.f32.mxu0 %vm1061_vm4, %v7305_v46 }
 0x11d   : > { %4887 = vmatmul.mubr.msk.f32.gmra.mrb[20].mxu1 %vm1061_vm4, %v6595_v61  ;;  %v8119_v61 = vld [vmem:[#allocation7_spill] sm:$0xff] }
 0x11e   : > { %4889 = vmatprep.mubr.msk.f32.mxu1 %vm1061_vm4, %v6614_v28  ;;  %v8120_v28 = vld [vmem:[#allocation8_spill] sm:$0xff] }
 0x11f   : > { %5102 = vmatmul.mubr.msk.f32.gmra.mrb[30].mxu0 %vm1061_vm4, %v7316_v52 }
 0x120   : > { %5106 = vmatprep.mubr.msk.f32.mxu0 %vm1061_vm4, %v7046_v10  ;;  %v8128_v10 = vld [vmem:[#allocation25_spill] sm:$0xff] }
 0x121   : > { %4890 = vmatmul.mubr.msk.f32.gmra.mrb[22].mxu1 %vm1061_vm4, %v6645_v7  ;;  %v8121_v7 = vld [vmem:[#allocation11_spill] sm:$0xff] }
 0x122   : > { %4892 = vmatprep.mubr.msk.f32.mxu1 %vm1061_vm4, %v6670_v38  ;;  %v8122_v38 = vld [vmem:[#allocation12_spill] sm:$0xff] }
 0x123   : > { %5107 = vmatmul.mubr.msk.f32.vlgmr.msra.gmra.mrb[0].mxu0 %vm1061_vm4, %v7069_v13  ;;  %v3263_v13 = vrot.slane %v6730_v45, 2 }
 0x124   : > { %5155 = vmatpush3.msk.msra.mxu0 %vm1158_vm0, %v7058_v36  ;;  %5109 = vmatprep.mubr.msk.f32.mxu0 %vm1061_vm4, %v7073_v27  ;;  %v8129_v36 = vld [vmem:[#allocation27_spill] sm:$0xff] }
 0x125   : > { %4893 = vmatmul.mubr.msk.f32.gmra.mrb[24].mxu1 %vm1061_vm4, %v6685_v50  ;;  %v8123_v50 = vld [vmem:[#allocation15_spill] sm:$0xff] }
 0x126   : > { %4895 = vmatprep.mubr.msk.f32.mxu1 %vm1061_vm4, %v6702_v24  ;;  %v8124_v24 = vld [vmem:[#allocation16_spill] sm:$0xff] }
 0x127   : > { %5110 = vmatmul.mubr.msk.f32.gmra.mrb[2].mxu0 %vm1061_vm4, %v7088_v15 }
 0x128   : > { %5112 = vmatprep.mubr.msk.f32.mxu0 %vm1061_vm4, %v7092_v48 }
 0x129   : > { %4896 = vmatmul.mubr.msk.f32.gmra.mrb[26].mxu1 %vm1061_vm4, %v6726_v42  ;;  %v8125_v42 = vld [vmem:[#allocation17_spill] sm:$0xff] }
 0x12a   : > { %4898 = vmatprep.mubr.msk.f32.mxu1 %vm1061_vm4, %v6730_v45  ;;  %v8134_v45 = vld [vmem:[#allocation34_spill] sm:$0xff] }
 0x12b   : > { %5113 = vmatmul.mubr.msk.f32.gmra.mrb[4].mxu0 %vm1061_vm4, %v7105_v59 }
 0x12c   : > { %5115 = vmatprep.mubr.msk.f32.mxu0 %vm1061_vm4, %v7109_v37 }
 0x12d   : > { %4899 = vmatmul.mubr.msk.f32.gmra.mrb[28].mxu1 %vm1061_vm4, %v6741_v53 }
 0x12e   : > { %4901 = vmatprep.mubr.msk.f32.mxu1 %vm1061_vm4, %v7002_v35 }
 0x12f   : > { %5116 = vmatmul.mubr.msk.f32.gmra.mrb[6].mxu0 %vm1061_vm4, %v7122_v23 }
 0x130   : > { %5118 = vmatprep.mubr.msk.f32.mxu0 %vm1061_vm4, %v7126_v16 }
 0x131   : > { %4902 = vmatmul.mubr.msk.f32.gmra.mrb[30].mxu1 %vm1061_vm4, %v7007_v4 }
 0x132   : > { %4906 = vmatprep.mubr.msk.f32.mxu1 %vm1061_vm4, %v7043_v56  ;;  %v8127_v56 = vld [vmem:[#allocation24_spill] sm:$0xff] }
 0x133   : > { %5119 = vmatmul.mubr.msk.f32.gmra.mrb[8].mxu0 %vm1061_vm4, %v7139_v14 }
 0x134   : > { %5121 = vmatprep.mubr.msk.f32.mxu0 %vm1061_vm4, %v7143_v3 }
 0x135   : > { %4907 = vmatmul.mubr.msk.f32.vlgmr.msra.gmra.mrb[0].mxu1 %vm1061_vm4, %v7061_v18  ;;  %v8130_v18 = vld [vmem:[#allocation29_spill] sm:$0xff] }
 0x136   : > { %4909 = vmatprep.mubr.msk.f32.mxu1 %vm1061_vm4, %v8116_v25  ;;  %5205 = vmatpush3.msk.msra.mxu1 %vm1158_vm0, %v7158_v34  ;;  %v3264_v34 = vrot.slane %v6741_v53, 2  ;;  %v8135_v53 = vld [vmem:[#allocation33_spill] sm:$0xff]  ;;  %vm3844_vm0 = vcmask 64512  }
 0x137   : > { %5122 = vmatmul.mubr.msk.f32.gmra.mrb[10].mxu0 %vm1061_vm4, %v7165_v43 }
 0x138   : > { %5124 = vmatprep.mubr.msk.f32.mxu0 %vm1061_vm4, %v7169_v22  ;;  %v7446_v31 = vsel %vm2856_vm2, %v3263_v13, %v3264_v34  ;;  %v7457_v21 = vsel %vm2856_vm2, %v3264_v34, %v3266_v2 }
 0x139   : > { %4910 = vmatmul.mubr.msk.f32.gmra.mrb[2].mxu1 %vm1061_vm4, %v8117_v44 }
 0x13a   : > { %4912 = vmatprep.mubr.msk.f32.mxu1 %vm1061_vm4, %v8118_v9 }
 0x13b   : > { %5125 = vmatmul.mubr.msk.f32.gmra.mrb[12].mxu0 %vm1061_vm4, %v7182_v62 }
 0x13c   : > { %5127 = vmatprep.mubr.msk.f32.mxu0 %vm1061_vm4, %v7186_v5 }
 0x13d   : > { %4913 = vmatmul.mubr.msk.f32.gmra.mrb[4].mxu1 %vm1061_vm4, %v8119_v61 }
 0x13e   : > { %4915 = vmatprep.mubr.msk.f32.mxu1 %vm1061_vm4, %v8120_v28 }
 0x13f   : > { %5128 = vmatmul.mubr.msk.f32.gmra.mrb[14].mxu0 %vm1061_vm4, %v7199_v20 }
 0x140   : > { %5130 = vmatprep.mubr.msk.f32.mxu0 %vm1061_vm4, %v7203_v8 }
 0x141   : > { %4916 = vmatmul.mubr.msk.f32.gmra.mrb[6].mxu1 %vm1061_vm4, %v8121_v7 }
 0x142   : > { %4918 = vmatprep.mubr.msk.f32.mxu1 %vm1061_vm4, %v8122_v38 }
 0x143   : > { %5131 = vmatmul.mubr.msk.f32.gmra.mrb[16].mxu0 %vm1061_vm4, %v7216_v54 }
 0x144   : > { %5133 = vmatprep.mubr.msk.f32.mxu0 %vm1061_vm4, %v7220_v49 }
 0x145   : > { %4919 = vmatmul.mubr.msk.f32.gmra.mrb[8].mxu1 %vm1061_vm4, %v8123_v50 }
 0x146   : > { %4921 = vmatprep.mubr.msk.f32.mxu1 %vm1061_vm4, %v8124_v24 }
 0x147   : > { %5134 = vmatmul.mubr.msk.f32.gmra.mrb[18].mxu0 %vm1061_vm4, %v7233_v57 }
 0x148   : > { %5136 = vmatprep.mubr.msk.f32.mxu0 %vm1061_vm4, %v7237_v33 }
 0x149   : > { %4922 = vmatmul.mubr.msk.f32.gmra.mrb[10].mxu1 %vm1061_vm4, %v8125_v42 }
 0x14a   : > { %4924 = vmatprep.mubr.msk.f32.mxu1 %vm1061_vm4, %v8126_v30 }
 0x14b   : > { %5137 = vmatmul.mubr.msk.f32.gmra.mrb[20].mxu0 %vm1061_vm4, %v7250_v51 }
 0x14c   : > { %5139 = vmatprep.mubr.msk.f32.mxu0 %vm1061_vm4, %v7254_v41 }
 0x14d   : > { %4925 = vmatmul.mubr.msk.f32.gmra.mrb[12].mxu1 %vm1061_vm4, %v8127_v56 }
 0x14e   : > { %4927 = vmatprep.mubr.msk.f32.mxu1 %vm1061_vm4, %v8128_v10 }
 0x14f   : > { %5140 = vmatmul.mubr.msk.f32.gmra.mrb[22].mxu0 %vm1061_vm4, %v7267_v11 }
 0x150   : > { %5142 = vmatprep.mubr.msk.f32.mxu0 %vm1061_vm4, %v7271_v19 }
 0x151   : > { %4928 = vmatmul.mubr.msk.f32.gmra.mrb[14].mxu1 %vm1061_vm4, %v8129_v36 }
 0x152   : > { %4930 = vmatprep.mubr.msk.f32.mxu1 %vm1061_vm4, %v8130_v18 }
 0x153   : > { %5143 = vmatmul.mubr.msk.f32.gmra.mrb[24].mxu0 %vm1061_vm4, %v7284_v12 }
 0x154   : > { %5145 = vmatprep.mubr.msk.f32.mxu0 %vm1061_vm4, %v7288_v47 }
 0x155   : > { %4931 = vmatmul.mubr.msk.f32.gmra.mrb[16].mxu1 %vm1061_vm4, %v8131_v39 }
 0x156   : > { %4933 = vmatprep.mubr.msk.f32.mxu1 %vm1061_vm4, %v8132_v32 }
 0x157   : > { %5146 = vmatmul.mubr.msk.f32.gmra.mrb[26].mxu0 %vm1061_vm4, %v7301_v26 }
 0x158   : > { %5148 = vmatprep.mubr.msk.f32.mxu0 %vm1061_vm4, %v7305_v46 }
 0x159   : > { %4934 = vmatmul.mubr.msk.f32.gmra.mrb[18].mxu1 %vm1061_vm4, %v8134_v45 }
 0x15a   : > { %4936 = vmatprep.mubr.msk.f32.mxu1 %vm1061_vm4, %v8135_v53 }
 0x15b   : > { %5149 = vmatmul.mubr.msk.f32.gmra.mrb[28].mxu0 %vm1061_vm4, %v7316_v52 }
 0x15c   : > { %5151 = vmatprep.mubr.msk.f32.mxu0 %vm1061_vm4, %v7446_v31 }
 0x15d   : > { %4937 = vmatmul.mubr.msk.f32.gmra.mrb[20].mxu1 %vm1061_vm4, %v8136_v1 }
 0x15e   : > { %4939 = vmatprep.mubr.msk.f32.mxu1 %vm1061_vm4, %v8137_v29 }
 0x15f   : > { %5152 = vmatmul.mubr.msk.f32.gmra.mrb[30].mxu0 %vm1061_vm4, %v7457_v21 }
 0x160   : > { %5156 = vmatprep.mubr.msk.f32.mxu0 %vm1061_vm4, %v7073_v27  ;;  %v8142_v27 = vld [vmem:[#allocation42_spill] sm:$0xff] }
 0x161   : > { %4940 = vmatmul.mubr.msk.f32.gmra.mrb[22].mxu1 %vm1061_vm4, %v8138_v0 }
 0x162   : > { %4942 = vmatprep.mubr.msk.f32.mxu1 %vm1061_vm4, %v8139_v63 }
 0x163   : > { %5157 = vmatmul.mubr.msk.f32.vlgmr.msra.gmra.mrb[0].mxu0 %vm1061_vm4, %v7088_v15  ;;  %v8144_v15 = vld [vmem:[#allocation13_spill] sm:$0xff] }
 0x164   : > { %5159 = vmatprep.mubr.msk.f32.mxu0 %vm1061_vm4, %v7092_v48  ;;  %v8145_v48 = vld [vmem:[#allocation43_spill] sm:$0xff] }
 0x165   : > { %4943 = vmatmul.mubr.msk.f32.gmra.mrb[24].mxu1 %vm1061_vm4, %v8140_v55 }
 0x166   : > { %4945 = vmatprep.mubr.msk.f32.mxu1 %vm1061_vm4, %v8141_v6 }
 0x167   : > { %5160 = vmatmul.mubr.msk.f32.gmra.mrb[2].mxu0 %vm1061_vm4, %v7105_v59  ;;  %v8146_v59 = vld [vmem:[#allocation19_spill] sm:$0xff] }
 0x168   : > { %5162 = vmatprep.mubr.msk.f32.mxu0 %vm1061_vm4, %v7109_v37  ;;  %v3535_v37 = vrot.slane %v7007_v4, 2 }
 0x169   : > { %4946 = vmatmul.mubr.msk.f32.gmra.mrb[26].mxu1 %vm1061_vm4, %v8142_v27 }
 0x16a   : > { %4948 = vmatprep.mubr.msk.f32.mxu1 %vm1061_vm4, %v8143_v60 }
 0x16b   : > { %5163 = vmatmul.mubr.msk.f32.gmra.mrb[4].mxu0 %vm1061_vm4, %v7122_v23 }
 0x16c   : > { %5165 = vmatprep.mubr.msk.f32.mxu0 %vm1061_vm4, %v7126_v16 }
 0x16d   : > { %4949 = vmatmul.mubr.msk.f32.gmra.mrb[28].mxu1 %vm1061_vm4, %v8144_v15 }
 0x16e   : > { %4951 = vmatprep.mubr.msk.f32.mxu1 %vm1061_vm4, %v8145_v48 }
 0x16f   : > { %5166 = vmatmul.mubr.msk.f32.gmra.mrb[6].mxu0 %vm1061_vm4, %v7139_v14 }
 0x170   : > { %5168 = vmatprep.mubr.msk.f32.mxu0 %vm1061_vm4, %v7143_v3 }
 0x171   : > { %4952 = vmatmul.mubr.msk.f32.gmra.mrb[30].mxu1 %vm1061_vm4, %v6981_v40 }
 0x172   : > { %4980 = vmatprep.mubr.msk.f32.mxu1 %vm1061_vm4, %v8132_v32 }
 0x173   : > { %5169 = vmatmul.mubr.msk.f32.gmra.mrb[8].mxu0 %vm1061_vm4, %v7165_v43 }
 0x174   : > { %5171 = vmatprep.mubr.msk.f32.mxu0 %vm1061_vm4, %v7169_v22 }
 0x175   : > { %4981 = vmatmul.mubr.msk.f32.vlgmr.msra.gmra.mrb[16].mxu1 %vm1061_vm4, %v8134_v45 }
 0x176   : > { %4983 = vmatprep.mubr.msk.f32.mxu1 %vm1061_vm4, %v8135_v53 }
 0x177   : > { %5172 = vmatmul.mubr.msk.f32.gmra.mrb[10].mxu0 %vm1061_vm4, %v7182_v62 }
 0x178   : > { %5174 = vmatprep.mubr.msk.f32.mxu0 %vm1061_vm4, %v7186_v5 }
 0x179   : > { %4984 = vmatmul.mubr.msk.f32.gmra.mrb[18].mxu1 %vm1061_vm4, %v8136_v1 }
 0x17a   : > { %4986 = vmatprep.mubr.msk.f32.mxu1 %vm1061_vm4, %v8137_v29 }
 0x17b   : > { %5175 = vmatmul.mubr.msk.f32.gmra.mrb[12].mxu0 %vm1061_vm4, %v7199_v20 }
 0x17c   : > { %5177 = vmatprep.mubr.msk.f32.mxu0 %vm1061_vm4, %v7203_v8 }
 0x17d   : > { %4987 = vmatmul.mubr.msk.f32.gmra.mrb[20].mxu1 %vm1061_vm4, %v8138_v0 }
 0x17e   : > { %4989 = vmatprep.mubr.msk.f32.mxu1 %vm1061_vm4, %v8139_v63 }
 0x17f   : > { %5178 = vmatmul.mubr.msk.f32.gmra.mrb[14].mxu0 %vm1061_vm4, %v7216_v54 }
 0x180   : > { %5180 = vmatprep.mubr.msk.f32.mxu0 %vm1061_vm4, %v7220_v49 }
 0x181   : > { %4990 = vmatmul.mubr.msk.f32.gmra.mrb[22].mxu1 %vm1061_vm4, %v8140_v55 }
 0x182   : > { %4992 = vmatprep.mubr.msk.f32.mxu1 %vm1061_vm4, %v8141_v6 }
 0x183   : > { %5181 = vmatmul.mubr.msk.f32.gmra.mrb[16].mxu0 %vm1061_vm4, %v7233_v57 }
 0x184   : > { %5183 = vmatprep.mubr.msk.f32.mxu0 %vm1061_vm4, %v7237_v33 }
 0x185   : > { %4993 = vmatmul.mubr.msk.f32.gmra.mrb[24].mxu1 %vm1061_vm4, %v8142_v27 }
 0x186   : > { %4995 = vmatprep.mubr.msk.f32.mxu1 %vm1061_vm4, %v8143_v60 }
 0x187   : > { %5184 = vmatmul.mubr.msk.f32.gmra.mrb[18].mxu0 %vm1061_vm4, %v7250_v51 }
 0x188   : > { %5186 = vmatprep.mubr.msk.f32.mxu0 %vm1061_vm4, %v7254_v41 }
 0x189   : > { %4996 = vmatmul.mubr.msk.f32.gmra.mrb[26].mxu1 %vm1061_vm4, %v8144_v15 }
 0x18a   : > { %4998 = vmatprep.mubr.msk.f32.mxu1 %vm1061_vm4, %v8145_v48 }
 0x18b   : > { %5187 = vmatmul.mubr.msk.f32.gmra.mrb[20].mxu0 %vm1061_vm4, %v7267_v11 }
 0x18c   : > { %5189 = vmatprep.mubr.msk.f32.mxu0 %vm1061_vm4, %v7271_v19 }
 0x18d   : > { %4999 = vmatmul.mubr.msk.f32.gmra.mrb[28].mxu1 %vm1061_vm4, %v6981_v40  ;;  %v3534_v40 = vrot.slane %v7002_v35, 2 }
 0x18e   : > { %5001 = vmatprep.mubr.msk.f32.mxu1 %vm1061_vm4, %v6984_v58  ;;  %v8147_v58 = vld [vmem:[#allocation22_spill] sm:$0xff] }
 0x18f   : > { %5190 = vmatmul.mubr.msk.f32.gmra.mrb[22].mxu0 %vm1061_vm4, %v7284_v12  ;;  %v3537_v23 = vrot.slane %v8147_v58, 2  ;;  %v3536_v16 = vsel %vm2856_vm2, %v3534_v40, %v3535_v37  ;;  %v7593_v12 = vld [vmem:[%s282_s20] ss:$0 sm:$0xff] }
 0x190   : > { %5192 = vmatprep.mubr.msk.f32.mxu0 %vm1061_vm4, %v7288_v47 }
 0x191   : > { %5002 = vmatmul.mubr.msk.f32.gmra.mrb[30].mxu1 %vm1061_vm4, %v8146_v59  ;;  %v3538_v14 = vsel %vm2856_vm2, %v3535_v37, %v3537_v23 }
 0x193   : > { %5193 = vmatmul.mubr.msk.f32.gmra.mrb[24].mxu0 %vm1061_vm4, %v7301_v26 }
 0x194   : > { %5195 = vmatprep.mubr.msk.f32.mxu0 %vm1061_vm4, %v7305_v46 }
 0x197   : > { %5196 = vmatmul.mubr.msk.f32.gmra.mrb[26].mxu0 %vm1061_vm4, %v7316_v52 }
 0x198   : > { %5198 = vmatprep.mubr.msk.f32.mxu0 %vm1061_vm4, %v7446_v31 }
 0x19b   : > { %5199 = vmatmul.mubr.msk.f32.gmra.mrb[28].mxu0 %vm1061_vm4, %v7457_v21 }
 0x19c   : > { %5201 = vmatprep.mubr.msk.f32.mxu0 %vm1061_vm4, %v3536_v16 }
 0x19f   : > { %5202 = vmatmul.mubr.msk.f32.gmra.mrb[30].mxu0 %vm1061_vm4, %v3538_v14  ;;  %vm3881_vm4 = vcmask (!%p4453_p4), 57344  }
 0x208   : > { %v4908_v35 = vpop.f32.mrb[0].mxu1 }
 0x209   : > { %v2121_v4 = vpop.f32.mrb[1].mxu1 }
 0x20c   : > { %v4911_v3 = vpop.f32.mrb[2].mxu1 }
 0x20d   : > { %v2131_v43 = vpop.f32.mrb[3].mxu1 }
 0x210   : > { %v4914_v22 = vpop.f32.mrb[4].mxu1 }
 0x211   : > { %v2141_v62 = vpop.f32.mrb[5].mxu1 }
 0x214   : > { %v4917_v5 = vpop.f32.mrb[6].mxu1 }
 0x215   : > { %v2151_v20 = vpop.f32.mrb[7].mxu1 }
 0x218   : > { %v4920_v8 = vpop.f32.mrb[8].mxu1 }
 0x219   : > { %v2161_v54 = vpop.f32.mrb[9].mxu1 }
 0x21c   : > { %v4923_v49 = vpop.f32.mrb[10].mxu1 }
 0x21d   : > { %v2171_v57 = vpop.f32.mrb[11].mxu1 }
 0x220   : > { %v4926_v33 = vpop.f32.mrb[12].mxu1 }
 0x221   : > { %v7582_v51 = vpop.f32.mrb[13].mxu1 }
 0x224   : > { %v7584_v41 = vpop.f32.mrb[14].mxu1 }
 0x225   : > { %v7586_v11 = vpop.f32.mrb[15].mxu1 }
 0x236   : > { %v5158_v19 = vpop.f32.mrb[0].mxu0 }
 0x237   : > { %v5206_v47 = vadd.f32 %v5158_v19, %v4908_v35  ;;  %v3614_v26 = vpop.f32.mrb[1].mxu0 }
 0x238   : > { %v5207_v46 = vadd.f32 %v3614_v26, %v2121_v4 }
 0x239   : > { %v7601_v52 = vadd.f32 %v5206_v47, %v7593_v12 }
 0x23a   : > { %v7604_v25 = vadd.f32 %v5207_v46, %v7593_v12  ;;  %v5161_v44 = vpop.f32.mrb[2].mxu0 }
 0x23b   : > { %3846 = vst.msk [vmem:[%s7598_s26 + $0x8] sm:$0xff] %vm3844_vm0, %v7601_v52  ;;  %v5208_v9 = vadd.f32 %v5161_v44, %v4911_v3  ;;  %v3624_v61 = vpop.f32.mrb[3].mxu0 }
 0x23c   : > { %3845 = vst.msk [vmem:[%s7598_s26] sm:$0xff] %vm3844_vm0, %v7604_v25  ;;  %v5209_v28 = vadd.f32 %v3624_v61, %v2131_v43 }
 0x23d   : > { %v7613_v7 = vadd.f32 %v5208_v9, %v7593_v12 }
 0x23e   : > { %v7616_v38 = vadd.f32 %v5209_v28, %v7593_v12  ;;  %v5164_v50 = vpop.f32.mrb[4].mxu0 }
 0x23f   : > { %3848 = vst.msk [vmem:[%s7598_s26 + $0x18] sm:$0xff] %vm3844_vm0, %v7613_v7  ;;  %v5210_v24 = vadd.f32 %v5164_v50, %v4914_v22  ;;  %v3634_v42 = vpop.f32.mrb[5].mxu0 }
 0x240   : > { %3847 = vst.msk [vmem:[%s7598_s26 + $0x10] sm:$0xff] %vm3844_vm0, %v7616_v38  ;;  %v5211_v30 = vadd.f32 %v3634_v42, %v2141_v62 }
 0x241   : > { %v7625_v56 = vadd.f32 %v5210_v24, %v7593_v12 }
 0x242   : > { %v7628_v10 = vadd.f32 %v5211_v30, %v7593_v12  ;;  %v5167_v36 = vpop.f32.mrb[6].mxu0 }
 0x243   : > { %3850 = vst.msk [vmem:[%s7598_s26 + $0x28] sm:$0xff] %vm3844_vm0, %v7625_v56  ;;  %v5212_v18 = vadd.f32 %v5167_v36, %v4917_v5  ;;  %v3644_v13 = vpop.f32.mrb[7].mxu0 }
 0x244   : > { %3849 = vst.msk [vmem:[%s7598_s26 + $0x20] sm:$0xff] %vm3844_vm0, %v7628_v10  ;;  %v5213_v34 = vadd.f32 %v3644_v13, %v2151_v20 }
 0x245   : > { %v7637_v39 = vadd.f32 %v5212_v18, %v7593_v12 }
 0x246   : > { %v7640_v32 = vadd.f32 %v5213_v34, %v7593_v12  ;;  %v5170_v17 = vpop.f32.mrb[8].mxu0 }
 0x247   : > { %3852 = vst.msk [vmem:[%s7598_s26 + $0x38] sm:$0xff] %vm3844_vm0, %v7637_v39  ;;  %v5214_v2 = vadd.f32 %v5170_v17, %v4920_v8  ;;  %v3654_v31 = vpop.f32.mrb[9].mxu0 }
 0x248   : > { %3851 = vst.msk [vmem:[%s7598_s26 + $0x30] sm:$0xff] %vm3844_vm0, %v7640_v32  ;;  %v5215_v45 = vadd.f32 %v3654_v31, %v2161_v54  ;;  %v4982_v53 = vpop.f32.mrb[16].mxu1 }
 0x249   : > { %v7649_v21 = vadd.f32 %v5214_v2, %v7593_v12  ;;  %v2473_v1 = vpop.f32.mrb[17].mxu1 }
 0x24a   : > { %v7652_v29 = vadd.f32 %v5215_v45, %v7593_v12  ;;  %v5173_v0 = vpop.f32.mrb[10].mxu0 }
 0x24b   : > { %3854 = vst.msk [vmem:[%s7598_s26 + $0x48] sm:$0xff] %vm3844_vm0, %v7649_v21  ;;  %v5216_v63 = vadd.f32 %v5173_v0, %v4923_v49  ;;  %v3664_v55 = vpop.f32.mrb[11].mxu0 }
 0x24c   : > { %3853 = vst.msk [vmem:[%s7598_s26 + $0x40] sm:$0xff] %vm3844_vm0, %v7652_v29  ;;  %v5217_v6 = vadd.f32 %v3664_v55, %v2171_v57  ;;  %v4985_v27 = vpop.f32.mrb[18].mxu1 }
 0x24d   : > { %v7661_v60 = vadd.f32 %v5216_v63, %v7593_v12  ;;  %v2483_v15 = vpop.f32.mrb[19].mxu1 }
 0x24e   : > { %v7664_v48 = vadd.f32 %v5217_v6, %v7593_v12  ;;  %v5176_v59 = vpop.f32.mrb[12].mxu0 }
 0x24f   : > { %3856 = vst.msk [vmem:[%s7598_s26 + $0x58] sm:$0xff] %vm3844_vm0, %v7661_v60  ;;  %v5218_v40 = vadd.f32 %v5176_v59, %v4926_v33  ;;  %v3674_v37 = vpop.f32.mrb[13].mxu0 }
 0x250   : > { %3855 = vst.msk [vmem:[%s7598_s26 + $0x50] sm:$0xff] %vm3844_vm0, %v7664_v48  ;;  %v5219_v58 = vadd.f32 %v3674_v37, %v7582_v51  ;;  %v4988_v23 = vpop.f32.mrb[20].mxu1 }
 0x251   : > { %v7674_v16 = vadd.f32 %v5218_v40, %v7593_v12  ;;  %v2493_v14 = vpop.f32.mrb[21].mxu1 }
 0x252   : > { %v7677_v35 = vadd.f32 %v5219_v58, %v7593_v12  ;;  %v5179_v4 = vpop.f32.mrb[14].mxu0 }
 0x253   : > { %3858 = vst.msk [vmem:[%s7598_s26 + $0x68] sm:$0xff] %vm3844_vm0, %v7674_v16  ;;  %v5220_v3 = vadd.f32 %v5179_v4, %v7584_v41  ;;  %v3684_v43 = vpop.f32.mrb[15].mxu0 }
 0x254   : > { %3857 = vst.msk [vmem:[%s7598_s26 + $0x60] sm:$0xff] %vm3844_vm0, %v7677_v35  ;;  %v5221_v22 = vadd.f32 %v3684_v43, %v7586_v11  ;;  %v4991_v62 = vpop.f32.mrb[22].mxu1 }
 0x255   : > { %v7688_v5 = vadd.f32 %v5220_v3, %v7593_v12  ;;  %v2503_v20 = vpop.f32.mrb[23].mxu1 }
 0x256   : > { %v7691_v8 = vadd.f32 %v5221_v22, %v7593_v12  ;;  %v5182_v54 = vpop.f32.mrb[16].mxu0 }
 0x257   : > { %3860 = vst.msk [vmem:[%s7598_s26 + $0x78] sm:$0xff] %vm3844_vm0, %v7688_v5  ;;  %v5222_v49 = vadd.f32 %v5182_v54, %v4982_v53  ;;  %v3694_v57 = vpop.f32.mrb[17].mxu0 }
 0x258   : > { %3859 = vst.msk [vmem:[%s7598_s26 + $0x70] sm:$0xff] %vm3844_vm0, %v7691_v8  ;;  %v5223_v33 = vadd.f32 %v3694_v57, %v2473_v1  ;;  %v4994_v51 = vpop.f32.mrb[24].mxu1 }
 0x259   : > { %v7700_v41 = vadd.f32 %v5222_v49, %v7593_v12  ;;  %v2513_v11 = vpop.f32.mrb[25].mxu1 }
 0x25a   : > { %v7703_v19 = vadd.f32 %v5223_v33, %v7593_v12  ;;  %v5185_v47 = vpop.f32.mrb[18].mxu0 }
 0x25b   : > { %3862 = vst.msk [vmem:[%s7598_s26 + $0x88] sm:$0xff] %vm3844_vm0, %v7700_v41  ;;  %v5224_v26 = vadd.f32 %v5185_v47, %v4985_v27  ;;  %v3704_v46 = vpop.f32.mrb[19].mxu0 }
 0x25c   : > { %3861 = vst.msk [vmem:[%s7598_s26 + $0x80] sm:$0xff] %vm3844_vm0, %v7703_v19  ;;  %v5225_v44 = vadd.f32 %v3704_v46, %v2483_v15  ;;  %v4997_v9 = vpop.f32.mrb[26].mxu1 }
 0x25d   : > { %v7712_v61 = vadd.f32 %v5224_v26, %v7593_v12  ;;  %v2523_v28 = vpop.f32.mrb[27].mxu1 }
 0x25e   : > { %v7715_v50 = vadd.f32 %v5225_v44, %v7593_v12  ;;  %v5188_v24 = vpop.f32.mrb[20].mxu0  ;;  %v5700_v44 = vmov (!%p4453_p4), 0.0  }
 0x25f   : > { %3864 = vst.msk [vmem:[%s7598_s26 + $0x98] sm:$0xff] %vm3844_vm0, %v7712_v61  ;;  %v5226_v42 = vadd.f32 %v5188_v24, %v4988_v23  ;;  %v3714_v30 = vpop.f32.mrb[21].mxu0 }
 0x260   : > { %3863 = vst.msk [vmem:[%s7598_s26 + $0x90] sm:$0xff] %vm3844_vm0, %v7715_v50  ;;  %v5227_v36 = vadd.f32 %v3714_v30, %v2493_v14  ;;  %v5000_v18 = vpop.f32.mrb[28].mxu1 }
 0x261   : > { %v7724_v13 = vadd.f32 %v5226_v42, %v7593_v12  ;;  %v2533_v34 = vpop.f32.mrb[29].mxu1  ;;  %3882 = vst.msk [vmem:[%s7985_s6] sm:$0x1] (!%p4453_p4), %vm3881_vm4, %v5700_v44  ;;  %3883 = vst.msk [vmem:[%s7986_s7] sm:$0x1] (!%p4453_p4), %vm3881_vm4, %v5700_v44 }
 0x262   : > { %v7727_v17 = vadd.f32 %v5227_v36, %v7593_v12  ;;  %v5191_v2 = vpop.f32.mrb[22].mxu0 }
 0x263   : > { %3866 = vst.msk [vmem:[%s7598_s26 + $0xa8] sm:$0xff] %vm3844_vm0, %v7724_v13  ;;  %v5228_v31 = vadd.f32 %v5191_v2, %v4991_v62  ;;  %v3724_v45 = vpop.f32.mrb[23].mxu0 }
 0x264   : > { %3865 = vst.msk [vmem:[%s7598_s26 + $0xa0] sm:$0xff] %vm3844_vm0, %v7727_v17  ;;  %v5229_v53 = vadd.f32 %v3724_v45, %v2503_v20  ;;  %v5003_v1 = vpop.f32.mrb[30].mxu1 }
 0x265   : > { %v7736_v0 = vadd.f32 %v5228_v31, %v7593_v12  ;;  %v2543_v63 = vpop.f32.mrb[31].mxu1 }
 0x266   : > { %v7739_v55 = vadd.f32 %v5229_v53, %v7593_v12  ;;  %v5194_v6 = vpop.f32.mrb[24].mxu0 }
 0x267   : > { %3868 = vst.msk [vmem:[%s7598_s26 + $0xb8] sm:$0xff] %vm3844_vm0, %v7736_v0  ;;  %v5230_v27 = vadd.f32 %v5194_v6, %v4994_v51  ;;  %v3734_v15 = vpop.f32.mrb[25].mxu0 }
 0x268   : > { %3867 = vst.msk [vmem:[%s7598_s26 + $0xb0] sm:$0xff] %vm3844_vm0, %v7739_v55  ;;  %v5231_v59 = vadd.f32 %v3734_v15, %v2513_v11 }
 0x269   : > { %v7748_v40 = vadd.f32 %v5230_v27, %v7593_v12 }
 0x26a   : > { %v7751_v37 = vadd.f32 %v5231_v59, %v7593_v12  ;;  %v5197_v58 = vpop.f32.mrb[26].mxu0 }
 0x26b   : > { %3870 = vst.msk [vmem:[%s7598_s26 + $0xc8] sm:$0xff] %vm3844_vm0, %v7748_v40  ;;  %v5232_v23 = vadd.f32 %v5197_v58, %v4997_v9  ;;  %v3744_v14 = vpop.f32.mrb[27].mxu0 }
 0x26c   : > { %3869 = vst.msk [vmem:[%s7598_s26 + $0xc0] sm:$0xff] %vm3844_vm0, %v7751_v37  ;;  %v5233_v4 = vadd.f32 %v3744_v14, %v2523_v28 }
 0x26d   : > { %v7760_v3 = vadd.f32 %v5232_v23, %v7593_v12 }
 0x26e   : > { %v7763_v43 = vadd.f32 %v5233_v4, %v7593_v12  ;;  %v5200_v22 = vpop.f32.mrb[28].mxu0 }
 0x26f   : > { %3872 = vst.msk [vmem:[%s7598_s26 + $0xd8] sm:$0xff] %vm3844_vm0, %v7760_v3  ;;  %v5234_v62 = vadd.f32 %v5200_v22, %v5000_v18  ;;  %v3754_v20 = vpop.f32.mrb[29].mxu0 }
 0x270   : > { %3871 = vst.msk [vmem:[%s7598_s26 + $0xd0] sm:$0xff] %vm3844_vm0, %v7763_v43  ;;  %v5235_v54 = vadd.f32 %v3754_v20, %v2533_v34 }
 0x271   : > { %v7772_v49 = vadd.f32 %v5234_v62, %v7593_v12 }
 0x272   : > { %v7775_v57 = vadd.f32 %v5235_v54, %v7593_v12  ;;  %v5203_v33 = vpop.f32.mrb[30].mxu0  ;;  %3880 = sbr.rel (%p4453_p4) target bundleno = 633 (0x279), region = 44 }
 0x273   : > { %3874 = vst.msk [vmem:[%s7598_s26 + $0xe8] sm:$0xff] %vm3844_vm0, %v7772_v49  ;;  %v5236_v51 = vadd.f32 %v5203_v33, %v5003_v1  ;;  %v3764_v11 = vpop.f32.mrb[31].mxu0 }
 0x274   : > { %3873 = vst.msk [vmem:[%s7598_s26 + $0xe0] sm:$0xff] %vm3844_vm0, %v7775_v57  ;;  %v5237_v47 = vadd.f32 %v3764_v11, %v2543_v63 }
 0x275   : > { %v7784_v26 = vadd.f32 %v5236_v51, %v7593_v12 }
 0x276   : > { %v7787_v46 = vadd.f32 %v5237_v47, %v7593_v12 }
 0x277   : > { %3876 = vst.msk [vmem:[%s7598_s26 + $0xf8] sm:$0xff] %vm3844_vm0, %v7784_v26 }
 0x278   : > { %3875 = vst.msk [vmem:[%s7598_s26 + $0xf0] sm:$0xff] %vm3844_vm0, %v7787_v46 }
 0x279 PF: > { %v3885_v12 = vsel %vm3844_vm0, %v7604_v25, 0.0  ;;  %v3886_v9 = vsel %vm3844_vm0, %v7601_v52, 0.0  ;;  %v3888_v28 = vsel %vm3844_vm0, %v7616_v38, 0.0  ;;  %v3890_v42 = vsel %vm3844_vm0, %v7613_v7, 0.0 }
 0x27a   : > { %v3887_v24 = vadd.f32 %v3886_v9, %v3885_v12  ;;  %v3892_v36 = vsel %vm3844_vm0, %v7628_v10, 0.0  ;;  %v3894_v34 = vsel %vm3844_vm0, %v7625_v56, 0.0  ;;  %v3896_v31 = vsel %vm3844_vm0, %v7640_v32, 0.0 }
 0x27b   : > { %v3898_v53 = vsel %vm3844_vm0, %v7637_v39, 0.0  ;;  %v3900_v63 = vsel %vm3844_vm0, %v7652_v29, 0.0  ;;  %v3902_v27 = vsel %vm3844_vm0, %v7649_v21, 0.0  ;;  %v3958_v15 = vmul.f32 %v7604_v25, %v7604_v25 }
 0x27c   : > { %v3889_v30 = vadd.f32 %v3888_v28, %v3887_v24  ;;  %v3959_v59 = vmul.f32 %v7601_v52, %v7601_v52  ;;  %v3960_v23 = vmul.f32 %v7616_v38, %v7616_v38  ;;  %v3904_v14 = vsel %vm3844_vm0, %v7664_v48, 0.0 }
 0x27d   : > { %v3961_v4 = vmul.f32 %v7613_v7, %v7613_v7  ;;  %v3906_v62 = vsel %vm3844_vm0, %v7661_v60, 0.0  ;;  %v3962_v25 = vmul.f32 %v7628_v10, %v7628_v10  ;;  %v3990_v20 = vsel %vm3844_vm0, %v3958_v15, 0.0 }
 0x27e   : > { %v3891_v18 = vadd.f32 %v3890_v42, %v3889_v30  ;;  %v3991_v52 = vsel %vm3844_vm0, %v3959_v59, 0.0  ;;  %v3993_v38 = vsel %vm3844_vm0, %v3960_v23, 0.0  ;;  %v3908_v51 = vsel %vm3844_vm0, %v7677_v35, 0.0 }
 0x27f   : > { %v3992_v33 = vadd.f32 %v3991_v52, %v3990_v20  ;;  %v3963_v7 = vmul.f32 %v7625_v56, %v7625_v56  ;;  %v3995_v11 = vsel %vm3844_vm0, %v3961_v4, 0.0  ;;  %v3910_v10 = vsel %vm3844_vm0, %v7674_v16, 0.0 }
 0x280   : > { %v3893_v2 = vadd.f32 %v3892_v36, %v3891_v18  ;;  %v3964_v12 = vmul.f32 %v7640_v32, %v7640_v32  ;;  %v3997_v9 = vsel %vm3844_vm0, %v3962_v25, 0.0  ;;  %v3912_v42 = vsel %vm3844_vm0, %v7691_v8, 0.0 }
 0x281   : > { %v3994_v44 = vadd.f32 %v3993_v38, %v3992_v33  ;;  %v3965_v56 = vmul.f32 %v7637_v39, %v7637_v39  ;;  %v3999_v30 = vsel %vm3844_vm0, %v3963_v7, 0.0  ;;  %v3966_v32 = vmul.f32 %v7652_v29, %v7652_v29 }
 0x282   : > { %v3895_v45 = vadd.f32 %v3894_v34, %v3893_v2  ;;  %v3914_v34 = vsel %vm3844_vm0, %v7688_v5, 0.0  ;;  %v4001_v2 = vsel %vm3844_vm0, %v3964_v12, 0.0  ;;  %v3967_v39 = vmul.f32 %v7649_v21, %v7649_v21 }
 0x283   : > { %v3996_v24 = vadd.f32 %v3995_v11, %v3994_v44  ;;  %v3968_v29 = vmul.f32 %v7664_v48, %v7664_v48  ;;  %v4005_v15 = vsel %vm3844_vm0, %v3966_v32, 0.0  ;;  %v3920_v23 = vsel %vm3844_vm0, %v7715_v50, 0.0 }
 0x284   : > { %v3897_v1 = vadd.f32 %v3896_v31, %v3895_v45  ;;  %v3969_v21 = vmul.f32 %v7661_v60, %v7661_v60  ;;  %v3970_v48 = vmul.f32 %v7677_v35, %v7677_v35  ;;  %v3971_v60 = vmul.f32 %v7674_v16, %v7674_v16 }
 0x285   : > { %v3998_v18 = vadd.f32 %v3997_v9, %v3996_v24  ;;  %v4009_v25 = vsel %vm3844_vm0, %v3968_v29, 0.0  ;;  %v3926_v7 = vsel %vm3844_vm0, %v7724_v13, 0.0  ;;  %v3972_v35 = vmul.f32 %v7691_v8, %v7691_v8 }
 0x286   : > { %v3899_v6 = vadd.f32 %v3898_v53, %v3897_v1  ;;  %v3916_v53 = vsel %vm3844_vm0, %v7703_v19, 0.0  ;;  %v4003_v1 = vsel %vm3844_vm0, %v3965_v56, 0.0  ;;  %v4011_v33 = vsel %vm3844_vm0, %v3969_v21, 0.0 }
 0x287   : > { %v4000_v45 = vadd.f32 %v3999_v30, %v3998_v18  ;;  %v4013_v11 = vsel %vm3844_vm0, %v3970_v48, 0.0  ;;  %v3973_v16 = vmul.f32 %v7688_v5, %v7688_v5  ;;  %v4015_v12 = vsel %vm3844_vm0, %v3971_v60, 0.0 }
 0x288   : > { %v3901_v58 = vadd.f32 %v3900_v63, %v3899_v6  ;;  %v3930_v24 = vsel %vm3844_vm0, %v7736_v0, 0.0  ;;  %v3974_v8 = vmul.f32 %v7703_v19, %v7703_v19  ;;  %v3975_v5 = vmul.f32 %v7700_v41, %v7700_v41 }
 0x289   : > { %v4002_v6 = vadd.f32 %v4001_v2, %v4000_v45  ;;  %v4019_v18 = vsel %vm3844_vm0, %v3973_v16, 0.0  ;;  %v3934_v2 = vsel %vm3844_vm0, %v7748_v40, 0.0  ;;  %v3976_v19 = vmul.f32 %v7715_v50, %v7715_v50 }
 0x28a   : > { %v3903_v22 = vadd.f32 %v3902_v27, %v3901_v58  ;;  %v3918_v27 = vsel %vm3844_vm0, %v7700_v41, 0.0  ;;  %v3977_v41 = vmul.f32 %v7712_v61, %v7712_v61  ;;  %v3978_v50 = vmul.f32 %v7727_v17, %v7727_v17 }
 0x28b   : > { %v4004_v58 = vadd.f32 %v4003_v1, %v4002_v6  ;;  %v4023_v1 = vsel %vm3844_vm0, %v3975_v5, 0.0  ;;  %v4025_v29 = vsel %vm3844_vm0, %v3976_v19, 0.0  ;;  %v3946_v60 = vsel %vm3844_vm0, %v7784_v26, 0.0 }
 0x28c   : > { %v3905_v54 = vadd.f32 %v3904_v14, %v3903_v22  ;;  %v4007_v14 = vsel %vm3844_vm0, %v3967_v39, 0.0  ;;  %v3936_v39 = vsel %vm3844_vm0, %v7763_v43, 0.0  ;;  %vm3955_vm8 = vcmask 57344  }
 0x28d   : > { %v4006_v22 = vadd.f32 %v4005_v15, %v4004_v58  ;;  %v3940_v58 = vsel %vm3844_vm0, %v7775_v57, 0.0 }
 0x28e   : > { %v3907_v47 = vadd.f32 %v3906_v62, %v3905_v54  ;;  %v3922_v62 = vsel %vm3844_vm0, %v7712_v61, 0.0  ;;  %v3924_v54 = vsel %vm3844_vm0, %v7727_v17, 0.0  ;;  %v3979_v61 = vmul.f32 %v7724_v13, %v7724_v13 }
 0x28f   : > { %v4008_v52 = vadd.f32 %v4007_v14, %v4006_v22  ;;  %v3980_v17 = vmul.f32 %v7739_v55, %v7739_v55  ;;  %v4029_v22 = vsel %vm3844_vm0, %v3978_v50, 0.0  ;;  %v3981_v13 = vmul.f32 %v7736_v0, %v7736_v0  ;;  %v3957_v50 = vld [vmem:[%s7986_s7] sm:$0x1] }
 0x290   : > { %v3909_v28 = vadd.f32 %v3908_v51, %v3907_v47 }
 0x291   : > { %v4010_v51 = vadd.f32 %v4009_v25, %v4008_v52  ;;  %v3944_v25 = vsel %vm3844_vm0, %v7787_v46, 0.0 }
 0x292   : > { %v3911_v36 = vadd.f32 %v3910_v10, %v3909_v28  ;;  %v3928_v10 = vsel %vm3844_vm0, %v7739_v55, 0.0  ;;  %v3982_v55 = vmul.f32 %v7751_v37, %v7751_v37 }
 0x293   : > { %v4012_v44 = vadd.f32 %v4011_v33, %v4010_v51  ;;  %v4033_v33 = vsel %vm3844_vm0, %v3980_v17, 0.0 }
 0x294   : > { %v3913_v31 = vadd.f32 %v3912_v42, %v3911_v36  ;;  %v4017_v42 = vsel %vm3844_vm0, %v3972_v35, 0.0  ;;  %v3932_v36 = vsel %vm3844_vm0, %v7751_v37, 0.0  ;;  %v4035_v35 = vsel %vm3844_vm0, %v3981_v13, 0.0 }
 0x295   : > { %v4014_v28 = vadd.f32 %v4013_v11, %v4012_v44  ;;  %v4037_v44 = vsel %vm3844_vm0, %v3982_v55, 0.0  ;;  %v3985_v37 = vmul.f32 %v7760_v3, %v7760_v3 }
 0x296   : > { %v3915_v63 = vadd.f32 %v3914_v34, %v3913_v31  ;;  %v4021_v31 = vsel %vm3844_vm0, %v3974_v8, 0.0 }
 0x297   : > { %v4016_v30 = vadd.f32 %v4015_v12, %v4014_v28 }
 0x298   : > { %v3917_v59 = vadd.f32 %v3916_v53, %v3915_v63 }
 0x299   : > { %v4018_v32 = vadd.f32 %v4017_v42, %v4016_v30 }
 0x29a   : > { %v3919_v4 = vadd.f32 %v3918_v27, %v3917_v59  ;;  %v3938_v27 = vsel %vm3844_vm0, %v7760_v3, 0.0  ;;  %v3988_v3 = vmul.f32 %v7787_v46, %v7787_v46 }
 0x29b   : > { %v4020_v53 = vadd.f32 %v4019_v18, %v4018_v32  ;;  %v3989_v32 = vmul.f32 %v7784_v26, %v7784_v26 }
 0x29c   : > { %v3921_v20 = vadd.f32 %v3920_v23, %v3919_v4  ;;  %v4027_v23 = vsel %vm3844_vm0, %v3977_v41, 0.0  ;;  %v3942_v4 = vsel %vm3844_vm0, %v7772_v49, 0.0 }
 0x29d   : > { %v4022_v6 = vadd.f32 %v4021_v31, %v4020_v53  ;;  %v4049_v31 = vsel %vm3844_vm0, %v3988_v3, 0.0  ;;  %v4051_v53 = vsel %vm3844_vm0, %v3989_v32, 0.0 }
 0x29e   : > { %v3923_v38 = vadd.f32 %v3922_v62, %v3921_v20  ;;  %v4031_v20 = vsel %vm3844_vm0, %v3979_v61, 0.0 }
 0x29f   : > { %v4024_v59 = vadd.f32 %v4023_v1, %v4022_v6 }
 0x2a0   : > { %v3925_v47 = vadd.f32 %v3924_v54, %v3923_v38 }
 0x2a1   : > { %v4026_v14 = vadd.f32 %v4025_v29, %v4024_v59 }
 0x2a2   : > { %v3927_v9 = vadd.f32 %v3926_v7, %v3925_v47  ;;  %v3983_v7 = vmul.f32 %v7748_v40, %v7748_v40  ;;  %v3984_v47 = vmul.f32 %v7763_v43, %v7763_v43  ;;  %v3986_v40 = vmul.f32 %v7775_v57, %v7775_v57  ;;  %v3884_v57 = vld [vmem:[%s7985_s6] sm:$0x1] }
 0x2a3   : > { %v4028_v48 = vadd.f32 %v4027_v23, %v4026_v14  ;;  %v3987_v43 = vmul.f32 %v7772_v49, %v7772_v49 }
 0x2a4   : > { %v3929_v56 = vadd.f32 %v3928_v10, %v3927_v9  ;;  %v4039_v12 = vsel %vm3844_vm0, %v3983_v7, 0.0  ;;  %v4045_v5 = vsel %vm3844_vm0, %v3986_v40, 0.0 }
 0x2a5   : > { %v4030_v54 = vadd.f32 %v4029_v22, %v4028_v48  ;;  %v4047_v49 = vsel %vm3844_vm0, %v3987_v43, 0.0 }
 0x2a6   : > { %v3931_v34 = vadd.f32 %v3930_v24, %v3929_v56  ;;  %v4041_v24 = vsel %vm3844_vm0, %v3984_v47, 0.0  ;;  %v4043_v56 = vsel %vm3844_vm0, %v3985_v37, 0.0 }
 0x2a7   : > { %v4032_v51 = vadd.f32 %v4031_v20, %v4030_v54 }
 0x2a8   : > { %v3933_v45 = vadd.f32 %v3932_v36, %v3931_v34 }
 0x2a9   : > { %v4034_v11 = vadd.f32 %v4033_v33, %v4032_v51 }
 0x2aa   : > { %v3935_v63 = vadd.f32 %v3934_v2, %v3933_v45 }
 0x2ab   : > { %v4036_v16 = vadd.f32 %v4035_v35, %v4034_v11 }
 0x2ac   : > { %v3937_v15 = vadd.f32 %v3936_v39, %v3935_v63 }
 0x2ad   : > { %v4038_v28 = vadd.f32 %v4037_v44, %v4036_v16 }
 0x2ae   : > { %v3939_v21 = vadd.f32 %v3938_v27, %v3937_v15 }
 0x2af   : > { %v4040_v42 = vadd.f32 %v4039_v12, %v4038_v28 }
 0x2b0   : > { %v3941_v62 = vadd.f32 %v3940_v58, %v3939_v21 }
 0x2b1   : > { %v4042_v36 = vadd.f32 %v4041_v24, %v4040_v42 }
 0x2b2   : > { %v3943_v52 = vadd.f32 %v3942_v4, %v3941_v62 }
 0x2b3   : > { %v4044_v34 = vadd.f32 %v4043_v56, %v4042_v36 }
 0x2b4   : > { %v3945_v38 = vadd.f32 %v3944_v25, %v3943_v52 }
 0x2b5   : > { %v4046_v19 = vadd.f32 %v4045_v5, %v4044_v34 }
 0x2b6   : > { %v3947_v0 = vadd.f32 %v3946_v60, %v3945_v38 }
 0x2b7   : > { %v4048_v46 = vadd.f32 %v4047_v49, %v4046_v19 }
 0x2b8   : > { %v3948_v10 = vrot.slane %v3947_v0, 4 }
 0x2b9   : > { %v4050_v39 = vadd.f32 %v4049_v31, %v4048_v46 }
 0x2ba   : > { %v3949_v9 = vadd.f32 %v3948_v10, %v3947_v0 }
 0x2bb   : > { %v4052_v41 = vadd.f32 %v4051_v53, %v4050_v39 }
 0x2bc   : > { %v3950_v8 = vrot.slane %v3949_v9, 2 }
 0x2bd   : > { %v4053_v1 = vrot.slane %v4052_v41, 4 }
 0x2be   : > { %v3951_v30 = vadd.f32 %v3950_v8, %v3949_v9 }
 0x2bf   : > { %v4054_v26 = vadd.f32 %v4053_v1, %v4052_v41 }
 0x2c0   : > { %v3952_v18 = vrot.slane %v3951_v30, 1 }
 0x2c1   : > { %v4055_v63 = vrot.slane %v4054_v26, 2 }
 0x2c2   : > { %v3953_v2 = vadd.f32 %v3952_v18, %v3951_v30 }
 0x2c3   : > { %v4056_v6 = vadd.f32 %v4055_v63, %v4054_v26 }
 0x2c4   : > { %v3954_v45 = vadd.f32 %v3953_v2, %v3884_v57 }
 0x2c5   : > { %v4057_v27 = vrot.slane %v4056_v6, 1 }
 0x2c6   : > { %3956 = vst.msk [vmem:[%s7985_s6] sm:$0x1] %vm3955_vm8, %v3954_v45 }
 0x2c7   : > { %v4058_v29 = vadd.f32 %v4057_v27, %v4056_v6 }
 0x2c9   : > { %v4059_v15 = vadd.f32 %v4058_v29, %v3957_v50 }
 0x2cb   : > { %4060 = vst.msk [vmem:[%s7986_s7] sm:$0x1] %vm3955_vm8, %v4059_v15 }
 0x2cc PF: > { %s18_s24 = sadd.s32 1, %s5698_s24  }
 0x2cd   : > { %p15_p5 = scmp.ge.s32.totalorder %s18_s24, 4  }
 0x2cf   :  { %17 = sbr.rel (!%p15_p5) target bundleno = 1 (0x1), region = 101 }

// kernel: double_conv_forward.3
= control target key start
LH: loop header
LB: loop body
LE: loop exit
PB: predicated region body
PF: predicated region fallthrough
CT: control target
= control target key end

     0   :  { %s6058_s24 = smov 0   ;;  %s8008_s0 = inlined_call_operand.vmem [shape: f32[2,18,18,8], index: 0, kind: input, shape index: {}]   ;;  %s8009_s1 = inlined_call_operand.vmem [shape: f32[1,1,1,8], index: 1, kind: input, shape index: {}]   ;;  %s8010_s2 = inlined_call_operand.vmem [shape: f32[1,1,1,8], index: 2, kind: input, shape index: {}]   ;;  %s8011_s3 = inlined_call_operand.vmem [shape: f32[9,8,8], index: 3, kind: input, shape index: {}]   ;;  %s8012_s4 = inlined_call_operand.vmem [shape: f32[1,1,1,8], index: 4, kind: input, shape index: {}]   ;;  %s8013_s5 = inlined_call_operand.vmem [shape: f32[2,16,16,4], index: 5, kind: input, shape index: {}]   ;;  %s8014_s6 = inlined_call_operand.vmem [shape: f32[4,8], index: 6, kind: input, shape index: {}]   ;;  %s8015_s7 = inlined_call_operand.vmem [shape: f32[2,16,16,8], index: 7, kind: output, shape index: {}]  }
   0x1 LB: > { %s4317_s25 = sadd.s32 4294967295, %s6016_s24   ;;  %p4321_p0 = scmp.ge.s32.totalorder %s6016_s24, 1  ;;  %s6016_s24 = sphi %s6058_s24, %s17_s24  }
   0x2   : > { %p247_p1 = scmp.lt.s32.totalorder %s6016_s24, 3 }
   0x4   : > { %p248_p2 = pnand %p4321_p0, %p247_p1 }
   0x6   : > { %251 = sbr.rel (%p248_p2) target bundleno = 684 (0x2ac), region = 48 }
   0xd   : > { %v1102_v0 = vld [vmem:[%s8011_s3] sm:$0xff]  ;;  %p284_p3 = scmp.lt.s32.totalorder %s4317_s25, 1  ;;  %vm1522_vm0 = vcmask 1043456   ;;  %v6082_v3 = vld [vmem:[%s8011_s3 + $0x38] sm:$0xff]  ;;  %vm1103_vm4 = vcmask 64512   ;;  %vm2297_vm10 = vcmask 1046528  }
   0xe   : > { %4993 = vmatprep.subr.mxu1 %v1102_v0  ;;  %v4493_v1 = vld [vmem:[%s8011_s3 + $0x20] sm:$0xff] }
   0xf   : > { %v6075_v2 = vld [vmem:[%s8014_s6] sm:$0xf]  ;;  %4994 = vmatpush3.msra.mxu1 %v1102_v0  ;;  %s8267_s25 = smov (!%p284_p3, %s4317_s25), 1  ;;  %5243 = vmatprep.subr.mxu0 %v4493_v1 }
  0x10   : > { %5244 = vmatpush3.msra.mxu0 %v4493_v1  ;;  %5043 = vmatprep.subr.msk.mxu1 %vm1522_vm0, %v6075_v2  ;;  %s5781_s11 = smul.u32 432, %s8267_s25  ;;  %v6091_v4 = vld [vmem:[%s8009_s1] ss:$0 sm:$0xff]  ;;  %s4661_s29 = sshll.u32 %s8267_s25, 8 }
  0x11   : > { %5293 = vmatprep.subr.mxu0 %v6082_v3  ;;  %v6101_v5 = vld [vmem:[%s8010_s2] ss:$0 sm:$0xff]  ;;  %s7098_s9 = scalar_lea.vmem %s8013_s5, %s4661_s29  ;;  %s7907_s28 = scalar_lea.vmem %s8015_s7, %s4661_s29 }
  0x12   : > { %s6096_s16 = scalar_lea.vmem %s8008_s0, %s5781_s11 }
  0x13   : > { %v299_v6 = vld [vmem:[%s6096_s16] sm:$0xff]  ;;  %v300_v7 = vld [vmem:[%s6096_s16 + $0x8] sm:$0xff]  ;;  %v302_v8 = vld [vmem:[%s6096_s16 + $0x18] sm:$0xff] }
  0x14   : > { %v360_v9 = vmul.f32 %v6091_v4, %v299_v6  ;;  %v361_v10 = vmul.f32 %v6091_v4, %v300_v7  ;;  %v303_v11 = vld [vmem:[%s6096_s16 + $0x20] sm:$0xff]  ;;  %v363_v12 = vmul.f32 %v6091_v4, %v302_v8  ;;  %v304_v13 = vld [vmem:[%s6096_s16 + $0x28] sm:$0x3]  ;;  %v305_v14 = vld [vmem:[%s6096_s16 + $0x30] sm:$0xff] }
  0x15   : > { %v364_v15 = vmul.f32 %v6091_v4, %v303_v11  ;;  %v365_v16 = vmul.f32 %v6091_v4, %v304_v13  ;;  %v306_v17 = vld [vmem:[%s6096_s16 + $0x38] sm:$0xff]  ;;  %v366_v18 = vmul.f32 %v6091_v4, %v305_v14  ;;  %v307_v22 = vld [vmem:[%s6096_s16 + $0x40] sm:$0x3]  ;;  %v308_v39 = vld [vmem:[%s6096_s16 + $0x48] sm:$0xff] }
  0x16   : > { %v6117_v19 = vadd.f32 %v6101_v5, %v360_v9  ;;  %v6120_v20 = vadd.f32 %v6101_v5, %v361_v10  ;;  %v6123_v21 = vadd.f32 %v6101_v5, %v363_v12  ;;  %v367_v25 = vmul.f32 %v6091_v4, %v306_v17  ;;  %v309_v43 = vld [vmem:[%s6096_s16 + $0x50] sm:$0xff]  ;;  %v310_v50 = vld [vmem:[%s6096_s16 + $0x58] sm:$0x3]  ;;  %v311_v53 = vld [vmem:[%s6096_s16 + $0x60] sm:$0xff] }
  0x17   : > { %v6127_v23 = vadd.f32 %v6101_v5, %v364_v15  ;;  %v6130_v24 = vadd.f32 %v6101_v5, %v365_v16  ;;  %v6134_v26 = vadd.f32 %v6101_v5, %v366_v18  ;;  %v368_v31 = vmul.f32 %v6091_v4, %v307_v22  ;;  %v312_v57 = vld [vmem:[%s6096_s16 + $0x68] sm:$0xff]  ;;  %v313_v9 = vld [vmem:[%s6096_s16 + $0x70] sm:$0x3]  ;;  %v314_v10 = vld [vmem:[%s6096_s16 + $0x78] sm:$0xff] }
  0x18   : > { %v475_v27 = vand.u32 2147483647, %v6117_v19  ;;  %v476_v28 = vand.u32 2147483647, %v6120_v20  ;;  %v478_v29 = vand.u32 2147483647, %v6123_v21  ;;  %v6143_v37 = vadd.f32 %v6101_v5, %v367_v25 }
  0x19   : > { %v479_v30 = vand.u32 2147483647, %v6127_v23  ;;  %v480_v34 = vand.u32 2147483647, %v6130_v24  ;;  %v481_v38 = vand.u32 2147483647, %v6134_v26  ;;  %v6150_v47 = vadd.f32 %v6101_v5, %v368_v31 }
  0x1a   : > { %v529_v32 = vsub.f32 0.0, %v475_v27  ;;  %v530_v33 = vsub.f32 0.0, %v476_v28  ;;  %v532_v35 = vsub.f32 0.0, %v478_v29  ;;  %v482_v46 = vand.u32 2147483647, %v6143_v37  ;;  %v315_v17 = vld [vmem:[%s6096_s16 + $0x80] sm:$0xff] }
  0x1b   : > { %v533_v36 = vsub.f32 0.0, %v479_v30  ;;  %v534_v42 = vsub.f32 0.0, %v480_v34  ;;  %v535_v49 = vsub.f32 0.0, %v481_v38  ;;  %v483_v52 = vand.u32 2147483647, %v6150_v47 }
  0x1c   : > { %v583_v40 = vmul.f32 1.442695, %v529_v32  ;;  %v585_v41 = vmul.f32 1.442695, %v530_v33  ;;  %v589_v44 = vmul.f32 1.442695, %v532_v35  ;;  %v369_v55 = vmul.f32 %v6091_v4, %v308_v39 }
  0x1d   : > { %v591_v45 = vmul.f32 1.442695, %v533_v36  ;;  %v593_v48 = vmul.f32 1.442695, %v534_v42  ;;  %v536_v51 = vsub.f32 0.0, %v482_v46  ;;  %v370_v56 = vmul.f32 %v6091_v4, %v309_v43 }
  0x1e   : > { %5790 = vpow2.f32 %v583_v40  ;;  %v595_v54 = vmul.f32 1.442695, %v535_v49  ;;  %v537_v59 = vsub.f32 0.0, %v483_v52  ;;  %v371_v60 = vmul.f32 %v6091_v4, %v310_v50  ;;  %v316_v40 = vld [vmem:[%s6096_s16 + $0x88] sm:$0x3] }
  0x1f   : > { %5792 = vpow2.f32 %v585_v41  ;;  %v597_v58 = vmul.f32 1.442695, %v536_v51  ;;  %v6160_v61 = vadd.f32 %v6101_v5, %v369_v55  ;;  %v6163_v62 = vadd.f32 %v6101_v5, %v370_v56 }
  0x20   : > { %5794 = vpow2.f32 %v589_v44  ;;  %v372_v63 = vmul.f32 %v6091_v4, %v311_v53  ;;  %v599_v0 = vmul.f32 1.442695, %v537_v59  ;;  %v6167_v1 = vadd.f32 %v6101_v5, %v371_v60  ;;  %v319_v59 = vld [vmem:[%s6096_s16 + $0xa0] sm:$0x3] }
  0x21   : > { %5796 = vpow2.f32 %v591_v45  ;;  %v373_v6 = vmul.f32 %v6091_v4, %v312_v57  ;;  %v484_v7 = vand.u32 2147483647, %v6160_v61  ;;  %v485_v8 = vand.u32 2147483647, %v6163_v62 }
  0x22   : > { %5798 = vpow2.f32 %v593_v48  ;;  %v486_v12 = vand.u32 2147483647, %v6167_v1  ;;  %v6176_v13 = vadd.f32 %v6101_v5, %v372_v63  ;;  %v374_v16 = vmul.f32 %v6091_v4, %v313_v9 }
  0x23   : > { %5800 = vpow2.f32 %v595_v54  ;;  %v538_v11 = vsub.f32 0.0, %v484_v7  ;;  %v6179_v14 = vadd.f32 %v6101_v5, %v373_v6  ;;  %v539_v15 = vsub.f32 0.0, %v485_v8  ;;  %v317_v54 = vld [vmem:[%s6096_s16 + $0x90] sm:$0xff]  ;;  %v318_v6 = vld [vmem:[%s6096_s16 + $0x98] sm:$0xff] }
  0x24   : > { %5802 = vpow2.f32 %v597_v58  ;;  %v487_v25 = vand.u32 2147483647, %v6176_v13  ;;  %v375_v27 = vmul.f32 %v6091_v4, %v314_v10  ;;  %v540_v33 = vsub.f32 0.0, %v486_v12 }
  0x25   : > { %5804 = vpow2.f32 %v599_v0  ;;  %v601_v22 = vmul.f32 1.442695, %v538_v11  ;;  %v488_v30 = vand.u32 2147483647, %v6179_v14  ;;  %v376_v34 = vmul.f32 %v6091_v4, %v315_v17 }
  0x26   : > { %v603_v38 = vmul.f32 1.442695, %v539_v15  ;;  %v6199_v39 = vadd.f32 %v6101_v5, %v374_v16  ;;  %v541_v43 = vsub.f32 0.0, %v487_v25  ;;  %v6206_v44 = vadd.f32 %v6101_v5, %v375_v27 }
  0x27   : > { %5806 = vpow2.f32 %v601_v22  ;;  %vm853_vm1 = vcmp.ge.f32.partialorder %v6117_v19, 0.0  ;;  %v542_v48 = vsub.f32 0.0, %v488_v30  ;;  %vm854_vm2 = vcmp.ge.f32.partialorder %v6120_v20, 0.0 }
  0x28   : > { %v6183_v18 = vpop.eup %5790  ;;  %v489_v49 = vand.u32 2147483647, %v6199_v39  ;;  %v6218_v52 = vadd.f32 %v6101_v5, %v376_v34  ;;  %v377_v53 = vmul.f32 %v6091_v4, %v316_v40  ;;  %vm856_vm3 = vcmp.ge.f32.partialorder %v6123_v21, 0.0 }
  0x29   : > { %v6187_v28 = vpop.eup %5792  ;;  %v691_v29 = vadd.f32 1.0, %v6183_v18  ;;  %v490_v58 = vand.u32 2147483647, %v6206_v44  ;;  %vm857_vm5 = vcmp.ge.f32.partialorder %v6127_v23, 0.0  ;;  %v605_v63 = vmul.f32 1.442695, %v540_v33 }
  0x2a   : > { %v6191_v31 = vpop.eup %5794  ;;  %v692_v32 = vadd.f32 1.0, %v6187_v28  ;;  %v543_v57 = vsub.f32 0.0, %v489_v49  ;;  %v491_v0 = vand.u32 2147483647, %v6218_v52  ;;  %vm858_vm6 = vcmp.ge.f32.partialorder %v6130_v24, 0.0 }
  0x2b   : > { %v6195_v35 = vpop.eup %5796  ;;  %5808 = vrcp.f32 %v691_v29  ;;  %v694_v36 = vadd.f32 1.0, %v6191_v31  ;;  %v607_v7 = vmul.f32 1.442695, %v541_v43  ;;  %v609_v8 = vmul.f32 1.442695, %v542_v48 }
  0x2c   : > { %v6202_v41 = vpop.eup %5798  ;;  %5810 = vrcp.f32 %v692_v32  ;;  %v695_v42 = vadd.f32 1.0, %v6195_v35  ;;  %v544_v9 = vsub.f32 0.0, %v490_v58  ;;  %vm859_vm7 = vcmp.ge.f32.partialorder %v6134_v26, 0.0 }
  0x2d   : > { %v6208_v45 = vpop.eup %5800  ;;  %5812 = vrcp.f32 %v694_v36  ;;  %v696_v46 = vadd.f32 1.0, %v6202_v41  ;;  %v545_v10 = vsub.f32 0.0, %v491_v0  ;;  %v6235_v11 = vadd.f32 %v6101_v5, %v377_v53 }
  0x2e   : > { %v6213_v50 = vpop.eup %5802  ;;  %5814 = vrcp.f32 %v695_v42  ;;  %v697_v51 = vadd.f32 1.0, %v6208_v45  ;;  %v378_v12 = vmul.f32 %v6091_v4, %v317_v54  ;;  %vm860_vm8 = vcmp.ge.f32.partialorder %v6143_v37, 0.0 }
  0x2f   : > { %v6222_v55 = vpop.eup %5804  ;;  %5816 = vrcp.f32 %v696_v46  ;;  %v698_v56 = vadd.f32 1.0, %v6213_v50  ;;  %v611_v15 = vmul.f32 1.442695, %v543_v57  ;;  %v379_v16 = vmul.f32 %v6091_v4, %v318_v6 }
  0x30   : > { %5818 = vrcp.f32 %v697_v51  ;;  %v699_v60 = vadd.f32 1.0, %v6222_v55  ;;  %vm861_vm9 = vcmp.ge.f32.partialorder %v6150_v47, 0.0  ;;  %v613_v22 = vmul.f32 1.442695, %v544_v9 }
  0x31   : > { %5820 = vrcp.f32 %v698_v56  ;;  %v6240_v17 = vpop.eup %5806  ;;  %v492_v25 = vand.u32 2147483647, %v6235_v11  ;;  %v6245_v27 = vmul.f32 %v6091_v4, %v319_v59  ;;  %v6249_v32 = vadd.f32 %v6101_v5, %v378_v12 }
  0x32   : > { %5822 = vrcp.f32 %v699_v60  ;;  %v700_v30 = vadd.f32 1.0, %v6240_v17  ;;  %v6252_v33 = vadd.f32 %v6101_v5, %v379_v16  ;;  %vm862_vm11 = vcmp.ge.f32.partialorder %v6160_v61, 0.0 }
  0x33   : > { %5824 = vpow2.f32 %v603_v38  ;;  %v615_v38 = vmul.f32 1.442695, %v545_v10  ;;  %v546_v40 = vsub.f32 0.0, %v492_v25  ;;  %v493_v46 = vand.u32 2147483647, %v6249_v32 }
  0x34   : > { %5826 = vpow2.f32 %v605_v63  ;;  %v494_v48 = vand.u32 2147483647, %v6252_v33  ;;  %vm863_vm12 = vcmp.ge.f32.partialorder %v6163_v62, 0.0  ;;  %vm864_vm13 = vcmp.ge.f32.partialorder %v6167_v1, 0.0 }
  0x35   : > { %v5809_v29 = vpop.eup %5808  ;;  %5828 = vpow2.f32 %v607_v7  ;;  %v617_v54 = vmul.f32 1.442695, %v546_v40  ;;  %vm865_vm14 = vcmp.ge.f32.partialorder %v6176_v13, 0.0  ;;  %vm866_vm15 = vcmp.ge.f32.partialorder %v6179_v14, 0.0 }
  0x36   : > { %v5811_v34 = vpop.eup %5810  ;;  %v907_v36 = vmul.f32 %v5809_v29, %v6183_v18  ;;  %5830 = vpow2.f32 %v609_v8  ;;  %v547_v8 = vsub.f32 0.0, %v493_v46 }
  0x37   : > { %v5813_v42 = vpop.eup %5812  ;;  %v908_v43 = vmul.f32 %v5811_v34, %v6187_v28  ;;  %5832 = vrcp.f32 %v700_v30 }
  0x38   : > { %v5815_v49 = vpop.eup %5814  ;;  %v961_v51 = vsel %vm853_vm1, %v5809_v29, %v907_v36  ;;  %v910_v53 = vmul.f32 %v5813_v42, %v6191_v31  ;;  %5834 = vpow2.f32 %v611_v15  ;;  %vm868_vm1 = vcmp.ge.f32.partialorder %v6206_v44, 0.0 }
  0x39   : > { %v5817_v18 = vpop.eup %5816  ;;  %v6262_v56 = vmul.f32 %v961_v51, %v6117_v19  ;;  %v962_v28 = vsel %vm854_vm2, %v5811_v34, %v908_v43  ;;  %v911_v57 = vmul.f32 %v5815_v49, %v6195_v35  ;;  %5836 = vpow2.f32 %v613_v22 }
  0x3a   : > { %v5819_v58 = vpop.eup %5818  ;;  %v6269_v59 = vmul.f32 %v962_v28, %v6120_v20  ;;  %v964_v31 = vsel %vm856_vm3, %v5813_v42, %v910_v53  ;;  %v912_v60 = vmul.f32 %v5817_v18, %v6202_v41  ;;  %5838 = vpow2.f32 %v615_v38 }
  0x3b   : > { %8118 = vst [vmem:[#allocation2_spill] sm:$0xff] %v6262_v56  ;;  %v5821_v19 = vpop.eup %5820  ;;  %4995 = vmatprep.mubr.msk.f32.mxu1 %vm1103_vm4, %v6262_v56  ;;  %v965_v35 = vsel %vm857_vm5, %v5815_v49, %v911_v57  ;;  %v6279_v63 = vmul.f32 %v964_v31, %v6123_v21  ;;  %v913_v0 = vmul.f32 %v5819_v58, %v6208_v45  ;;  %5840 = vpow2.f32 %v617_v54  ;;  %v320_v57 = vld [vmem:[%s6096_s16 + $0xa8] sm:$0xff] }
  0x3c   : > { %8119 = vst [vmem:[#allocation3_spill] sm:$0xff] %v6269_v59  ;;  %v5823_v20 = vpop.eup %5822  ;;  %4996 = vmatmul.mubr.msk.f32.vlgmr.msra.gmra.mrb[0].mxu1 %vm1103_vm4, %v6269_v59  ;;  %v6285_v41 = vmul.f32 %v965_v35, %v6127_v23  ;;  %v966_v6 = vsel %vm858_vm6, %v5817_v18, %v912_v60  ;;  %v914_v7 = vmul.f32 %v5821_v19, %v6213_v50  ;;  %v548_v51 = vsub.f32 0.0, %v494_v48  ;;  %v321_v35 = vld [vmem:[%s6096_s16 + $0xb0] sm:$0xff] }
  0x3d   : > { %v6290_v9 = vpop.eup %5824  ;;  %v2303_v21 = vrot.slane %v6279_v63, 1  ;;  %4998 = vmatprep.mubr.msk.f32.mxu1 %vm1103_vm4, %v6279_v63  ;;  %5044 = vmatpush3.msk.msra.mxu1 %vm1522_vm0, %v6075_v2  ;;  %v6298_v45 = vmul.f32 %v966_v6, %v6130_v24  ;;  %v967_v23 = vsel %vm859_vm7, %v5819_v58, %v913_v0  ;;  %v915_v10 = vmul.f32 %v5823_v20, %v6222_v55  ;;  %v322_v0 = vld [vmem:[%s6096_s16 + $0xb8] sm:$0x3] }
  0x3e   : > { %v6303_v50 = vpop.eup %5826  ;;  %v2304_v12 = vrot.slane %v6285_v41, 1  ;;  %v968_v15 = vsel %vm860_vm8, %v5821_v19, %v914_v7  ;;  %v6309_v16 = vmul.f32 %v967_v23, %v6134_v26  ;;  %v701_v2 = vadd.f32 1.0, %v6290_v9  ;;  %v323_v7 = vld [vmem:[%s6096_s16 + $0xc0] sm:$0xff] }
  0x3f   : > { %8120 = vst [vmem:[#allocation4_spill] sm:$0xff] %v6298_v45  ;;  %v6312_v22 = vpop.eup %5828  ;;  %v2306_v24 = vrot.slane %v6298_v45, 1  ;;  %v6316_v25 = vmul.f32 %v968_v15, %v6143_v37  ;;  %v969_v55 = vsel %vm861_vm9, %v5823_v20, %v915_v10  ;;  %v702_v29 = vadd.f32 1.0, %v6303_v50 }
  0x40   : > { %8121 = vst [vmem:[#allocation5_spill] sm:$0xff] %v6309_v16  ;;  %v6321_v30 = vpop.eup %5830  ;;  %v6324_v34 = vsel %vm2297_vm10, %v2303_v21, %v2304_v12  ;;  %4999 = vmatmul.mubr.msk.f32.gmra.mrb[2].mxu1 %vm1103_vm4, %v6285_v41  ;;  %v2308_v26 = vrot.slane %v6309_v16, 1  ;;  %v6330_v36 = vmul.f32 %v969_v55, %v6150_v47  ;;  %5842 = vrcp.f32 %v701_v2  ;;  %v324_v21 = vld [vmem:[%s6096_s16 + $0xc8] sm:$0xff] }
  0x41   : > { %8122 = vst [vmem:[#allocation6_spill] sm:$0xff] %v6316_v25  ;;  %8123 = vst [vmem:[#allocation7_spill] sm:$0xff] %v6324_v34  ;;  %v5833_v37 = vpop.eup %5832  ;;  %5245 = vmatprep.mubr.msk.f32.mxu0 %vm1103_vm4, %v6324_v34  ;;  %v6335_v38 = vsel %vm2297_vm10, %v2304_v12, %v2306_v24  ;;  %v2309_v40 = vrot.slane %v6316_v25, 1  ;;  %5001 = vmatprep.mubr.msk.f32.mxu1 %vm1103_vm4, %v6309_v16  ;;  %5844 = vrcp.f32 %v702_v29  ;;  %v703_v42 = vadd.f32 1.0, %v6312_v22 }
  0x42   : > { %8124 = vst [vmem:[#allocation8_spill] sm:$0xff] %v6330_v36  ;;  %8125 = vst [vmem:[#allocation9_spill] sm:$0xff] %v6335_v38  ;;  %v6341_v43 = vpop.eup %5834  ;;  %5246 = vmatmul.mubr.msk.f32.vlgmr.msra.gmra.mrb[0].mxu0 %vm1103_vm4, %v6335_v38  ;;  %v2311_v47 = vrot.slane %v6330_v36, 1  ;;  %v916_v46 = vmul.f32 %v5833_v37, %v6240_v17  ;;  %v704_v49 = vadd.f32 1.0, %v6321_v30  ;;  %v6361_v17 = vadd.f32 %v6101_v5, %v6245_v27 }
  0x43   : > { %v6351_v53 = vpop.eup %5836  ;;  %5294 = vmatpush3.msra.mxu0 %v6082_v3  ;;  %v6355_v54 = vsel %vm2297_vm10, %v2308_v26, %v2309_v40  ;;  %5846 = vrcp.f32 %v703_v42  ;;  %v705_v18 = vadd.f32 1.0, %v6341_v43  ;;  %v619_v19 = vmul.f32 1.442695, %v547_v8 }
  0x44   : > { %8126 = vst [vmem:[#allocation10_spill] sm:$0xff] %v6355_v54  ;;  %v6363_v28 = vpop.eup %5838  ;;  %5248 = vmatprep.mubr.msk.f32.mxu0 %vm1103_vm4, %v6355_v54  ;;  %v6368_v3 = vsel %vm2297_vm10, %v2309_v40, %v2311_v47  ;;  %5002 = vmatmul.mubr.msk.f32.gmra.mrb[4].mxu1 %vm1103_vm4, %v6316_v25  ;;  %v970_v48 = vsel %vm862_vm11, %v5833_v37, %v916_v46  ;;  %5848 = vrcp.f32 %v704_v49  ;;  %v706_v27 = vadd.f32 1.0, %v6351_v53 }
  0x45   : > { %8127 = vst [vmem:[#allocation11_spill] sm:$0xff] %v6368_v3  ;;  %v6376_v58 = vpop.eup %5840  ;;  %v6379_v31 = vmul.f32 %v970_v48, %v6160_v61  ;;  %5850 = vrcp.f32 %v705_v18  ;;  %v707_v60 = vadd.f32 1.0, %v6363_v28  ;;  %v621_v6 = vmul.f32 1.442695, %v548_v51 }
  0x46   : > { %5249 = vmatmul.mubr.msk.f32.gmra.mrb[2].mxu0 %vm1103_vm4, %v6368_v3  ;;  %5852 = vrcp.f32 %v706_v27  ;;  %v708_v20 = vadd.f32 1.0, %v6376_v58  ;;  %vm867_vm0 = vcmp.ge.f32.partialorder %v6199_v39, 0.0  ;;  %v495_v61 = vand.u32 2147483647, %v6361_v17 }
  0x47   : > { %8128 = vst [vmem:[#allocation12_spill] sm:$0xff] %v6379_v31  ;;  %5004 = vmatprep.mubr.msk.f32.mxu1 %vm1103_vm4, %v6379_v31  ;;  %5854 = vrcp.f32 %v707_v60  ;;  %v381_v8 = vmul.f32 %v6091_v4, %v320_v57  ;;  %v382_v23 = vmul.f32 %v6091_v4, %v321_v35  ;;  %v383_v10 = vmul.f32 %v6091_v4, %v322_v0 }
  0x48   : > { %5856 = vrcp.f32 %v708_v20  ;;  %vm869_vm2 = vcmp.ge.f32.partialorder %v6218_v52, 0.0  ;;  %v549_v12 = vsub.f32 0.0, %v495_v61  ;;  %v384_v15 = vmul.f32 %v6091_v4, %v323_v7 }
  0x49   : > { %5858 = vpow2.f32 %v619_v19  ;;  %v385_v2 = vmul.f32 %v6091_v4, %v324_v21  ;;  %v6403_v55 = vadd.f32 %v6101_v5, %v381_v8  ;;  %v6406_v29 = vadd.f32 %v6101_v5, %v382_v23 }
  0x4a   : > { %v5843_v24 = vpop.eup %5842  ;;  %5860 = vpow2.f32 %v621_v6  ;;  %v6409_v26 = vadd.f32 %v6101_v5, %v383_v10  ;;  %v2313_v42 = vrot.slane %v6379_v31, 1  ;;  %vm870_vm3 = vcmp.ge.f32.partialorder %v6235_v11, 0.0 }
  0x4b   : > { %v5845_v37 = vpop.eup %5844  ;;  %v917_v40 = vmul.f32 %v5843_v24, %v6290_v9  ;;  %v623_v47 = vmul.f32 1.442695, %v549_v12  ;;  %v496_v49 = vand.u32 2147483647, %v6403_v55  ;;  %v497_v51 = vand.u32 2147483647, %v6406_v29 }
  0x4c   : > { %v918_v46 = vmul.f32 %v5845_v37, %v6303_v50  ;;  %v6418_v18 = vadd.f32 %v6101_v5, %v384_v15  ;;  %v498_v9 = vand.u32 2147483647, %v6409_v26  ;;  %v6424_v57 = vadd.f32 %v6101_v5, %v385_v2 }
  0x4d   : > { %v5847_v48 = vpop.eup %5846  ;;  %v971_v27 = vsel %vm863_vm12, %v5843_v24, %v917_v40  ;;  %5862 = vpow2.f32 %v623_v47  ;;  %v550_v0 = vsub.f32 0.0, %v496_v49  ;;  %v551_v21 = vsub.f32 0.0, %v497_v51  ;;  %v4559_v49 = vld [vmem:[%s8011_s3 + $0x10] sm:$0xff] }
  0x4e   : > { %v5849_v60 = vpop.eup %5848  ;;  %v6427_v50 = vmul.f32 %v971_v27, %v6163_v62  ;;  %v972_v19 = vsel %vm864_vm13, %v5845_v37, %v918_v46  ;;  %v919_v35 = vmul.f32 %v5847_v48, %v6312_v22  ;;  %v552_v61 = vsub.f32 0.0, %v498_v9  ;;  %v4394_v46 = vld [vmem:[%s8011_s3 + $0x18] sm:$0xff]  ;;  %5343 = vmatprep.subr.mxu0 %v4559_v49 }
  0x4f   : > { %v5851_v20 = vpop.eup %5850  ;;  %v6433_v6 = vmul.f32 %v972_v19, %v6167_v1  ;;  %v920_v7 = vmul.f32 %v5849_v60, %v6321_v30  ;;  %v625_v10 = vmul.f32 1.442695, %v550_v0  ;;  %5093 = vmatprep.subr.mxu1 %v4394_v46  ;;  %vm871_vm5 = vcmp.ge.f32.partialorder %v6249_v32, 0.0 }
  0x50   : > { %8129 = vst [vmem:[#allocation13_spill] sm:$0xff] %v6427_v50  ;;  %v5853_v8 = vpop.eup %5852  ;;  %v2314_v23 = vrot.slane %v6427_v50, 1  ;;  %5005 = vmatmul.mubr.msk.f32.gmra.mrb[6].mxu1 %vm1103_vm4, %v6427_v50  ;;  %v973_v62 = vsel %vm865_vm14, %v5847_v48, %v919_v35  ;;  %v921_v22 = vmul.f32 %v5851_v20, %v6341_v43  ;;  %vm872_vm6 = vcmp.ge.f32.partialorder %v6252_v33, 0.0 }
  0x51   : > { %8130 = vst [vmem:[#allocation14_spill] sm:$0xff] %v6433_v6  ;;  %v5855_v12 = vpop.eup %5854  ;;  %v2316_v1 = vrot.slane %v6433_v6, 1  ;;  %v974_v30 = vsel %vm866_vm15, %v5849_v60, %v920_v7  ;;  %v6446_v15 = vmul.f32 %v973_v62, %v6176_v13  ;;  %v922_v2 = vmul.f32 %v5853_v8, %v6351_v53  ;;  %v325_v62 = vld [vmem:[%s6096_s16 + $0xd0] sm:$0x3] }
  0x52   : > { %v5857_v24 = vpop.eup %5856  ;;  %v6450_v37 = vsel %vm2297_vm10, %v2313_v42, %v2314_v23  ;;  %v6453_v40 = vmul.f32 %v974_v30, %v6179_v14  ;;  %v975_v43 = vsel %vm867_vm0, %v5851_v20, %v921_v22  ;;  %v923_v47 = vmul.f32 %v5855_v12, %v6363_v28 }
  0x53   : > { %8131 = vst [vmem:[#allocation15_spill] sm:$0xff] %v6446_v15  ;;  %8132 = vst [vmem:[#allocation16_spill] sm:$0xff] %v6450_v37  ;;  %v6461_v13 = vpop.eup %5858  ;;  %5251 = vmatprep.mubr.msk.f32.mxu0 %vm1103_vm4, %v6450_v37  ;;  %v6466_v53 = vsel %vm2297_vm10, %v2314_v23, %v2316_v1  ;;  %v2318_v14 = vrot.slane %v6446_v15, 1  ;;  %5007 = vmatprep.mubr.msk.f32.mxu1 %vm1103_vm4, %v6446_v15  ;;  %v6472_v42 = vmul.f32 %v975_v43, %v6199_v39 }
  0x54   : > { %8133 = vst [vmem:[#allocation17_spill] sm:$0xff] %v6453_v40  ;;  %8134 = vst [vmem:[#allocation18_spill] sm:$0xff] %v6466_v53  ;;  %v976_v28 = vsel %vm868_vm1, %v5853_v8, %v922_v2  ;;  %v6479_v51 = vpop.eup %5860  ;;  %5252 = vmatmul.mubr.msk.f32.gmra.mrb[4].mxu0 %vm1103_vm4, %v6466_v53  ;;  %v2319_v48 = vrot.slane %v6453_v40, 1  ;;  %5008 = vmatmul.mubr.msk.f32.gmra.mrb[8].mxu1 %vm1103_vm4, %v6453_v40  ;;  %v977_v39 = vsel %vm869_vm2, %v5855_v12, %v923_v47  ;;  %v326_v2 = vld [vmem:[%s6096_s16 + $0xd8] sm:$0xff]  ;;  %v328_v47 = vld [vmem:[%s6096_s16 + $0xe8] sm:$0x3] }
  0x55   : > { %8135 = vst [vmem:[#allocation19_spill] sm:$0xff] %v6472_v42  ;;  %v6489_v27 = vmul.f32 %v976_v28, %v6206_v44  ;;  %v924_v9 = vmul.f32 %v5857_v24, %v6376_v58  ;;  %v2321_v60 = vrot.slane %v6472_v42, 1  ;;  %v6494_v19 = vmul.f32 %v977_v39, %v6218_v52 }
  0x56   : > { %v709_v35 = vadd.f32 1.0, %v6461_v13  ;;  %v710_v0 = vadd.f32 1.0, %v6479_v51  ;;  %v6499_v20 = vsel %vm2297_vm10, %v2318_v14, %v2319_v48  ;;  %5864 = vpow2.f32 %v625_v10 }
  0x57   : > { %8136 = vst [vmem:[#allocation20_spill] sm:$0xff] %v6489_v27  ;;  %8137 = vst [vmem:[#allocation21_spill] sm:$0xff] %v6494_v19  ;;  %v2323_v44 = vrot.slane %v6489_v27, 1  ;;  %5010 = vmatprep.mubr.msk.f32.mxu1 %vm1103_vm4, %v6489_v27  ;;  %v978_v58 = vsel %vm870_vm3, %v5857_v24, %v924_v9  ;;  %v6506_v52 = vpop.eup %5862  ;;  %5254 = vmatprep.mubr.msk.f32.mxu0 %vm1103_vm4, %v6499_v20  ;;  %v6511_v7 = vsel %vm2297_vm10, %v2319_v48, %v2321_v60  ;;  %v327_v24 = vld [vmem:[%s6096_s16 + $0xe0] sm:$0xff]  ;;  %v329_v60 = vld [vmem:[%s6096_s16 + $0xf0] sm:$0xff] }
  0x58   : > { %8138 = vst [vmem:[#allocation22_spill] sm:$0xff] %v6499_v20  ;;  %8139 = vst [vmem:[#allocation23_spill] sm:$0xff] %v6511_v7  ;;  %v2324_v8 = vrot.slane %v6494_v19, 1  ;;  %v6515_v23 = vmul.f32 %v978_v58, %v6235_v11  ;;  %5866 = vrcp.f32 %v709_v35  ;;  %5255 = vmatmul.mubr.msk.f32.gmra.mrb[6].mxu0 %vm1103_vm4, %v6511_v7  ;;  %5011 = vmatmul.mubr.msk.f32.gmra.mrb[10].mxu1 %vm1103_vm4, %v6494_v19  ;;  %v711_v22 = vadd.f32 1.0, %v6506_v52 }
  0x59   : > { %5868 = vrcp.f32 %v710_v0  ;;  %v627_v10 = vmul.f32 1.442695, %v551_v21  ;;  %v629_v12 = vmul.f32 1.442695, %v552_v61  ;;  %v499_v30 = vand.u32 2147483647, %v6418_v18 }
  0x5a   : > { %8140 = vst [vmem:[#allocation24_spill] sm:$0xff] %v6515_v23  ;;  %v6524_v1 = vsel %vm2297_vm10, %v2323_v44, %v2324_v8  ;;  %v2326_v11 = vrot.slane %v6515_v23, 1  ;;  %5870 = vrcp.f32 %v711_v22  ;;  %v500_v43 = vand.u32 2147483647, %v6424_v57 }
  0x5b   : > { %8141 = vst [vmem:[#allocation25_spill] sm:$0xff] %v6524_v1  ;;  %5257 = vmatprep.mubr.msk.f32.mxu0 %vm1103_vm4, %v6524_v1  ;;  %5872 = vpow2.f32 %v627_v10  ;;  %v553_v61 = vsub.f32 0.0, %v499_v30  ;;  %v386_v46 = vmul.f32 %v6091_v4, %v325_v62  ;;  %v387_v28 = vmul.f32 %v6091_v4, %v326_v2  ;;  %v330_v62 = vld [vmem:[%s6096_s16 + $0xf8] sm:$0xff] }
  0x5c   : > { %v6535_v21 = vsel %vm2297_vm10, %v2324_v8, %v2326_v11  ;;  %5874 = vpow2.f32 %v629_v12  ;;  %v554_v14 = vsub.f32 0.0, %v500_v43  ;;  %v388_v49 = vmul.f32 %v6091_v4, %v327_v24 }
  0x5d   : > { %8142 = vst [vmem:[#allocation26_spill] sm:$0xff] %v6535_v21  ;;  %5258 = vmatmul.mubr.msk.f32.gmra.mrb[8].mxu0 %vm1103_vm4, %v6535_v21  ;;  %v631_v48 = vmul.f32 1.442695, %v553_v61  ;;  %v6543_v39 = vadd.f32 %v6101_v5, %v386_v46  ;;  %v389_v9 = vmul.f32 %v6091_v4, %v328_v47  ;;  %v6549_v0 = vadd.f32 %v6101_v5, %v387_v28 }
  0x5e   : > { %v633_v35 = vmul.f32 1.442695, %v554_v14  ;;  %v6552_v44 = vadd.f32 %v6101_v5, %v388_v49  ;;  %v390_v11 = vmul.f32 %v6091_v4, %v329_v60  ;;  %vm873_vm7 = vcmp.ge.f32.partialorder %v6361_v17, 0.0 }
  0x5f   : > { %5876 = vpow2.f32 %v631_v48  ;;  %v501_v58 = vand.u32 2147483647, %v6543_v39  ;;  %v6557_v8 = vadd.f32 %v6101_v5, %v389_v9  ;;  %v502_v10 = vand.u32 2147483647, %v6549_v0 }
  0x60   : > { %v6560_v22 = vpop.eup %5864  ;;  %5878 = vpow2.f32 %v633_v35  ;;  %v503_v12 = vand.u32 2147483647, %v6552_v44  ;;  %v391_v28 = vmul.f32 %v6091_v4, %v330_v62  ;;  %v6574_v34 = vadd.f32 %v6101_v5, %v390_v11 }
  0x61   : > { %v712_v2 = vadd.f32 1.0, %v6560_v22  ;;  %v555_v24 = vsub.f32 0.0, %v501_v58  ;;  %v504_v43 = vand.u32 2147483647, %v6557_v8  ;;  %v556_v46 = vsub.f32 0.0, %v502_v10 }
  0x62   : > { %v5867_v30 = vpop.eup %5866  ;;  %v557_v14 = vsub.f32 0.0, %v503_v12  ;;  %vm874_vm8 = vcmp.ge.f32.partialorder %v6403_v55, 0.0  ;;  %vm875_vm9 = vcmp.ge.f32.partialorder %v6406_v29, 0.0  ;;  %vm876_vm11 = vcmp.ge.f32.partialorder %v6409_v26, 0.0 }
  0x63   : > { %v5869_v47 = vpop.eup %5868  ;;  %v925_v61 = vmul.f32 %v5867_v30, %v6461_v13  ;;  %5880 = vrcp.f32 %v712_v2  ;;  %v635_v48 = vmul.f32 1.442695, %v555_v24  ;;  %v558_v9 = vsub.f32 0.0, %v504_v43  ;;  %v331_v24 = vld [vmem:[%s6096_s16 + $0x100] sm:$0x3] }
  0x64   : > { %v926_v49 = vmul.f32 %v5869_v47, %v6479_v51  ;;  %v5871_v60 = vpop.eup %5870  ;;  %v637_v58 = vmul.f32 1.442695, %v556_v46  ;;  %v639_v38 = vmul.f32 1.442695, %v557_v14  ;;  %v392_v14 = vmul.f32 %v6091_v4, %v331_v24 }
  0x65   : > { %v979_v35 = vsel %vm871_vm5, %v5867_v30, %v925_v61  ;;  %v6576_v13 = vpop.eup %5872  ;;  %v927_v10 = vmul.f32 %v5871_v60, %v6506_v52  ;;  %5882 = vpow2.f32 %v635_v48  ;;  %v641_v11 = vmul.f32 1.442695, %v558_v9 }
  0x66   : > { %v980_v62 = vsel %vm872_vm6, %v5869_v47, %v926_v49  ;;  %v6581_v51 = vmul.f32 %v979_v35, %v6249_v32  ;;  %v6584_v12 = vpop.eup %5874  ;;  %v713_v2 = vadd.f32 1.0, %v6576_v13  ;;  %5884 = vpow2.f32 %v637_v58  ;;  %v332_v49 = vld [vmem:[%s6096_s16 + $0x108] sm:$0xff] }
  0x67   : > { %v6587_v30 = vmul.f32 %v980_v62, %v6252_v33  ;;  %v981_v32 = vsel %vm873_vm7, %v5871_v60, %v927_v10  ;;  %v714_v52 = vadd.f32 1.0, %v6584_v12  ;;  %5886 = vpow2.f32 %v639_v38  ;;  %v333_v60 = vld [vmem:[%s6096_s16 + $0x110] sm:$0xff] }
  0x68   : > { %8143 = vst [vmem:[#allocation27_spill] sm:$0xff] %v6581_v51  ;;  %v2328_v43 = vrot.slane %v6581_v51, 1  ;;  %5013 = vmatprep.mubr.msk.f32.mxu1 %vm1103_vm4, %v6581_v51  ;;  %v6599_v47 = vmul.f32 %v981_v32, %v6361_v17  ;;  %5888 = vrcp.f32 %v713_v2  ;;  %v6604_v61 = vadd.f32 %v6101_v5, %v391_v28 }
  0x69   : > { %8144 = vst [vmem:[#allocation28_spill] sm:$0xff] %v6587_v30  ;;  %v2329_v33 = vrot.slane %v6587_v30, 1  ;;  %5014 = vmatmul.mubr.msk.f32.gmra.mrb[12].mxu1 %vm1103_vm4, %v6587_v30  ;;  %v6606_v46 = vpop.eup %5876  ;;  %5890 = vrcp.f32 %v714_v52  ;;  %v505_v38 = vand.u32 2147483647, %v6574_v34  ;;  %v6630_v2 = vadd.f32 %v6101_v5, %v392_v14 }
  0x6a   : > { %8145 = vst [vmem:[#allocation29_spill] sm:$0xff] %v6599_v47  ;;  %v6612_v17 = vpop.eup %5878  ;;  %v2331_v9 = vrot.slane %v6599_v47, 1  ;;  %v715_v28 = vadd.f32 1.0, %v6606_v46  ;;  %5892 = vpow2.f32 %v641_v11  ;;  %v506_v58 = vand.u32 2147483647, %v6604_v61 }
  0x6b   : > { %v6615_v48 = vsel %vm2297_vm10, %v2328_v43, %v2329_v33  ;;  %v716_v35 = vadd.f32 1.0, %v6612_v17  ;;  %v559_v62 = vsub.f32 0.0, %v505_v38  ;;  %v393_v11 = vmul.f32 %v6091_v4, %v332_v49 }
  0x6c   : > { %8146 = vst [vmem:[#allocation30_spill] sm:$0xff] %v6615_v48  ;;  %5260 = vmatprep.mubr.msk.f32.mxu0 %vm1103_vm4, %v6615_v48  ;;  %v6627_v10 = vsel %vm2297_vm10, %v2329_v33, %v2331_v9  ;;  %5894 = vrcp.f32 %v715_v28  ;;  %v560_v43 = vsub.f32 0.0, %v506_v58  ;;  %v394_v52 = vmul.f32 %v6091_v4, %v333_v60 }
  0x6d   : > { %8147 = vst [vmem:[#allocation31_spill] sm:$0xff] %v6627_v10  ;;  %v5881_v24 = vpop.eup %5880  ;;  %5261 = vmatmul.mubr.msk.f32.gmra.mrb[10].mxu0 %vm1103_vm4, %v6627_v10  ;;  %5896 = vrcp.f32 %v716_v35  ;;  %v643_v32 = vmul.f32 1.442695, %v559_v62  ;;  %vm877_vm12 = vcmp.ge.f32.partialorder %v6418_v18, 0.0  ;;  %v507_v33 = vand.u32 2147483647, %v6630_v2 }
  0x6e   : > { %v928_v38 = vmul.f32 %v5881_v24, %v6560_v22  ;;  %v6640_v14 = vadd.f32 %v6101_v5, %v393_v11  ;;  %vm878_vm13 = vcmp.ge.f32.partialorder %v6424_v57, 0.0  ;;  %v645_v9 = vmul.f32 1.442695, %v560_v43  ;;  %v334_v11 = vld [vmem:[%s6096_s16 + $0x118] sm:$0x3] }
  0x6f   : > { %v6642_v49 = vpop.eup %5882  ;;  %5898 = vpow2.f32 %v643_v32  ;;  %v6646_v28 = vadd.f32 %v6101_v5, %v394_v52  ;;  %v561_v58 = vsub.f32 0.0, %v507_v33  ;;  %vm879_vm14 = vcmp.ge.f32.partialorder %v6543_v39, 0.0 }
  0x70   : > { %v6648_v35 = vpop.eup %5884  ;;  %v982_v22 = vsel %vm874_vm8, %v5881_v24, %v928_v38  ;;  %v717_v60 = vadd.f32 1.0, %v6642_v49  ;;  %v508_v62 = vand.u32 2147483647, %v6640_v14  ;;  %5900 = vpow2.f32 %v645_v9 }
  0x71   : > { %v6655_v47 = vpop.eup %5886  ;;  %v6658_v23 = vmul.f32 %v982_v22, %v6403_v55  ;;  %v718_v43 = vadd.f32 1.0, %v6648_v35  ;;  %v509_v5 = vand.u32 2147483647, %v6646_v28  ;;  %v647_v52 = vmul.f32 1.442695, %v561_v58 }
  0x72   : > { %v5889_v32 = vpop.eup %5888  ;;  %5902 = vrcp.f32 %v717_v60  ;;  %v719_v24 = vadd.f32 1.0, %v6655_v47  ;;  %v562_v38 = vsub.f32 0.0, %v508_v62  ;;  %v395_v22 = vmul.f32 %v6091_v4, %v334_v11 }
  0x73   : > { %8148 = vst [vmem:[#allocation32_spill] sm:$0xff] %v6658_v23  ;;  %v5891_v33 = vpop.eup %5890  ;;  %v929_v42 = vmul.f32 %v5889_v32, %v6576_v13  ;;  %5016 = vmatprep.mubr.msk.f32.mxu1 %vm1103_vm4, %v6658_v23  ;;  %5904 = vrcp.f32 %v718_v43  ;;  %v563_v55 = vsub.f32 0.0, %v509_v5  ;;  %vm880_vm15 = vcmp.ge.f32.partialorder %v6549_v0, 0.0  ;;  %v335_v43 = vld [vmem:[%s6096_s16 + $0x120] sm:$0xff] }
  0x74   : > { %v6667_v9 = vpop.eup %5892  ;;  %v930_v6 = vmul.f32 %v5891_v33, %v6584_v12  ;;  %5906 = vrcp.f32 %v719_v24  ;;  %v649_v60 = vmul.f32 1.442695, %v562_v38  ;;  %v2333_v12 = vrot.slane %v6658_v23, 1 }
  0x75   : > { %v983_v58 = vsel %vm875_vm9, %v5889_v32, %v929_v42  ;;  %v720_v13 = vadd.f32 1.0, %v6667_v9  ;;  %5908 = vpow2.f32 %v647_v52  ;;  %v651_v62 = vmul.f32 1.442695, %v563_v55 }
  0x76   : > { %v5895_v5 = vpop.eup %5894  ;;  %v6677_v4 = vmul.f32 %v983_v58, %v6406_v29  ;;  %v984_v11 = vsel %vm876_vm11, %v5891_v33, %v930_v6  ;;  %vm881_vm0 = vcmp.ge.f32.partialorder %v6552_v44, 0.0  ;;  %5910 = vpow2.f32 %v649_v60  ;;  %v6690_v29 = vld [vmem:[%s8010_s2] ss:$0 sm:$0xff] }
  0x77   : > { %v5897_v42 = vpop.eup %5896  ;;  %v6684_v32 = vmul.f32 %v984_v11, %v6409_v26  ;;  %v931_v24 = vmul.f32 %v5895_v5, %v6606_v46  ;;  %5912 = vrcp.f32 %v720_v13  ;;  %v6693_v52 = vadd.f32 %v6690_v29, %v395_v22  ;;  %v336_v26 = vld [vmem:[%s6096_s16 + $0x128] sm:$0xff]  ;;  %v6703_v46 = vld [vmem:[%s8009_s1] ss:$0 sm:$0xff] }
  0x78   : > { %8149 = vst [vmem:[#allocation33_spill] sm:$0xff] %v6677_v4  ;;  %v2334_v6 = vrot.slane %v6677_v4, 1  ;;  %5017 = vmatmul.mubr.msk.f32.gmra.mrb[14].mxu1 %vm1103_vm4, %v6677_v4  ;;  %v932_v38 = vmul.f32 %v5897_v42, %v6612_v17  ;;  %5914 = vpow2.f32 %v651_v62  ;;  %v396_v33 = vmul.f32 %v6703_v46, %v335_v43 }
  0x79   : > { %8150 = vst [vmem:[#allocation34_spill] sm:$0xff] %v6684_v32  ;;  %v6706_v55 = vpop.eup %5898  ;;  %v2336_v22 = vrot.slane %v6684_v32, 1  ;;  %v985_v60 = vsel %vm877_vm12, %v5895_v5, %v931_v24  ;;  %vm882_vm1 = vcmp.ge.f32.partialorder %v6557_v8, 0.0  ;;  %v510_v17 = vand.u32 2147483647, %v6693_v52 }
  0x7a   : > { %v6714_v58 = vsel %vm2297_vm10, %v2333_v12, %v2334_v6  ;;  %v986_v13 = vsel %vm878_vm13, %v5897_v42, %v932_v38  ;;  %v6719_v62 = vmul.f32 %v985_v60, %v6418_v18  ;;  %v721_v43 = vadd.f32 1.0, %v6706_v55  ;;  %v6722_v11 = vpop.eup %5900 }
  0x7b   : > { %8151 = vst [vmem:[#allocation35_spill] sm:$0xff] %v6714_v58  ;;  %5263 = vmatprep.mubr.msk.f32.mxu0 %vm1103_vm4, %v6714_v58  ;;  %v6727_v5 = vsel %vm2297_vm10, %v2334_v6, %v2336_v22  ;;  %v6730_v24 = vmul.f32 %v986_v13, %v6424_v57  ;;  %v564_v12 = vsub.f32 0.0, %v510_v17  ;;  %v397_v32 = vmul.f32 %v6703_v46, %v336_v26 }
  0x7c   : > { %8152 = vst [vmem:[#allocation36_spill] sm:$0xff] %v6719_v62  ;;  %8153 = vst [vmem:[#allocation37_spill] sm:$0xff] %v6727_v5  ;;  %v5903_v42 = vpop.eup %5902  ;;  %5264 = vmatmul.mubr.msk.f32.gmra.mrb[12].mxu0 %vm1103_vm4, %v6727_v5  ;;  %v2338_v18 = vrot.slane %v6719_v62, 1  ;;  %5019 = vmatprep.mubr.msk.f32.mxu1 %vm1103_vm4, %v6719_v62  ;;  %v722_v38 = vadd.f32 1.0, %v6722_v11  ;;  %5916 = vrcp.f32 %v721_v43  ;;  %v6740_v6 = vadd.f32 %v6690_v29, %v396_v33 }
  0x7d   : > { %8154 = vst [vmem:[#allocation38_spill] sm:$0xff] %v6730_v24  ;;  %v5905_v57 = vpop.eup %5904  ;;  %v2339_v22 = vrot.slane %v6730_v24, 1  ;;  %v933_v26 = vmul.f32 %v5903_v42, %v6642_v49  ;;  %5020 = vmatmul.mubr.msk.f32.gmra.mrb[16].mxu1 %vm1103_vm4, %v6730_v24  ;;  %v653_v60 = vmul.f32 1.442695, %v564_v12  ;;  %v6747_v17 = vadd.f32 %v6690_v29, %v397_v32 }
  0x7e   : > { %v5907_v13 = vpop.eup %5906  ;;  %v934_v62 = vmul.f32 %v5905_v57, %v6648_v35  ;;  %5918 = vrcp.f32 %v722_v38  ;;  %vm883_vm2 = vcmp.ge.f32.partialorder %v6574_v34, 0.0  ;;  %v511_v33 = vand.u32 2147483647, %v6740_v6 }
  0x7f   : > { %v6752_v43 = vpop.eup %5908  ;;  %v6755_v4 = vsel %vm2297_vm10, %v2338_v18, %v2339_v22  ;;  %v987_v49 = vsel %vm879_vm14, %v5903_v42, %v933_v26  ;;  %v935_v12 = vmul.f32 %v5907_v13, %v6655_v47  ;;  %5920 = vpow2.f32 %v653_v60 }
  0x80   : > { %8155 = vst [vmem:[#allocation39_spill] sm:$0xff] %v6755_v4  ;;  %v6760_v32 = vpop.eup %5910  ;;  %5266 = vmatprep.mubr.msk.f32.mxu0 %vm1103_vm4, %v6755_v4  ;;  %v6765_v35 = vmul.f32 %v987_v49, %v6543_v39  ;;  %v988_v38 = vsel %vm880_vm15, %v5905_v57, %v934_v62  ;;  %v723_v18 = vadd.f32 1.0, %v6752_v43  ;;  %v512_v24 = vand.u32 2147483647, %v6747_v17 }
  0x81   : > { %v5913_v42 = vpop.eup %5912  ;;  %v989_v47 = vsel %vm881_vm0, %v5907_v13, %v935_v12  ;;  %v6774_v26 = vmul.f32 %v988_v38, %v6549_v0  ;;  %v724_v60 = vadd.f32 1.0, %v6760_v32  ;;  %v565_v39 = vsub.f32 0.0, %v511_v33  ;;  %v337_v33 = vld [vmem:[%s6096_s16 + $0x130] sm:$0x3]  ;;  %v338_v12 = vld [vmem:[%s6096_s16 + $0x138] sm:$0xff] }
  0x82   : > { %8156 = vst [vmem:[#allocation40_spill] sm:$0xff] %v6765_v35  ;;  %v6777_v49 = vpop.eup %5914  ;;  %v2341_v62 = vrot.slane %v6765_v35, 1  ;;  %v6781_v57 = vmul.f32 %v989_v47, %v6552_v44  ;;  %v936_v23 = vmul.f32 %v5913_v42, %v6667_v9  ;;  %5922 = vrcp.f32 %v723_v18  ;;  %v339_v47 = vld [vmem:[%s6096_s16 + $0x140] sm:$0xff]  ;;  %v342_v35 = vld [vmem:[%s6096_s16 + $0x158] sm:$0xff] }
  0x83   : > { %8157 = vst [vmem:[#allocation41_spill] sm:$0xff] %v6774_v26  ;;  %v2343_v30 = vrot.slane %v6774_v26, 1  ;;  %5022 = vmatprep.mubr.msk.f32.mxu1 %vm1103_vm4, %v6774_v26  ;;  %v725_v0 = vadd.f32 1.0, %v6777_v49  ;;  %5924 = vrcp.f32 %v724_v60  ;;  %v566_v13 = vsub.f32 0.0, %v512_v24 }
  0x84   : > { %8158 = vst [vmem:[#allocation42_spill] sm:$0xff] %v6781_v57  ;;  %v6791_v38 = vsel %vm2297_vm10, %v2339_v22, %v2341_v62  ;;  %v2344_v44 = vrot.slane %v6781_v57, 1  ;;  %v990_v9 = vsel %vm882_vm1, %v5913_v42, %v936_v23  ;;  %5023 = vmatmul.mubr.msk.f32.gmra.mrb[18].mxu1 %vm1103_vm4, %v6781_v57  ;;  %v655_v18 = vmul.f32 1.442695, %v565_v39 }
  0x85   : > { %8159 = vst [vmem:[#allocation43_spill] sm:$0xff] %v6791_v38  ;;  %5267 = vmatmul.mubr.msk.f32.gmra.mrb[14].mxu0 %vm1103_vm4, %v6791_v38  ;;  %v6802_v24 = vmul.f32 %v990_v9, %v6557_v8  ;;  %vm884_vm3 = vcmp.ge.f32.partialorder %v6604_v61, 0.0  ;;  %5926 = vrcp.f32 %v725_v0  ;;  %v657_v22 = vmul.f32 1.442695, %v566_v13  ;;  %v340_v13 = vld [vmem:[%s6096_s16 + $0x148] sm:$0x3] }
  0x86   : > { %v5917_v60 = vpop.eup %5916  ;;  %v6806_v62 = vsel %vm2297_vm10, %v2343_v30, %v2344_v44  ;;  %5928 = vpow2.f32 %v655_v18  ;;  %v398_v23 = vmul.f32 %v6703_v46, %v337_v33  ;;  %v399_v42 = vmul.f32 %v6703_v46, %v338_v12 }
  0x87   : > { %8160 = vst [vmem:[#allocation44_spill] sm:$0xff] %v6802_v24  ;;  %8161 = vst [vmem:[#allocation45_spill] sm:$0xff] %v6806_v62  ;;  %5269 = vmatprep.mubr.msk.f32.mxu0 %vm1103_vm4, %v6806_v62  ;;  %v2346_v39 = vrot.slane %v6802_v24, 1  ;;  %v937_v8 = vmul.f32 %v5917_v60, %v6706_v55  ;;  %5930 = vpow2.f32 %v657_v22  ;;  %v400_v0 = vmul.f32 %v6703_v46, %v339_v47 }
  0x88   : > { %v5919_v9 = vpop.eup %5918  ;;  %vm885_vm5 = vcmp.ge.f32.partialorder %v6630_v2, 0.0  ;;  %vm886_vm6 = vcmp.ge.f32.partialorder %v6640_v14, 0.0  ;;  %v6819_v30 = vadd.f32 %v6690_v29, %v398_v23  ;;  %v6822_v33 = vadd.f32 %v6690_v29, %v399_v42 }
  0x89   : > { %v6824_v12 = vpop.eup %5920  ;;  %v6827_v55 = vsel %vm2297_vm10, %v2344_v44, %v2346_v39  ;;  %v938_v18 = vmul.f32 %v5919_v9, %v6722_v11  ;;  %v991_v47 = vsel %vm883_vm2, %v5917_v60, %v937_v8  ;;  %v6833_v22 = vadd.f32 %v6690_v29, %v400_v0  ;;  %v341_v11 = vld [vmem:[%s6096_s16 + $0x150] sm:$0xff] }
  0x8a   : > { %8162 = vst [vmem:[#allocation46_spill] sm:$0xff] %v6827_v55  ;;  %5270 = vmatmul.mubr.msk.f32.gmra.mrb[16].mxu0 %vm1103_vm4, %v6827_v55  ;;  %v6838_v23 = vmul.f32 %v991_v47, %v6574_v34  ;;  %v726_v42 = vadd.f32 1.0, %v6824_v12  ;;  %v513_v44 = vand.u32 2147483647, %v6819_v30  ;;  %v401_v39 = vmul.f32 %v6703_v46, %v340_v13 }
  0x8b   : > { %v992_v60 = vsel %vm884_vm3, %v5919_v9, %v938_v18  ;;  %vm887_vm7 = vcmp.ge.f32.partialorder %v6646_v28, 0.0  ;;  %v514_v8 = vand.u32 2147483647, %v6822_v33  ;;  %v515_v0 = vand.u32 2147483647, %v6833_v22 }
  0x8c   : > { %8163 = vst [vmem:[#allocation47_spill] sm:$0xff] %v6838_v23  ;;  %v5923_v24 = vpop.eup %5922  ;;  %v6850_v34 = vmul.f32 %v992_v60, %v6604_v61  ;;  %v2348_v47 = vrot.slane %v6838_v23, 1  ;;  %5025 = vmatprep.mubr.msk.f32.mxu1 %vm1103_vm4, %v6838_v23  ;;  %5932 = vrcp.f32 %v726_v42  ;;  %v567_v13 = vsub.f32 0.0, %v513_v44 }
  0x8d   : > { %v5925_v57 = vpop.eup %5924  ;;  %v939_v9 = vmul.f32 %v5923_v24, %v6752_v43  ;;  %v568_v18 = vsub.f32 0.0, %v514_v8  ;;  %v569_v26 = vsub.f32 0.0, %v515_v0  ;;  %v402_v36 = vmul.f32 %v6703_v46, %v341_v11 }
  0x8e   : > { %8164 = vst [vmem:[#allocation48_spill] sm:$0xff] %v6850_v34  ;;  %v2349_v51 = vrot.slane %v6850_v34, 1  ;;  %5026 = vmatmul.mubr.msk.f32.gmra.mrb[20].mxu1 %vm1103_vm4, %v6850_v34  ;;  %v940_v61 = vmul.f32 %v5925_v57, %v6760_v32  ;;  %v659_v60 = vmul.f32 1.442695, %v567_v13  ;;  %v6863_v23 = vadd.f32 %v6690_v29, %v401_v39 }
  0x8f   : > { %v5927_v42 = vpop.eup %5926  ;;  %v993_v44 = vsel %vm885_vm5, %v5923_v24, %v939_v9  ;;  %v661_v43 = vmul.f32 1.442695, %v568_v18  ;;  %v663_v8 = vmul.f32 1.442695, %v569_v26  ;;  %v403_v0 = vmul.f32 %v6703_v46, %v342_v35  ;;  %v343_v18 = vld [vmem:[%s6096_s16 + $0x160] sm:$0x3] }
  0x90   : > { %v6868_v11 = vpop.eup %5928  ;;  %v6871_v19 = vsel %vm2297_vm10, %v2348_v47, %v2349_v51  ;;  %v6874_v34 = vmul.f32 %v993_v44, %v6630_v2  ;;  %v941_v32 = vmul.f32 %v5927_v42, %v6777_v49  ;;  %v994_v39 = vsel %vm886_vm6, %v5925_v57, %v940_v61  ;;  %v344_v61 = vld [vmem:[%s6096_s16 + $0x168] sm:$0xff] }
  0x91   : > { %8165 = vst [vmem:[#allocation49_spill] sm:$0xff] %v6871_v19  ;;  %v6879_v13 = vpop.eup %5930  ;;  %5272 = vmatprep.mubr.msk.f32.mxu0 %vm1103_vm4, %v6871_v19  ;;  %v6884_v35 = vmul.f32 %v994_v39, %v6640_v14  ;;  %v727_v26 = vadd.f32 1.0, %v6868_v11  ;;  %5934 = vpow2.f32 %v659_v60  ;;  %v516_v2 = vand.u32 2147483647, %v6863_v23 }
  0x92   : > { %8166 = vst [vmem:[#allocation50_spill] sm:$0xff] %v6874_v34  ;;  %v2351_v49 = vrot.slane %v6874_v34, 1  ;;  %v995_v57 = vsel %vm887_vm7, %v5927_v42, %v941_v32  ;;  %v728_v24 = vadd.f32 1.0, %v6879_v13  ;;  %5936 = vpow2.f32 %v661_v43 }
  0x93   : > { %8167 = vst [vmem:[#allocation51_spill] sm:$0xff] %v6884_v35  ;;  %v6893_v47 = vmul.f32 %v995_v57, %v6646_v28  ;;  %v2353_v14 = vrot.slane %v6884_v35, 1  ;;  %5028 = vmatprep.mubr.msk.f32.mxu1 %vm1103_vm4, %v6884_v35  ;;  %5938 = vrcp.f32 %v727_v26  ;;  %v570_v9 = vsub.f32 0.0, %v516_v2 }
  0x94   : > { %v6901_v60 = vsel %vm2297_vm10, %v2349_v51, %v2351_v49  ;;  %5940 = vrcp.f32 %v728_v24  ;;  %v6904_v42 = vadd.f32 %v6690_v29, %v402_v36  ;;  %v6912_v43 = vadd.f32 %v6690_v29, %v403_v0  ;;  %v345_v51 = vld [vmem:[%s6096_s16 + $0x170] sm:$0xff] }
  0x95   : > { %8168 = vst [vmem:[#allocation52_spill] sm:$0xff] %v6893_v47  ;;  %8169 = vst [vmem:[#allocation53_spill] sm:$0xff] %v6901_v60  ;;  %5273 = vmatmul.mubr.msk.f32.gmra.mrb[18].mxu0 %vm1103_vm4, %v6901_v60  ;;  %v2354_v28 = vrot.slane %v6893_v47, 1  ;;  %5029 = vmatmul.mubr.msk.f32.gmra.mrb[22].mxu1 %vm1103_vm4, %v6893_v47  ;;  %5942 = vpow2.f32 %v663_v8  ;;  %v665_v44 = vmul.f32 1.442695, %v570_v9  ;;  %vm888_vm8 = vcmp.ge.f32.partialorder %v6693_v52, 0.0 }
  0x96   : > { %v5933_v32 = vpop.eup %5932  ;;  %v517_v36 = vand.u32 2147483647, %v6904_v42  ;;  %v404_v39 = vmul.f32 %v6703_v46, %v343_v18  ;;  %v405_v26 = vmul.f32 %v6703_v46, %v344_v61  ;;  %v518_v49 = vand.u32 2147483647, %v6912_v43  ;;  %v346_v9 = vld [vmem:[%s6096_s16 + $0x178] sm:$0x3] }
  0x97   : > { %v6920_v2 = vsel %vm2297_vm10, %v2353_v14, %v2354_v28  ;;  %v942_v8 = vmul.f32 %v5933_v32, %v6824_v12  ;;  %5944 = vpow2.f32 %v665_v44  ;;  %v406_v24 = vmul.f32 %v6703_v46, %v345_v51 }
  0x98   : > { %8170 = vst [vmem:[#allocation54_spill] sm:$0xff] %v6920_v2  ;;  %5275 = vmatprep.mubr.msk.f32.mxu0 %vm1103_vm4, %v6920_v2  ;;  %v571_v0 = vsub.f32 0.0, %v517_v36  ;;  %v6927_v57 = vadd.f32 %v6690_v29, %v404_v39  ;;  %vm889_vm9 = vcmp.ge.f32.partialorder %v6740_v6, 0.0  ;;  %v572_v14 = vsub.f32 0.0, %v518_v49 }
  0x99   : > { %v996_v18 = vsel %vm888_vm8, %v5933_v32, %v942_v8  ;;  %v6933_v61 = vadd.f32 %v6690_v29, %v405_v26  ;;  %vm890_vm11 = vcmp.ge.f32.partialorder %v6747_v17, 0.0  ;;  %v6943_v51 = vadd.f32 %v6690_v29, %v406_v24 }
  0x9a   : > { %v6936_v12 = vmul.f32 %v996_v18, %v6693_v52  ;;  %v667_v44 = vmul.f32 1.442695, %v571_v0  ;;  %v519_v36 = vand.u32 2147483647, %v6927_v57  ;;  %v669_v34 = vmul.f32 1.442695, %v572_v14 }
  0x9b   : > { %v6940_v39 = vpop.eup %5934  ;;  %v520_v32 = vand.u32 2147483647, %v6933_v61  ;;  %v407_v8 = vmul.f32 %v6703_v46, %v346_v9  ;;  %v521_v14 = vand.u32 2147483647, %v6943_v51  ;;  %vm891_vm12 = vcmp.ge.f32.partialorder %v6819_v30, 0.0 }
  0x9c   : > { %8171 = vst [vmem:[#allocation55_spill] sm:$0xff] %v6936_v12  ;;  %v6947_v26 = vpop.eup %5936  ;;  %v2356_v52 = vrot.slane %v6936_v12, 1  ;;  %v729_v49 = vadd.f32 1.0, %v6940_v39  ;;  %5946 = vpow2.f32 %v667_v44  ;;  %v573_v0 = vsub.f32 0.0, %v519_v36 }
  0x9d   : > { %v5939_v18 = vpop.eup %5938  ;;  %v730_v47 = vadd.f32 1.0, %v6947_v26  ;;  %5948 = vpow2.f32 %v669_v34  ;;  %v574_v24 = vsub.f32 0.0, %v520_v32  ;;  %v575_v44 = vsub.f32 0.0, %v521_v14 }
  0x9e   : > { %v5941_v35 = vpop.eup %5940  ;;  %v6954_v9 = vsel %vm2297_vm10, %v2354_v28, %v2356_v52  ;;  %v943_v45 = vmul.f32 %v5939_v18, %v6868_v11  ;;  %5950 = vrcp.f32 %v729_v49  ;;  %v671_v12 = vmul.f32 1.442695, %v573_v0  ;;  %v347_v11 = vld [vmem:[%s6096_s16 + $0x180] sm:$0xff]  ;;  %v348_v52 = vld [vmem:[%s6096_s16 + $0x188] sm:$0xff] }
  0x9f   : > { %8172 = vst [vmem:[#allocation56_spill] sm:$0xff] %v6954_v9  ;;  %v6957_v27 = vpop.eup %5942  ;;  %5276 = vmatmul.mubr.msk.f32.gmra.mrb[20].mxu0 %vm1103_vm4, %v6954_v9  ;;  %v944_v34 = vmul.f32 %v5941_v35, %v6879_v13  ;;  %5952 = vrcp.f32 %v730_v47  ;;  %v673_v36 = vmul.f32 1.442695, %v574_v24  ;;  %v675_v13 = vmul.f32 1.442695, %v575_v44 }
  0xa0   : > { %v997_v32 = vsel %vm889_vm9, %v5939_v18, %v943_v45  ;;  %v731_v28 = vadd.f32 1.0, %v6957_v27  ;;  %5954 = vpow2.f32 %v671_v12  ;;  %v6979_v12 = vadd.f32 %v6690_v29, %v407_v8  ;;  %v349_v18 = vld [vmem:[%s6096_s16 + $0x190] sm:$0x3] }
  0xa1   : > { %v6967_v49 = vpop.eup %5944  ;;  %v998_v0 = vsel %vm890_vm11, %v5941_v35, %v944_v34  ;;  %v6972_v40 = vmul.f32 %v997_v32, %v6740_v6  ;;  %5956 = vpow2.f32 %v673_v36  ;;  %v408_v6 = vmul.f32 %v6703_v46, %v347_v11 }
  0xa2   : > { %v6975_v47 = vmul.f32 %v998_v0, %v6747_v17  ;;  %5958 = vrcp.f32 %v731_v28  ;;  %v732_v45 = vadd.f32 1.0, %v6967_v49  ;;  %v409_v35 = vmul.f32 %v6703_v46, %v348_v52 }
  0xa3   : > { %8173 = vst [vmem:[#allocation57_spill] sm:$0xff] %v6972_v40  ;;  %v2358_v14 = vrot.slane %v6972_v40, 1  ;;  %5031 = vmatprep.mubr.msk.f32.mxu1 %vm1103_vm4, %v6972_v40  ;;  %5960 = vpow2.f32 %v675_v13  ;;  %v522_v8 = vand.u32 2147483647, %v6979_v12  ;;  %v6992_v24 = vadd.f32 %v6690_v29, %v408_v6 }
  0xa4   : > { %8174 = vst [vmem:[#allocation58_spill] sm:$0xff] %v6975_v47  ;;  %v2359_v17 = vrot.slane %v6975_v47, 1  ;;  %5032 = vmatmul.mubr.msk.f32.gmra.mrb[24].mxu1 %vm1103_vm4, %v6975_v47  ;;  %5962 = vrcp.f32 %v732_v45  ;;  %v6995_v34 = vadd.f32 %v6690_v29, %v409_v35  ;;  %v410_v44 = vmul.f32 %v6703_v46, %v349_v18 }
  0xa5   : > { %v576_v28 = vsub.f32 0.0, %v522_v8  ;;  %v523_v0 = vand.u32 2147483647, %v6992_v24  ;;  %vm892_vm13 = vcmp.ge.f32.partialorder %v6822_v33, 0.0  ;;  %vm893_vm14 = vcmp.ge.f32.partialorder %v6833_v22, 0.0 }
  0xa6   : > { %v6998_v36 = vpop.eup %5946  ;;  %v7001_v32 = vsel %vm2297_vm10, %v2358_v14, %v2359_v17  ;;  %v524_v13 = vand.u32 2147483647, %v6995_v34  ;;  %v7014_v6 = vadd.f32 %v6690_v29, %v410_v44  ;;  %vm894_vm15 = vcmp.ge.f32.partialorder %v6863_v23, 0.0 }
  0xa7   : > { %8175 = vst [vmem:[#allocation59_spill] sm:$0xff] %v7001_v32  ;;  %v7003_v11 = vpop.eup %5948  ;;  %5278 = vmatprep.mubr.msk.f32.mxu0 %vm1103_vm4, %v7001_v32  ;;  %v733_v52 = vadd.f32 1.0, %v6998_v36  ;;  %v677_v14 = vmul.f32 1.442695, %v576_v28  ;;  %v577_v47 = vsub.f32 0.0, %v523_v0  ;;  %vm895_vm0 = vcmp.ge.f32.partialorder %v6904_v42, 0.0 }
  0xa8   : > { %v5951_v45 = vpop.eup %5950  ;;  %v734_v18 = vadd.f32 1.0, %v7003_v11  ;;  %v578_v40 = vsub.f32 0.0, %v524_v13  ;;  %v525_v59 = vand.u32 2147483647, %v7014_v6  ;;  %vm896_vm1 = vcmp.ge.f32.partialorder %v6912_v43, 0.0 }
  0xa9   : > { %v5953_v35 = vpop.eup %5952  ;;  %v945_v8 = vmul.f32 %v5951_v45, %v6940_v39  ;;  %5964 = vrcp.f32 %v733_v52  ;;  %v679_v31 = vmul.f32 1.442695, %v577_v47  ;;  %vm897_vm2 = vcmp.ge.f32.partialorder %v6927_v57, 0.0 }
  0xaa   : > { %v5955_v15 = vpop.eup %5954  ;;  %v946_v50 = vmul.f32 %v5953_v35, %v6947_v26  ;;  %5966 = vrcp.f32 %v734_v18  ;;  %v681_v13 = vmul.f32 1.442695, %v578_v40  ;;  %vm898_vm3 = vcmp.ge.f32.partialorder %v6933_v61, 0.0 }
  0xab   : > { %v7020_v56 = vpop.eup %5956  ;;  %v999_v44 = vsel %vm891_vm12, %v5951_v45, %v945_v8  ;;  %v735_v28 = vadd.f32 1.0, %v5955_v15  ;;  %5968 = vpow2.f32 %v677_v14  ;;  %v579_v45 = vsub.f32 0.0, %v525_v59 }
  0xac   : > { %v5959_v39 = vpop.eup %5958  ;;  %v7025_v52 = vmul.f32 %v999_v44, %v6819_v30  ;;  %v1000_v0 = vsel %vm892_vm13, %v5953_v35, %v946_v50  ;;  %v736_v26 = vadd.f32 1.0, %v7020_v56  ;;  %vm899_vm5 = vcmp.ge.f32.partialorder %v6943_v51, 0.0 }
  0xad   : > { %v5961_v18 = vpop.eup %5960  ;;  %v947_v25 = vmul.f32 %v5959_v39, %v6957_v27  ;;  %v7032_v16 = vmul.f32 %v1000_v0, %v6822_v33  ;;  %5970 = vrcp.f32 %v735_v28  ;;  %v683_v35 = vmul.f32 1.442695, %v579_v45 }
  0xae   : > { %v5963_v14 = vpop.eup %5962  ;;  %v2361_v47 = vrot.slane %v7025_v52, 1  ;;  %v737_v30 = vadd.f32 1.0, %v5961_v18  ;;  %5972 = vrcp.f32 %v736_v26  ;;  %vm1425_vm6 = vcmask 31744  }
  0xaf   : > { %v1001_v50 = vsel %vm893_vm14, %v5959_v39, %v947_v25  ;;  %v2363_v40 = vrot.slane %v7032_v16, 1  ;;  %5034 = vmatprep.mubr.msk.f32.mxu1 %vm1103_vm4, %v7032_v16  ;;  %v948_v27 = vmul.f32 %v5963_v14, %v6967_v49  ;;  %5974 = vpow2.f32 %v679_v31 }
  0xb0   : > { %v7043_v59 = vsel %vm2297_vm10, %v2359_v17, %v2361_v47  ;;  %v7046_v33 = vmul.f32 %v1001_v50, %v6833_v22  ;;  %5976 = vrcp.f32 %v737_v30  ;;  %vm900_vm7 = vcmp.ge.f32.partialorder %v6979_v12, 0.0 }
  0xb1   : > { %8176 = vst [vmem:[#allocation60_spill] sm:$0xff] %v7043_v59  ;;  %5279 = vmatmul.mubr.msk.f32.gmra.mrb[22].mxu0 %vm1103_vm4, %v7043_v59  ;;  %v1002_v25 = vsel %vm894_vm15, %v5963_v14, %v948_v27  ;;  %5978 = vpow2.f32 %v681_v13  ;;  %vm901_vm8 = vcmp.ge.f32.partialorder %v6992_v24, 0.0  ;;  %vm902_vm9 = vcmp.ge.f32.partialorder %v6995_v34, 0.0 }
  0xb2   : > { %v2364_v8 = vrot.slane %v7046_v33, 1  ;;  %v7052_v44 = vmul.f32 %v1002_v25, %v6863_v23  ;;  %5035 = vmatmul.mubr.msk.f32.gmra.mrb[26].mxu1 %vm1103_vm4, %v7046_v33  ;;  %5980 = vpow2.f32 %v683_v35  ;;  %vm903_vm11 = vcmp.ge.f32.partialorder %v7014_v6, 0.0 }
  0xb3   : > { %v5965_v31 = vpop.eup %5964 }
  0xb4   : > { %v5967_v22 = vpop.eup %5966  ;;  %v7058_v49 = vsel %vm2297_vm10, %v2363_v40, %v2364_v8  ;;  %v2366_v17 = vrot.slane %v7052_v44, 1  ;;  %v949_v28 = vmul.f32 %v5965_v31, %v6998_v36 }
  0xb5   : > { %8177 = vst [vmem:[#allocation61_spill] sm:$0xff] %v7058_v49  ;;  %v5969_v39 = vpop.eup %5968  ;;  %5281 = vmatprep.mubr.msk.f32.mxu0 %vm1103_vm4, %v7058_v49  ;;  %v950_v23 = vmul.f32 %v5967_v22, %v7003_v11 }
  0xb6   : > { %v7067_v0 = vsel %vm2297_vm10, %v2364_v8, %v2366_v17  ;;  %v1003_v26 = vsel %vm895_vm0, %v5965_v31, %v949_v28  ;;  %v738_v13 = vadd.f32 1.0, %v5969_v39  ;;  %vm3239_vm0 = vcmask 1045504  }
  0xb7   : > { %8178 = vst [vmem:[#allocation62_spill] sm:$0xff] %v7067_v0  ;;  %v5971_v45 = vpop.eup %5970  ;;  %5282 = vmatmul.mubr.msk.f32.gmra.mrb[24].mxu0 %vm1103_vm4, %v7067_v0  ;;  %v1004_v14 = vsel %vm896_vm1, %v5967_v22, %v950_v23  ;;  %v7072_v47 = vmul.f32 %v1003_v26, %v6904_v42 }
  0xb8   : > { %v5973_v36 = vpop.eup %5972  ;;  %v7076_v30 = vmul.f32 %v1004_v14, %v6912_v43  ;;  %v951_v11 = vmul.f32 %v5971_v45, %v5955_v15  ;;  %5982 = vrcp.f32 %v738_v13 }
  0xb9   : > { %v5975_v50 = vpop.eup %5974  ;;  %v2368_v40 = vrot.slane %v7072_v47, 1  ;;  %5037 = vmatprep.mubr.msk.f32.mxu1 %vm1103_vm4, %v7072_v47  ;;  %v952_v42 = vmul.f32 %v5973_v36, %v7020_v56 }
  0xba   : > { %v5977_v27 = vpop.eup %5976  ;;  %v2369_v35 = vrot.slane %v7076_v30, 1  ;;  %v1005_v25 = vsel %vm897_vm2, %v5971_v45, %v951_v11  ;;  %5038 = vmatmul.mubr.msk.f32.gmra.mrb[28].mxu1 %vm1103_vm4, %v7076_v30  ;;  %v739_v15 = vadd.f32 1.0, %v5975_v50 }
  0xbb   : > { %v5979_v43 = vpop.eup %5978  ;;  %v7089_v8 = vmul.f32 %v1005_v25, %v6927_v57  ;;  %v953_v31 = vmul.f32 %v5977_v27, %v5961_v18  ;;  %v1006_v22 = vsel %vm898_vm3, %v5973_v36, %v952_v42  ;;  %v1071_v42 = vld [vmem:[%s7098_s9 + $0x10] sm:$0xff] }
  0xbc   : > { %v5981_v56 = vpop.eup %5980  ;;  %v7101_v17 = vsel %vm2297_vm10, %v2368_v40, %v2369_v35  ;;  %v7104_v28 = vmul.f32 %v1006_v22, %v6933_v61  ;;  %v740_v57 = vadd.f32 1.0, %v5979_v43  ;;  %5984 = vrcp.f32 %v739_v15  ;;  %v1069_v61 = vld [vmem:[%s7098_s9] sm:$0xff]  ;;  %v6008_v15 = vld [vmem:[%s8011_s3 + $0x18] sm:$0xff] }
  0xbd   : > { %8179 = vst [vmem:[#allocation63_spill] sm:$0xff] %v7101_v17  ;;  %5284 = vmatprep.mubr.msk.f32.mxu0 %vm1103_vm4, %v7101_v17  ;;  %v2371_v18 = vrot.slane %v7089_v8, 1  ;;  %v1007_v23 = vsel %vm899_vm5, %v5977_v27, %v953_v31  ;;  %v741_v26 = vadd.f32 1.0, %v5981_v56  ;;  %v1072_v31 = vld [vmem:[%s7098_s9 + $0x18] sm:$0xff] }
  0xbe   : > { %v7110_v13 = vmul.f32 %v1007_v23, %v6943_v51  ;;  %v2373_v45 = vrot.slane %v7104_v28, 1  ;;  %5040 = vmatprep.mubr.msk.f32.mxu1 %vm1103_vm4, %v7104_v28  ;;  %5986 = vrcp.f32 %v740_v57  ;;  %v1070_v51 = vld [vmem:[%s7098_s9 + $0x8] sm:$0xff]  ;;  %v1073_v57 = vld [vmem:[%s7098_s9 + $0x20] sm:$0xff]  ;;  %v350_v23 = vld [vmem:[%s6096_s16 + $0x198] sm:$0xff] }
  0xbf   : > { %v7117_v14 = vsel %vm2297_vm10, %v2369_v35, %v2371_v18  ;;  %5988 = vrcp.f32 %v741_v26  ;;  %v7136_v35 = vld [vmem:[%s8011_s3 + $0x30] sm:$0xff] }
  0xc0   : > { %8180 = vst [vmem:[#allocation64_spill] sm:$0xff] %v7117_v14  ;;  %5285 = vmatmul.mubr.msk.f32.gmra.mrb[26].mxu0 %vm1103_vm4, %v7117_v14  ;;  %v2374_v36 = vrot.slane %v7110_v13, 1  ;;  %5041 = vmatmul.mubr.msk.f32.gmra.mrb[30].mxu1 %vm1103_vm4, %v7110_v13 }
  0xc1   : > { %5045 = vmatprep.mubr.msk.f32.mxu1 %vm1425_vm6, %v1069_v61  ;;  %v351_v61 = vld [vmem:[%s6096_s16 + $0x1a0] sm:$0xff] }
  0xc2   : > { %v5983_v11 = vpop.eup %5982  ;;  %v7127_v40 = vsel %vm2297_vm10, %v2373_v45, %v2374_v36 }
  0xc3   : > { %8181 = vst [vmem:[#allocation65_spill] sm:$0xff] %v7127_v40  ;;  %5287 = vmatprep.mubr.msk.f32.mxu0 %vm1103_vm4, %v7127_v40  ;;  %v954_v27 = vmul.f32 %v5983_v11, %v5969_v39 }
  0xc4   : > { %5046 = vmatmul.mubr.msk.f32.vlgmr.msra.gmra.mrb[0].mxu1 %vm1425_vm6, %v1070_v51 }
  0xc5   : > { %v1008_v25 = vsel %vm900_vm7, %v5983_v11, %v954_v27  ;;  %5048 = vmatprep.mubr.msk.f32.mxu1 %vm1425_vm6, %v1071_v42  ;;  %5094 = vmatpush3.msra.mxu1 %v6008_v15  ;;  %v1074_v42 = vld [vmem:[%s7098_s9 + $0x28] sm:$0xff]  ;;  %v1075_v15 = vld [vmem:[%s7098_s9 + $0x30] sm:$0xff] }
  0xc6   : > { %v5985_v22 = vpop.eup %5984  ;;  %v7145_v39 = vmul.f32 %v1008_v25, %v6979_v12  ;;  %5143 = vmatprep.subr.mxu1 %v7136_v35 }
  0xc7   : > { %v955_v18 = vmul.f32 %v5985_v22, %v5975_v50 }
  0xc8   : > { %v5987_v26 = vpop.eup %5986  ;;  %v2376_v45 = vrot.slane %v7145_v39, 1  ;;  %5049 = vmatmul.mubr.msk.f32.gmra.mrb[2].mxu1 %vm1425_vm6, %v1072_v31  ;;  %v411_v31 = vmul.f32 %v6703_v46, %v350_v23  ;;  %v1076_v23 = vld [vmem:[%s7098_s9 + $0x38] sm:$0xff] }
  0xc9   : > { %v5989_v12 = vpop.eup %5988  ;;  %v956_v51 = vmul.f32 %v5987_v26, %v5979_v43  ;;  %v1009_v11 = vsel %vm901_vm8, %v5985_v22, %v955_v18  ;;  %5051 = vmatprep.mubr.msk.f32.mxu1 %vm1425_vm6, %v1073_v57  ;;  %v412_v22 = vmul.f32 %v6703_v46, %v351_v61  ;;  %v352_v57 = vld [vmem:[%s6096_s16 + $0x1a8] sm:$0x3] }
  0xca   : > { %v7159_v50 = vsel %vm2297_vm10, %v2374_v36, %v2376_v45  ;;  %v7162_v27 = vmul.f32 %v1009_v11, %v6992_v24  ;;  %v957_v25 = vmul.f32 %v5989_v12, %v5981_v56  ;;  %v1077_v45 = vld [vmem:[%s7098_s9 + $0x40] sm:$0xff]  ;;  %v7183_v61 = vadd.f32 %v6690_v29, %v411_v31  ;;  %v301_v11 = vld [vmem:[%s6096_s16 + $0x10] sm:$0x3] }
  0xcb   : > { %8182 = vst [vmem:[#allocation66_spill] sm:$0xff] %v7159_v50  ;;  %5288 = vmatmul.mubr.msk.f32.gmra.mrb[28].mxu0 %vm1103_vm4, %v7159_v50  ;;  %v1010_v43 = vsel %vm902_vm9, %v5987_v26, %v956_v51  ;;  %v7188_v51 = vadd.f32 %v6690_v29, %v412_v22  ;;  %v362_v22 = vmul.f32 %v6703_v46, %v301_v11  ;;  %v1082_v11 = vld [vmem:[%s7098_s9 + $0x68] sm:$0xff] }
  0xcc   : > { %v7171_v18 = vmul.f32 %v1010_v43, %v6995_v34  ;;  %v2702_v36 = vrot.slane %v7162_v27, 1  ;;  %v1011_v24 = vsel %vm903_vm11, %v5989_v12, %v957_v25  ;;  %5052 = vmatmul.mubr.msk.f32.gmra.mrb[4].mxu1 %vm1425_vm6, %v1074_v42  ;;  %v413_v34 = vmul.f32 %v6703_v46, %v352_v57  ;;  %v1078_v25 = vld [vmem:[%s7098_s9 + $0x48] sm:$0xff]  ;;  %v1081_v46 = vld [vmem:[%s7098_s9 + $0x60] sm:$0xff] }
  0xcd   : > { %v7176_v56 = vmul.f32 %v1011_v24, %v7014_v6  ;;  %5054 = vmatprep.mubr.msk.f32.mxu1 %vm1425_vm6, %v1075_v15  ;;  %v1079_v15 = vld [vmem:[%s7098_s9 + $0x50] sm:$0xff]  ;;  %v526_v31 = vand.u32 2147483647, %v7183_v61  ;;  %v527_v57 = vand.u32 2147483647, %v7188_v51  ;;  %v7219_v24 = vld [vmem:[%s8011_s3 + $0x28] sm:$0xff] }
  0xce   : > { %8183 = vst [vmem:[#allocation67_spill] sm:$0xff] %v7171_v18  ;;  %v2703_v26 = vrot.slane %v7171_v18, 1  ;;  %v7207_v43 = vadd.f32 %v6690_v29, %v413_v34  ;;  %v6009_v34 = vld [vmem:[%s8011_s3 + $0x10] sm:$0xff]  ;;  %vm904_vm12 = vcmp.ge.f32.partialorder %v7183_v61, 0.0  ;;  %vm905_vm13 = vcmp.ge.f32.partialorder %v7188_v51, 0.0 }
  0xcf   : > { %8184 = vst [vmem:[#allocation68_spill] sm:$0xff] %v7176_v56  ;;  %v2705_v12 = vrot.slane %v7176_v56, 1 }
  0xd0   : > { %v7192_v6 = vsel %vm2297_vm10, %v2702_v36, %v2703_v26  ;;  %5055 = vmatmul.mubr.msk.f32.gmra.mrb[6].mxu1 %vm1425_vm6, %v1076_v23  ;;  %v1080_v36 = vld [vmem:[%s7098_s9 + $0x58] sm:$0xff]  ;;  %v580_v23 = vsub.f32 0.0, %v526_v31  ;;  %vm906_vm14 = vcmp.ge.f32.partialorder %v7207_v43, 0.0 }
  0xd1   : > { %5290 = vmatprep.mubr.msk.f32.mxu0 %vm1103_vm4, %v7192_v6  ;;  %v7198_v42 = vsel %vm2297_vm10, %v2703_v26, %v2705_v12  ;;  %5057 = vmatprep.mubr.msk.f32.mxu1 %vm1425_vm6, %v1077_v45  ;;  %v528_v26 = vand.u32 2147483647, %v7207_v43  ;;  %v7226_v45 = vadd.f32 %v6690_v29, %v362_v22  ;;  %v581_v12 = vsub.f32 0.0, %v527_v57  ;;  %v1083_v29 = vld [vmem:[%s7098_s9 + $0x70] sm:$0xff]  ;;  %v1084_v57 = vld [vmem:[%s7098_s9 + $0x78] sm:$0xff] }
  0xd2   : > { %5291 = vmatmul.mubr.msk.f32.gmra.mrb[30].mxu0 %vm1103_vm4, %v7198_v42 }
  0xd3   : > { %5295 = vmatprep.mubr.msk.f32.mxu0 %vm1103_vm4, %v6355_v54  ;;  %v477_v31 = vand.u32 2147483647, %v7226_v45  ;;  %v687_v22 = vmul.f32 1.442695, %v581_v12  ;;  %vm855_vm15 = vcmp.ge.f32.partialorder %v7226_v45, 0.0  ;;  %v8220_v54 = vld [vmem:[#allocation58_spill] sm:$0xff] }
  0xd4   : > { %5058 = vmatmul.mubr.msk.f32.gmra.mrb[8].mxu1 %vm1425_vm6, %v1078_v25  ;;  %v685_v25 = vmul.f32 1.442695, %v580_v23 }
  0xd5   : > { %5060 = vmatprep.mubr.msk.f32.mxu1 %vm1425_vm6, %v1079_v15  ;;  %v582_v15 = vsub.f32 0.0, %v528_v26  ;;  %v531_v23 = vsub.f32 0.0, %v477_v31  ;;  %v1086_v26 = vld [vmem:[%s7098_s9 + $0x88] sm:$0xff] }
  0xd6   : > { %5296 = vmatmul.mubr.msk.f32.vlgmr.msra.gmra.mrb[0].mxu0 %vm1103_vm4, %v6368_v3  ;;  %5990 = vpow2.f32 %v685_v25  ;;  %v1090_v31 = vld [vmem:[%s7098_s9 + $0xa8] sm:$0xff] }
  0xd7   : > { %5344 = vmatpush3.msra.mxu0 %v6009_v34  ;;  %5298 = vmatprep.mubr.msk.f32.mxu0 %vm1103_vm4, %v6450_v37  ;;  %5992 = vpow2.f32 %v687_v22  ;;  %v1087_v34 = vld [vmem:[%s7098_s9 + $0x90] sm:$0xff]  ;;  %v587_v12 = vmul.f32 1.442695, %v531_v23  ;;  %v1092_v23 = vld [vmem:[%s7098_s9 + $0xb8] sm:$0xff] }
  0xd8   : > { %5061 = vmatmul.mubr.msk.f32.gmra.mrb[10].mxu1 %vm1425_vm6, %v1080_v36  ;;  %5393 = vmatprep.subr.mxu0 %v7219_v24  ;;  %v1085_v36 = vld [vmem:[%s7098_s9 + $0x80] sm:$0xff]  ;;  %v1091_v22 = vld [vmem:[%s7098_s9 + $0xb0] sm:$0xff]  ;;  %v8218_v37 = vld [vmem:[#allocation57_spill] sm:$0xff] }
  0xd9   : > { %5063 = vmatprep.mubr.msk.f32.mxu1 %vm1425_vm6, %v1081_v46  ;;  %v689_v46 = vmul.f32 1.442695, %v582_v15 }
  0xda   : > { %5299 = vmatmul.mubr.msk.f32.gmra.mrb[2].mxu0 %vm1103_vm4, %v6466_v53  ;;  %v8217_v53 = vld [vmem:[#allocation52_spill] sm:$0xff] }
  0xdb   : > { %5301 = vmatprep.mubr.msk.f32.mxu0 %vm1103_vm4, %v6499_v20  ;;  %5994 = vpow2.f32 %v689_v46 }
  0xdc   : > { %5064 = vmatmul.mubr.msk.f32.gmra.mrb[12].mxu1 %vm1425_vm6, %v1082_v11  ;;  %v1088_v11 = vld [vmem:[%s7098_s9 + $0x98] sm:$0xff]  ;;  %5996 = vpow2.f32 %v587_v12 }
  0xdd   : > { %5066 = vmatprep.mubr.msk.f32.mxu1 %vm1425_vm6, %v1083_v29  ;;  %v1089_v29 = vld [vmem:[%s7098_s9 + $0xa0] sm:$0xff] }
  0xde   : > { %5302 = vmatmul.mubr.msk.f32.gmra.mrb[4].mxu0 %vm1103_vm4, %v6511_v7 }
  0xdf   : > { %5304 = vmatprep.mubr.msk.f32.mxu0 %vm1103_vm4, %v6524_v1  ;;  %v8215_v1 = vld [vmem:[#allocation51_spill] sm:$0xff] }
  0xe0   : > { %5067 = vmatmul.mubr.msk.f32.gmra.mrb[14].mxu1 %vm1425_vm6, %v1084_v57  ;;  %v5991_v25 = vpop.eup %5990 }
  0xe1   : > { %5069 = vmatprep.mubr.msk.f32.mxu1 %vm1425_vm6, %v1085_v36  ;;  %v5993_v15 = vpop.eup %5992  ;;  %v742_v57 = vadd.f32 1.0, %v5991_v25 }
  0xe2   : > { %5305 = vmatmul.mubr.msk.f32.gmra.mrb[6].mxu0 %vm1103_vm4, %v6535_v21  ;;  %v743_v46 = vadd.f32 1.0, %v5993_v15  ;;  %v8214_v21 = vld [vmem:[#allocation48_spill] sm:$0xff] }
  0xe3   : > { %5307 = vmatprep.mubr.msk.f32.mxu0 %vm1103_vm4, %v6615_v48  ;;  %5998 = vrcp.f32 %v742_v57  ;;  %v1097_v57 = vld [vmem:[%s7098_s9 + $0xe0] sm:$0xff] }
  0xe4   : > { %5070 = vmatmul.mubr.msk.f32.gmra.mrb[16].mxu1 %vm1425_vm6, %v1086_v26  ;;  %v1093_v26 = vld [vmem:[%s7098_s9 + $0xc0] sm:$0xff]  ;;  %6000 = vrcp.f32 %v743_v46 }
  0xe5   : > { %5072 = vmatprep.mubr.msk.f32.mxu1 %vm1425_vm6, %v1087_v34  ;;  %v5995_v36 = vpop.eup %5994 }
  0xe6   : > { %5308 = vmatmul.mubr.msk.f32.gmra.mrb[8].mxu0 %vm1103_vm4, %v6627_v10  ;;  %v744_v34 = vadd.f32 1.0, %v5995_v36  ;;  %v5997_v12 = vpop.eup %5996 }
  0xe7   : > { %5310 = vmatprep.mubr.msk.f32.mxu0 %vm1103_vm4, %v6714_v58  ;;  %v8212_v58 = vld [vmem:[#allocation47_spill] sm:$0xff] }
  0xe8   : > { %5073 = vmatmul.mubr.msk.f32.gmra.mrb[18].mxu1 %vm1425_vm6, %v1088_v11  ;;  %v1094_v11 = vld [vmem:[%s7098_s9 + $0xc8] sm:$0xff]  ;;  %6002 = vrcp.f32 %v744_v34  ;;  %v1099_v34 = vld [vmem:[%s7098_s9 + $0xf0] sm:$0xff] }
  0xe9   : > { %5075 = vmatprep.mubr.msk.f32.mxu1 %vm1425_vm6, %v1089_v29  ;;  %v1095_v29 = vld [vmem:[%s7098_s9 + $0xd0] sm:$0xff] }
  0xea   : > { %5311 = vmatmul.mubr.msk.f32.gmra.mrb[10].mxu0 %vm1103_vm4, %v6727_v5  ;;  %v8211_v5 = vld [vmem:[#allocation42_spill] sm:$0xff] }
  0xeb   : > { %5313 = vmatprep.mubr.msk.f32.mxu0 %vm1103_vm4, %v6755_v4  ;;  %v3286_v56 = vrot.slane %v8211_v5, 2 }
  0xec   : > { %5076 = vmatmul.mubr.msk.f32.gmra.mrb[20].mxu1 %vm1425_vm6, %v1090_v31  ;;  %v693_v31 = vadd.f32 1.0, %v5997_v12 }
  0xed   : > { %5078 = vmatprep.mubr.msk.f32.mxu1 %vm1425_vm6, %v1091_v22  ;;  %v1096_v22 = vld [vmem:[%s7098_s9 + $0xd8] sm:$0xff]  ;;  %v5999_v46 = vpop.eup %5998 }
  0xee   : > { %5314 = vmatmul.mubr.msk.f32.gmra.mrb[12].mxu0 %vm1103_vm4, %v6791_v38  ;;  %6004 = vrcp.f32 %v693_v31  ;;  %v958_v31 = vmul.f32 %v5999_v46, %v5991_v25  ;;  %v7327_v25 = vld [vmem:[%s8011_s3 + $0x8] sm:$0xff] }
  0xef   : > { %5316 = vmatprep.mubr.msk.f32.mxu0 %vm1103_vm4, %v6806_v62  ;;  %v8209_v62 = vld [vmem:[#allocation41_spill] sm:$0xff] }
  0xf0   : > { %5079 = vmatmul.mubr.msk.f32.gmra.mrb[22].mxu1 %vm1425_vm6, %v1092_v23  ;;  %v1098_v23 = vld [vmem:[%s7098_s9 + $0xe8] sm:$0xff]  ;;  %v3285_v3 = vrot.slane %v8209_v62, 2 }
  0xf1   : > { %5081 = vmatprep.mubr.msk.f32.mxu1 %vm1425_vm6, %v1093_v26  ;;  %v6001_v26 = vpop.eup %6000 }
  0xf2   : > { %5317 = vmatmul.mubr.msk.f32.gmra.mrb[14].mxu0 %vm1103_vm4, %v6827_v55  ;;  %v8208_v55 = vld [vmem:[#allocation38_spill] sm:$0xff] }
  0xf3   : > { %5319 = vmatprep.mubr.msk.f32.mxu0 %vm1103_vm4, %v6871_v19  ;;  %v3281_v20 = vrot.slane %v8208_v55, 2 }
  0xf4   : > { %5082 = vmatmul.mubr.msk.f32.gmra.mrb[24].mxu1 %vm1425_vm6, %v1094_v11  ;;  %v6003_v11 = vpop.eup %6002 }
  0xf5   : > { %5084 = vmatprep.mubr.msk.f32.mxu1 %vm1425_vm6, %v1095_v29  ;;  %v1100_v29 = vld [vmem:[%s7098_s9 + $0xf8] sm:$0xff] }
  0xf6   : > { %5320 = vmatmul.mubr.msk.f32.gmra.mrb[16].mxu0 %vm1103_vm4, %v6901_v60 }
  0xf7   : > { %5322 = vmatprep.mubr.msk.f32.mxu0 %vm1103_vm4, %v6920_v2  ;;  %v8206_v2 = vld [vmem:[#allocation36_spill] sm:$0xff] }
  0xf8   : > { %5085 = vmatmul.mubr.msk.f32.gmra.mrb[26].mxu1 %vm1425_vm6, %v1096_v22  ;;  %v959_v22 = vmul.f32 %v6001_v26, %v5993_v15  ;;  %v3280_v7 = vrot.slane %v8206_v2, 2 }
  0xf9   : > { %5087 = vmatprep.mubr.msk.f32.mxu1 %vm1425_vm6, %v1097_v57  ;;  %v960_v57 = vmul.f32 %v6003_v11, %v5995_v36 }
  0xfa   : > { %5323 = vmatmul.mubr.msk.f32.gmra.mrb[18].mxu0 %vm1103_vm4, %v6954_v9  ;;  %v1013_v9 = vsel %vm905_vm13, %v6001_v26, %v959_v22 }
  0xfb   : > { %5325 = vmatprep.mubr.msk.f32.mxu0 %vm1103_vm4, %v7001_v32  ;;  %v1012_v32 = vsel %vm904_vm12, %v5999_v46, %v958_v31  ;;  %v7333_v36 = vmul.f32 %v1013_v9, %v7188_v51  ;;  %v1014_v46 = vsel %vm906_vm14, %v6003_v11, %v960_v57  ;;  %v8192_v31 = vld [vmem:[#allocation2_spill] sm:$0xff]  ;;  %v8193_v57 = vld [vmem:[#allocation3_spill] sm:$0xff] }
  0xfc   : > { %5088 = vmatmul.mubr.msk.f32.gmra.mrb[28].mxu1 %vm1425_vm6, %v1098_v23  ;;  %v6005_v23 = vpop.eup %6004  ;;  %v7330_v15 = vmul.f32 %v1012_v32, %v7183_v61  ;;  %v7347_v9 = vmul.f32 %v1014_v46, %v7207_v43  ;;  %v3240_v22 = vrot.slane %v8192_v31, 2  ;;  %v8194_v46 = vld [vmem:[#allocation13_spill] sm:$0xff]  ;;  %v3300_v31 = vrot.slane %v8218_v37, 2 }
  0xfd   : > { %5090 = vmatprep.mubr.msk.f32.mxu1 %vm1425_vm6, %v1099_v34  ;;  %8186 = vst [vmem:[#allocation70_spill] sm:$0xff] %v7333_v36  ;;  %v909_v26 = vmul.f32 %v6005_v23, %v5997_v12  ;;  %v8187_v34 = vld [vmem:[#allocation5_spill] sm:$0xff]  ;;  %v2972_v61 = vrot.slane %v7333_v36, 1  ;;  %v8189_v12 = vld [vmem:[#allocation6_spill] sm:$0xff]  ;;  %v3290_v36 = vrot.slane %v8212_v58, 2 }
  0xfe   : > { %5326 = vmatmul.mubr.msk.f32.gmra.mrb[20].mxu0 %vm1103_vm4, %v7043_v59  ;;  %8185 = vst [vmem:[#allocation69_spill] sm:$0xff] %v7330_v15  ;;  %8188 = vst [vmem:[#allocation5_spill] sm:$0xff] %v7347_v9  ;;  %v2971_v32 = vrot.slane %v7330_v15, 1  ;;  %v2974_v43 = vrot.slane %v7347_v9, 1  ;;  %v3246_v9 = vrot.slane %v6285_v41, 2  ;;  %v8205_v59 = vld [vmem:[#allocation33_spill] sm:$0xff] }
  0xff   : > { %5328 = vmatprep.mubr.msk.f32.mxu0 %vm1103_vm4, %v7058_v49  ;;  %v963_v51 = vsel %vm855_vm15, %v6005_v23, %v909_v26  ;;  %v3241_v23 = vrot.slane %v8193_v57, 2  ;;  %v8195_v26 = vld [vmem:[#allocation15_spill] sm:$0xff]  ;;  %v3276_v48 = vrot.slane %v8205_v59, 2  ;;  %v3295_v15 = vrot.slane %v8215_v1, 2 }
 0x100   : > { %5091 = vmatmul.mubr.msk.f32.gmra.mrb[30].mxu1 %vm1425_vm6, %v1100_v29  ;;  %v7361_v11 = vmul.f32 %v963_v51, %v7226_v45  ;;  %v2973_v29 = vsel %vm2297_vm10, %v2971_v32, %v2972_v61  ;;  %v3245_v51 = vrot.slane %v6279_v63, 2  ;;  %v3296_v57 = vrot.slane %v8217_v53, 2 }
 0x101   : > { %5095 = vmatprep.mubr.msk.f32.mxu1 %vm1103_vm4, %v6279_v63  ;;  %v3242_v32 = vsel %vm3239_vm0, %v3240_v22, %v3241_v23  ;;  %v3250_v63 = vrot.slane %v8187_v34, 2  ;;  %v8199_v22 = vld [vmem:[#allocation21_spill] sm:$0xff] }
 0x102   : > { %5329 = vmatmul.mubr.msk.f32.gmra.mrb[22].mxu0 %vm1103_vm4, %v7067_v0  ;;  %8191 = vst [vmem:[#allocation6_spill] sm:$0xff] %v7361_v11  ;;  %v3243_v45 = vrot.slane %v7361_v11, 2  ;;  %v8202_v0 = vld [vmem:[#allocation28_spill] sm:$0xff]  ;;  %v3266_v19 = vrot.slane %v8199_v22, 2  ;;  %v3291_v11 = vrot.slane %v8214_v21, 2 }
 0x103   : > { %5331 = vmatprep.mubr.msk.f32.mxu0 %vm1103_vm4, %v7101_v17  ;;  %v3256_v17 = vrot.slane %v8194_v46, 2  ;;  %v3271_v4 = vrot.slane %v8202_v0, 2 }
 0x104   : > { %5096 = vmatmul.mubr.msk.f32.vlgmr.msra.gmra.mrb[0].mxu1 %vm1103_vm4, %v6285_v41  ;;  %v3251_v41 = vrot.slane %v8189_v12, 2 }
 0x105   : > { %5098 = vmatprep.mubr.msk.f32.mxu1 %vm1103_vm4, %v8187_v34  ;;  %5144 = vmatpush3.msra.mxu1 %v7136_v35  ;;  %v8190_v35 = vld [vmem:[#allocation12_spill] sm:$0xff] }
 0x106   : > { %5332 = vmatmul.mubr.msk.f32.gmra.mrb[24].mxu0 %vm1103_vm4, %v7117_v14  ;;  %5193 = vmatprep.subr.mxu1 %v7327_v25  ;;  %v8200_v14 = vld [vmem:[#allocation27_spill] sm:$0xff] }
 0x107   : > { %5334 = vmatprep.mubr.msk.f32.mxu0 %vm1103_vm4, %v7127_v40  ;;  %v8197_v40 = vld [vmem:[#allocation20_spill] sm:$0xff]  ;;  %v3270_v38 = vrot.slane %v8200_v14, 2 }
 0x108   : > { %5099 = vmatmul.mubr.msk.f32.gmra.mrb[2].mxu1 %vm1103_vm4, %v8189_v12  ;;  %v3265_v60 = vrot.slane %v8197_v40, 2 }
 0x109   : > { %5101 = vmatprep.mubr.msk.f32.mxu1 %vm1103_vm4, %v8190_v35 }
 0x10a   : > { %5335 = vmatmul.mubr.msk.f32.gmra.mrb[26].mxu0 %vm1103_vm4, %v7159_v50  ;;  %v8196_v50 = vld [vmem:[#allocation17_spill] sm:$0xff] }
 0x10b   : > { %5337 = vmatprep.mubr.msk.f32.mxu0 %vm1103_vm4, %v7192_v6  ;;  %v2975_v6 = vsel %vm2297_vm10, %v2972_v61, %v2974_v43  ;;  %v8198_v61 = vld [vmem:[#allocation4_spill] sm:$0xff]  ;;  %v3261_v49 = vrot.slane %v8196_v50, 2 }
 0x10c   : > { %5102 = vmatmul.mubr.msk.f32.gmra.mrb[4].mxu1 %vm1103_vm4, %v8194_v46  ;;  %v3248_v43 = vrot.slane %v8198_v61, 2  ;;  %v3255_v61 = vrot.slane %v8190_v35, 2 }
 0x10d   : > { %5104 = vmatprep.mubr.msk.f32.mxu1 %vm1103_vm4, %v8195_v26 }
 0x10e   : > { %5338 = vmatmul.mubr.msk.f32.gmra.mrb[28].mxu0 %vm1103_vm4, %v7198_v42  ;;  %v3244_v42 = vsel %vm3239_vm0, %v3241_v23, %v3243_v45  ;;  %v7405_v23 = vsel %vm3239_vm0, %v3246_v9, %v3248_v43  ;;  %v8201_v45 = vld [vmem:[#allocation8_spill] sm:$0xff] }
 0x10f   : > { %5340 = vmatprep.mubr.msk.f32.mxu0 %vm1103_vm4, %v2973_v29  ;;  %v7387_v29 = vsel %vm3239_vm0, %v3245_v51, %v3246_v9  ;;  %v7409_v51 = vsel %vm3239_vm0, %v3250_v63, %v3251_v41  ;;  %v7427_v63 = vsel %vm3239_vm0, %v3255_v61, %v3256_v17 }
 0x110   : > { %5105 = vmatmul.mubr.msk.f32.gmra.mrb[6].mxu1 %vm1103_vm4, %v8196_v50 }
 0x111   : > { %5107 = vmatprep.mubr.msk.f32.mxu1 %vm1103_vm4, %v8197_v40 }
 0x112   : > { %5341 = vmatmul.mubr.msk.f32.gmra.mrb[30].mxu0 %vm1103_vm4, %v2975_v6  ;;  %v7398_v6 = vld [vmem:[%s8011_s3 + $0x40] sm:$0xff] }
 0x113   : > { %5345 = vmatprep.mubr.msk.f32.mxu0 %vm1103_vm4, %v3242_v32  ;;  %v3253_v32 = vrot.slane %v8201_v45, 2  ;;  %v3260_v45 = vrot.slane %v8195_v26, 2 }
 0x114   : > { %5108 = vmatmul.mubr.msk.f32.gmra.mrb[8].mxu1 %vm1103_vm4, %v8199_v22 }
 0x115   : > { %5110 = vmatprep.mubr.msk.f32.mxu1 %vm1103_vm4, %v8200_v14  ;;  %v7423_v9 = vsel %vm3239_vm0, %v3251_v41, %v3253_v32  ;;  %v8207_v32 = vld [vmem:[#allocation19_spill] sm:$0xff] }
 0x116   : > { %5346 = vmatmul.mubr.msk.f32.vlgmr.msra.gmra.mrb[0].mxu0 %vm1103_vm4, %v3244_v42  ;;  %v8204_v42 = vld [vmem:[#allocation14_spill] sm:$0xff]  ;;  %v3263_v61 = vrot.slane %v8207_v32, 2  ;;  %v7461_v32 = vsel %vm3239_vm0, %v3265_v60, %v3266_v19  ;;  %v8213_v60 = vld [vmem:[#allocation29_spill] sm:$0xff] }
 0x117   : > { %5394 = vmatpush3.msra.mxu0 %v7219_v24  ;;  %5348 = vmatprep.mubr.msk.f32.mxu0 %vm1103_vm4, %v7387_v29  ;;  %v8203_v24 = vld [vmem:[#allocation32_spill] sm:$0xff]  ;;  %v3258_v43 = vrot.slane %v8204_v42, 2  ;;  %v7444_v42 = vsel %vm3239_vm0, %v3260_v45, %v3261_v49 }
 0x118   : > { %5111 = vmatmul.mubr.msk.f32.gmra.mrb[10].mxu1 %vm1103_vm4, %v8202_v0  ;;  %5443 = vmatprep.subr.mxu0 %v7398_v6  ;;  %v3275_v10 = vrot.slane %v8203_v24, 2 }
 0x119   : > { %5113 = vmatprep.mubr.msk.f32.mxu1 %vm1103_vm4, %v8203_v24  ;;  %v7440_v41 = vsel %vm3239_vm0, %v3256_v17, %v3258_v43  ;;  %v7457_v17 = vsel %vm3239_vm0, %v3261_v49, %v3263_v61  ;;  %v8210_v43 = vld [vmem:[#allocation24_spill] sm:$0xff]  ;;  %v3273_v61 = vrot.slane %v8213_v60, 2 }
 0x11a   : > { %5349 = vmatmul.mubr.msk.f32.gmra.mrb[2].mxu0 %vm1103_vm4, %v7405_v23  ;;  %v3268_v45 = vrot.slane %v8210_v43, 2  ;;  %v7478_v43 = vsel %vm3239_vm0, %v3270_v38, %v3271_v4  ;;  %v8216_v38 = vld [vmem:[#allocation34_spill] sm:$0xff]  ;;  %v7495_v60 = vsel %vm3239_vm0, %v3275_v10, %v3276_v48  ;;  %v8219_v10 = vld [vmem:[#allocation40_spill] sm:$0xff] }
 0x11b   : > { %5351 = vmatprep.mubr.msk.f32.mxu0 %vm1103_vm4, %v7409_v51 }
 0x11c   : > { %5114 = vmatmul.mubr.msk.f32.gmra.mrb[12].mxu1 %vm1103_vm4, %v8205_v59  ;;  %v7474_v49 = vsel %vm3239_vm0, %v3266_v19, %v3268_v45  ;;  %v7491_v19 = vsel %vm3239_vm0, %v3271_v4, %v3273_v61  ;;  %v3278_v45 = vrot.slane %v8216_v38, 2  ;;  %v3283_v61 = vrot.slane %v8219_v10, 2 }
 0x11d   : > { %5116 = vmatprep.mubr.msk.f32.mxu1 %vm1103_vm4, %v8206_v2  ;;  %v7512_v38 = vsel %vm3239_vm0, %v3280_v7, %v3281_v20  ;;  %v8221_v7 = vld [vmem:[#allocation44_spill] sm:$0xff]  ;;  %v7529_v10 = vsel %vm3239_vm0, %v3285_v3, %v3286_v56  ;;  %v8223_v3 = vld [vmem:[#allocation50_spill] sm:$0xff] }
 0x11e   : > { %5352 = vmatmul.mubr.msk.f32.gmra.mrb[4].mxu0 %vm1103_vm4, %v7423_v9  ;;  %v7508_v4 = vsel %vm3239_vm0, %v3276_v48, %v3278_v45  ;;  %v7525_v48 = vsel %vm3239_vm0, %v3281_v20, %v3283_v61  ;;  %v3288_v45 = vrot.slane %v8221_v7, 2  ;;  %8222 = vst [vmem:[#allocation12_spill] sm:$0xff] %v7529_v10  ;;  %v3293_v61 = vrot.slane %v8223_v3, 2 }
 0x11f   : > { %5354 = vmatprep.mubr.msk.f32.mxu0 %vm1103_vm4, %v7427_v63  ;;  %v7546_v7 = vsel %vm3239_vm0, %v3290_v36, %v3291_v11  ;;  %v8225_v36 = vld [vmem:[#allocation55_spill] sm:$0xff]  ;;  %v7563_v3 = vsel %vm3239_vm0, %v3295_v15, %v3296_v57  ;;  %v3303_v15 = vrot.slane %v7025_v52, 2 }
 0x120   : > { %5117 = vmatmul.mubr.msk.f32.gmra.mrb[14].mxu1 %vm1103_vm4, %v8208_v55  ;;  %v7542_v20 = vsel %vm3239_vm0, %v3286_v56, %v3288_v45  ;;  %8224 = vst [vmem:[#allocation13_spill] sm:$0xff] %v7546_v7  ;;  %v7559_v56 = vsel %vm3239_vm0, %v3291_v11, %v3293_v61  ;;  %v3298_v45 = vrot.slane %v8225_v36, 2  ;;  %v3305_v36 = vrot.slane %v7032_v16, 2 }
 0x121   : > { %5119 = vmatprep.mubr.msk.f32.mxu1 %vm1103_vm4, %v8209_v62 }
 0x122   : > { %5355 = vmatmul.mubr.msk.f32.gmra.mrb[6].mxu0 %vm1103_vm4, %v7440_v41  ;;  %v7576_v11 = vsel %vm3239_vm0, %v3296_v57, %v3298_v45  ;;  %v3310_v45 = vrot.slane %v7072_v47, 2 }
 0x123   : > { %5357 = vmatprep.mubr.msk.f32.mxu0 %vm1103_vm4, %v7444_v42 }
 0x124   : > { %5120 = vmatmul.mubr.msk.f32.gmra.mrb[16].mxu1 %vm1103_vm4, %v8211_v5 }
 0x125   : > { %5122 = vmatprep.mubr.msk.f32.mxu1 %vm1103_vm4, %v8212_v58 }
 0x126   : > { %5358 = vmatmul.mubr.msk.f32.gmra.mrb[8].mxu0 %vm1103_vm4, %v7457_v17 }
 0x127   : > { %5360 = vmatprep.mubr.msk.f32.mxu0 %vm1103_vm4, %v7461_v32 }
 0x128   : > { %5123 = vmatmul.mubr.msk.f32.gmra.mrb[18].mxu1 %vm1103_vm4, %v8214_v21 }
 0x129   : > { %5125 = vmatprep.mubr.msk.f32.mxu1 %vm1103_vm4, %v8215_v1 }
 0x12a   : > { %5361 = vmatmul.mubr.msk.f32.gmra.mrb[10].mxu0 %vm1103_vm4, %v7474_v49 }
 0x12b   : > { %5363 = vmatprep.mubr.msk.f32.mxu0 %vm1103_vm4, %v7478_v43 }
 0x12c   : > { %5126 = vmatmul.mubr.msk.f32.gmra.mrb[20].mxu1 %vm1103_vm4, %v8217_v53 }
 0x12d   : > { %5128 = vmatprep.mubr.msk.f32.mxu1 %vm1103_vm4, %v8218_v37 }
 0x12e   : > { %5364 = vmatmul.mubr.msk.f32.gmra.mrb[12].mxu0 %vm1103_vm4, %v7491_v19 }
 0x12f   : > { %5366 = vmatprep.mubr.msk.f32.mxu0 %vm1103_vm4, %v7495_v60 }
 0x130   : > { %5129 = vmatmul.mubr.msk.f32.gmra.mrb[22].mxu1 %vm1103_vm4, %v8220_v54 }
 0x131   : > { %5131 = vmatprep.mubr.msk.f32.mxu1 %vm1103_vm4, %v7032_v16 }
 0x132   : > { %5367 = vmatmul.mubr.msk.f32.gmra.mrb[14].mxu0 %vm1103_vm4, %v7508_v4 }
 0x133   : > { %5369 = vmatprep.mubr.msk.f32.mxu0 %vm1103_vm4, %v7512_v38 }
 0x134   : > { %5132 = vmatmul.mubr.msk.f32.gmra.mrb[24].mxu1 %vm1103_vm4, %v7046_v33 }
 0x135   : > { %5134 = vmatprep.mubr.msk.f32.mxu1 %vm1103_vm4, %v7072_v47 }
 0x136   : > { %5370 = vmatmul.mubr.msk.f32.gmra.mrb[16].mxu0 %vm1103_vm4, %v7525_v48 }
 0x137   : > { %5372 = vmatprep.mubr.msk.f32.mxu0 %vm1103_vm4, %v7529_v10  ;;  %v3301_v10 = vrot.slane %v8220_v54, 2 }
 0x138   : > { %5135 = vmatmul.mubr.msk.f32.gmra.mrb[26].mxu1 %vm1103_vm4, %v7076_v30 }
 0x139   : > { %5137 = vmatprep.mubr.msk.f32.mxu1 %vm1103_vm4, %v7104_v28  ;;  %v7580_v61 = vsel %vm3239_vm0, %v3300_v31, %v3301_v10  ;;  %v7593_v52 = vsel %vm3239_vm0, %v3301_v10, %v3303_v15  ;;  %v3308_v31 = vrot.slane %v7052_v44, 2  ;;  %v8247_v15 = vld [vmem:[#allocation35_spill] sm:$0xff] }
 0x13a   : > { %5373 = vmatmul.mubr.msk.f32.gmra.mrb[18].mxu0 %vm1103_vm4, %v7542_v20 }
 0x13b   : > { %5375 = vmatprep.mubr.msk.f32.mxu0 %vm1103_vm4, %v7546_v7  ;;  %v3306_v7 = vrot.slane %v7046_v33, 2 }
 0x13c   : > { %5138 = vmatmul.mubr.msk.f32.gmra.mrb[28].mxu1 %vm1103_vm4, %v7110_v13 }
 0x13d   : > { %5140 = vmatprep.mubr.msk.f32.mxu1 %vm1103_vm4, %v7162_v27  ;;  %v7597_v57 = vsel %vm3239_vm0, %v3305_v36, %v3306_v7  ;;  %v7611_v44 = vsel %vm3239_vm0, %v3306_v7, %v3308_v31  ;;  %v8261_v36 = vld [vmem:[#allocation63_spill] sm:$0xff]  ;;  %v8263_v31 = vld [vmem:[#allocation65_spill] sm:$0xff] }
 0x13e   : > { %5376 = vmatmul.mubr.msk.f32.gmra.mrb[20].mxu0 %vm1103_vm4, %v7559_v56 }
 0x13f   : > { %5378 = vmatprep.mubr.msk.f32.mxu0 %vm1103_vm4, %v7563_v3 }
 0x140   : > { %5141 = vmatmul.mubr.msk.f32.gmra.mrb[30].mxu1 %vm1103_vm4, %v7171_v18  ;;  %v3311_v18 = vrot.slane %v7076_v30, 2 }
 0x141   : > { %5145 = vmatprep.mubr.msk.f32.mxu1 %vm1103_vm4, %v8187_v34  ;;  %v3313_v34 = vrot.slane %v7089_v8, 2 }
 0x142   : > { %5379 = vmatmul.mubr.msk.f32.gmra.mrb[22].mxu0 %vm1103_vm4, %v7576_v11  ;;  %v7615_v10 = vsel %vm3239_vm0, %v3310_v45, %v3311_v18 }
 0x143   : > { %5381 = vmatprep.mubr.msk.f32.mxu0 %vm1103_vm4, %v7580_v61  ;;  %v7628_v8 = vsel %vm3239_vm0, %v3311_v18, %v3313_v34 }
 0x144   : > { %5146 = vmatmul.mubr.msk.f32.vlgmr.msra.gmra.mrb[0].mxu1 %vm1103_vm4, %v8189_v12  ;;  %v3315_v12 = vrot.slane %v7104_v28, 2 }
 0x145   : > { %5148 = vmatprep.mubr.msk.f32.mxu1 %vm1103_vm4, %v8190_v35  ;;  %5194 = vmatpush3.msra.mxu1 %v7327_v25  ;;  %v3316_v35 = vrot.slane %v7110_v13, 2  ;;  %v3318_v25 = vrot.slane %v7145_v39, 2 }
 0x146   : > { %5382 = vmatmul.mubr.msk.f32.gmra.mrb[24].mxu0 %vm1103_vm4, %v7593_v52 }
 0x147   : > { %5384 = vmatprep.mubr.msk.f32.mxu0 %vm1103_vm4, %v7597_v57  ;;  %v7632_v7 = vsel %vm3239_vm0, %v3315_v12, %v3316_v35  ;;  %v7643_v18 = vsel %vm3239_vm0, %v3316_v35, %v3318_v25 }
 0x148   : > { %5149 = vmatmul.mubr.msk.f32.gmra.mrb[2].mxu1 %vm1103_vm4, %v8194_v46 }
 0x149   : > { %5151 = vmatprep.mubr.msk.f32.mxu1 %vm1103_vm4, %v8195_v26  ;;  %v8240_v26 = vld [vmem:[#allocation18_spill] sm:$0xff] }
 0x14a   : > { %5385 = vmatmul.mubr.msk.f32.gmra.mrb[26].mxu0 %vm1103_vm4, %v7611_v44 }
 0x14b   : > { %5387 = vmatprep.mubr.msk.f32.mxu0 %vm1103_vm4, %v7615_v10 }
 0x14c   : > { %5152 = vmatmul.mubr.msk.f32.gmra.mrb[4].mxu1 %vm1103_vm4, %v8196_v50  ;;  %v8238_v50 = vld [vmem:[#allocation11_spill] sm:$0xff] }
 0x14d   : > { %5154 = vmatprep.mubr.msk.f32.mxu1 %vm1103_vm4, %v8197_v40 }
 0x14e   : > { %5388 = vmatmul.mubr.msk.f32.gmra.mrb[28].mxu0 %vm1103_vm4, %v7628_v8 }
 0x14f   : > { %5390 = vmatprep.mubr.msk.f32.mxu0 %vm1103_vm4, %v7632_v7 }
 0x150   : > { %5155 = vmatmul.mubr.msk.f32.gmra.mrb[6].mxu1 %vm1103_vm4, %v8199_v22  ;;  %v8242_v22 = vld [vmem:[#allocation23_spill] sm:$0xff] }
 0x151   : > { %5157 = vmatprep.mubr.msk.f32.mxu1 %vm1103_vm4, %v8200_v14  ;;  %v8237_v14 = vld [vmem:[#allocation68_spill] sm:$0xff] }
 0x152   : > { %5391 = vmatmul.mubr.msk.f32.gmra.mrb[30].mxu0 %vm1103_vm4, %v7643_v18  ;;  %v3646_v40 = vrot.slane %v8237_v14, 2 }
 0x153   : > { %5395 = vmatprep.mubr.msk.f32.mxu0 %vm1103_vm4, %v7387_v29  ;;  %v8241_v29 = vld [vmem:[#allocation22_spill] sm:$0xff] }
 0x154   : > { %5158 = vmatmul.mubr.msk.f32.gmra.mrb[8].mxu1 %vm1103_vm4, %v8202_v0  ;;  %v8234_v0 = vld [vmem:[#allocation7_spill] sm:$0xff] }
 0x155   : > { %5160 = vmatprep.mubr.msk.f32.mxu1 %vm1103_vm4, %v8203_v24  ;;  %v8245_v24 = vld [vmem:[#allocation30_spill] sm:$0xff] }
 0x156   : > { %5396 = vmatmul.mubr.msk.f32.vlgmr.msra.gmra.mrb[0].mxu0 %vm1103_vm4, %v7405_v23  ;;  %v8244_v23 = vld [vmem:[#allocation26_spill] sm:$0xff] }
 0x157   : > { %5444 = vmatpush3.msra.mxu0 %v7398_v6  ;;  %5398 = vmatprep.mubr.msk.f32.mxu0 %vm1103_vm4, %v7409_v51  ;;  %v8243_v6 = vld [vmem:[#allocation25_spill] sm:$0xff] }
 0x158   : > { %5161 = vmatmul.mubr.msk.f32.gmra.mrb[10].mxu1 %vm1103_vm4, %v8205_v59  ;;  %v8233_v59 = vld [vmem:[#allocation70_spill] sm:$0xff] }
 0x159   : > { %5163 = vmatprep.mubr.msk.f32.mxu1 %vm1103_vm4, %v8206_v2 }
 0x15a   : > { %5399 = vmatmul.mubr.msk.f32.gmra.mrb[2].mxu0 %vm1103_vm4, %v7423_v9 }
 0x15b   : > { %5401 = vmatprep.mubr.msk.f32.mxu0 %vm1103_vm4, %v7427_v63 }
 0x15c   : > { %5164 = vmatmul.mubr.msk.f32.gmra.mrb[12].mxu1 %vm1103_vm4, %v8208_v55 }
 0x15d   : > { %5166 = vmatprep.mubr.msk.f32.mxu1 %vm1103_vm4, %v8209_v62  ;;  %v8232_v62 = vld [vmem:[#allocation6_spill] sm:$0xff] }
 0x15e   : > { %5402 = vmatmul.mubr.msk.f32.gmra.mrb[4].mxu0 %vm1103_vm4, %v7440_v41  ;;  %v2301_v55 = vrot.slane %v8232_v62, 1 }
 0x15f   : > { %5404 = vmatprep.mubr.msk.f32.mxu0 %vm1103_vm4, %v7444_v42 }
 0x160   : > { %5167 = vmatmul.mubr.msk.f32.gmra.mrb[14].mxu1 %vm1103_vm4, %v8211_v5  ;;  %v8231_v5 = vld [vmem:[#allocation69_spill] sm:$0xff] }
 0x161   : > { %5169 = vmatprep.mubr.msk.f32.mxu1 %vm1103_vm4, %v8212_v58  ;;  %v8230_v58 = vld [vmem:[#allocation67_spill] sm:$0xff] }
 0x162   : > { %5405 = vmatmul.mubr.msk.f32.gmra.mrb[6].mxu0 %vm1103_vm4, %v7457_v17 }
 0x163   : > { %5407 = vmatprep.mubr.msk.f32.mxu0 %vm1103_vm4, %v7461_v32 }
 0x164   : > { %5170 = vmatmul.mubr.msk.f32.gmra.mrb[16].mxu1 %vm1103_vm4, %v8214_v21 }
 0x165   : > { %5172 = vmatprep.mubr.msk.f32.mxu1 %vm1103_vm4, %v8215_v1  ;;  %v8229_v1 = vld [vmem:[#allocation3_spill] sm:$0xff] }
 0x166   : > { %5408 = vmatmul.mubr.msk.f32.gmra.mrb[8].mxu0 %vm1103_vm4, %v7474_v49  ;;  %v2299_v21 = vrot.slane %v8229_v1, 1 }
 0x167   : > { %5410 = vmatprep.mubr.msk.f32.mxu0 %vm1103_vm4, %v7478_v43 }
 0x168   : > { %5173 = vmatmul.mubr.msk.f32.gmra.mrb[18].mxu1 %vm1103_vm4, %v8217_v53 }
 0x169   : > { %5175 = vmatprep.mubr.msk.f32.mxu1 %vm1103_vm4, %v8218_v37  ;;  %v8226_v37 = vld [vmem:[#allocation12_spill] sm:$0xff] }
 0x16a   : > { %5411 = vmatmul.mubr.msk.f32.gmra.mrb[10].mxu0 %vm1103_vm4, %v7491_v19 }
 0x16b   : > { %5413 = vmatprep.mubr.msk.f32.mxu0 %vm1103_vm4, %v7495_v60 }
 0x16c   : > { %5176 = vmatmul.mubr.msk.f32.gmra.mrb[20].mxu1 %vm1103_vm4, %v8220_v54  ;;  %v8228_v54 = vld [vmem:[#allocation2_spill] sm:$0xff] }
 0x16d   : > { %5178 = vmatprep.mubr.msk.f32.mxu1 %vm1103_vm4, %v7032_v16  ;;  %v8227_v16 = vld [vmem:[#allocation13_spill] sm:$0xff]  ;;  %v2298_v53 = vrot.slane %v8228_v54, 1  ;;  %v7900_v54 = vld [vmem:[%s8012_s4] ss:$0 sm:$0xff] }
 0x16e   : > { %5414 = vmatmul.mubr.msk.f32.gmra.mrb[12].mxu0 %vm1103_vm4, %v7508_v4 }
 0x16f   : > { %5416 = vmatprep.mubr.msk.f32.mxu0 %vm1103_vm4, %v7512_v38  ;;  %v2300_v2 = vsel %vm2297_vm10, %v2298_v53, %v2299_v21 }
 0x170   : > { %5179 = vmatmul.mubr.msk.f32.gmra.mrb[22].mxu1 %vm1103_vm4, %v7046_v33  ;;  %v2302_v33 = vsel %vm2297_vm10, %v2299_v21, %v2301_v55 }
 0x171   : > { %5181 = vmatprep.mubr.msk.f32.mxu1 %vm1103_vm4, %v7072_v47  ;;  %v3643_v47 = vrot.slane %v7162_v27, 2 }
 0x172   : > { %5417 = vmatmul.mubr.msk.f32.gmra.mrb[14].mxu0 %vm1103_vm4, %v7525_v48 }
 0x173   : > { %5419 = vmatprep.mubr.msk.f32.mxu0 %vm1103_vm4, %v8226_v37 }
 0x174   : > { %5182 = vmatmul.mubr.msk.f32.gmra.mrb[24].mxu1 %vm1103_vm4, %v7076_v30  ;;  %v3644_v30 = vrot.slane %v8230_v58, 2 }
 0x175   : > { %5184 = vmatprep.mubr.msk.f32.mxu1 %vm1103_vm4, %v7104_v28  ;;  %v8235_v28 = vld [vmem:[#allocation9_spill] sm:$0xff] }
 0x176   : > { %5420 = vmatmul.mubr.msk.f32.gmra.mrb[16].mxu0 %vm1103_vm4, %v7542_v20  ;;  %v3645_v39 = vsel %vm3239_vm0, %v3643_v47, %v3644_v30  ;;  %v3647_v46 = vsel %vm3239_vm0, %v3644_v30, %v3646_v40 }
 0x177   : > { %5422 = vmatprep.mubr.msk.f32.mxu0 %vm1103_vm4, %v8227_v16 }
 0x178   : > { %5185 = vmatmul.mubr.msk.f32.gmra.mrb[26].mxu1 %vm1103_vm4, %v7110_v13  ;;  %v8236_v13 = vld [vmem:[#allocation10_spill] sm:$0xff] }
 0x179   : > { %5187 = vmatprep.mubr.msk.f32.mxu1 %vm1103_vm4, %v7162_v27  ;;  %v8239_v27 = vld [vmem:[#allocation16_spill] sm:$0xff] }
 0x17a   : > { %5423 = vmatmul.mubr.msk.f32.gmra.mrb[18].mxu0 %vm1103_vm4, %v7559_v56 }
 0x17b   : > { %5425 = vmatprep.mubr.msk.f32.mxu0 %vm1103_vm4, %v7563_v3 }
 0x17c   : > { %5188 = vmatmul.mubr.msk.f32.gmra.mrb[28].mxu1 %vm1103_vm4, %v8230_v58 }
 0x17d   : > { %5190 = vmatprep.mubr.msk.f32.mxu1 %vm1103_vm4, %v8231_v5 }
 0x17e   : > { %5426 = vmatmul.mubr.msk.f32.gmra.mrb[20].mxu0 %vm1103_vm4, %v7576_v11 }
 0x17f   : > { %5428 = vmatprep.mubr.msk.f32.mxu0 %vm1103_vm4, %v7580_v61 }
 0x180   : > { %5191 = vmatmul.mubr.msk.f32.gmra.mrb[30].mxu1 %vm1103_vm4, %v8233_v59 }
 0x181   : > { %5195 = vmatprep.mubr.msk.f32.mxu1 %vm1103_vm4, %v2300_v2 }
 0x182   : > { %5429 = vmatmul.mubr.msk.f32.gmra.mrb[22].mxu0 %vm1103_vm4, %v7593_v52 }
 0x183   : > { %5431 = vmatprep.mubr.msk.f32.mxu0 %vm1103_vm4, %v7597_v57 }
 0x184   : > { %5196 = vmatmul.mubr.msk.f32.vlgmr.msra.gmra.mrb[0].mxu1 %vm1103_vm4, %v2302_v33 }
 0x185   : > { %5198 = vmatprep.mubr.msk.f32.mxu1 %vm1103_vm4, %v8234_v0 }
 0x186   : > { %5432 = vmatmul.mubr.msk.f32.gmra.mrb[24].mxu0 %vm1103_vm4, %v7611_v44 }
 0x187   : > { %5434 = vmatprep.mubr.msk.f32.mxu0 %vm1103_vm4, %v7615_v10 }
 0x188   : > { %5199 = vmatmul.mubr.msk.f32.gmra.mrb[2].mxu1 %vm1103_vm4, %v8235_v28 }
 0x189   : > { %5201 = vmatprep.mubr.msk.f32.mxu1 %vm1103_vm4, %v8236_v13 }
 0x18a   : > { %5435 = vmatmul.mubr.msk.f32.gmra.mrb[26].mxu0 %vm1103_vm4, %v7628_v8 }
 0x18b   : > { %5437 = vmatprep.mubr.msk.f32.mxu0 %vm1103_vm4, %v7632_v7 }
 0x18c   : > { %5202 = vmatmul.mubr.msk.f32.gmra.mrb[4].mxu1 %vm1103_vm4, %v8238_v50 }
 0x18d   : > { %5204 = vmatprep.mubr.msk.f32.mxu1 %vm1103_vm4, %v8239_v27 }
 0x18e   : > { %5438 = vmatmul.mubr.msk.f32.gmra.mrb[28].mxu0 %vm1103_vm4, %v7643_v18 }
 0x18f   : > { %5440 = vmatprep.mubr.msk.f32.mxu0 %vm1103_vm4, %v3645_v39 }
 0x190   : > { %5205 = vmatmul.mubr.msk.f32.gmra.mrb[6].mxu1 %vm1103_vm4, %v8240_v26 }
 0x191   : > { %5207 = vmatprep.mubr.msk.f32.mxu1 %vm1103_vm4, %v8241_v29 }
 0x192   : > { %5441 = vmatmul.mubr.msk.f32.gmra.mrb[30].mxu0 %vm1103_vm4, %v3647_v46 }
 0x193   : > { %5445 = vmatprep.mubr.msk.f32.mxu0 %vm1103_vm4, %v7409_v51  ;;  %v8246_v51 = vld [vmem:[#allocation31_spill] sm:$0xff] }
 0x194   : > { %5208 = vmatmul.mubr.msk.f32.gmra.mrb[8].mxu1 %vm1103_vm4, %v8242_v22 }
 0x195   : > { %5210 = vmatprep.mubr.msk.f32.mxu1 %vm1103_vm4, %v8243_v6 }
 0x196   : > { %5446 = vmatmul.mubr.msk.f32.vlgmr.msra.gmra.mrb[0].mxu0 %vm1103_vm4, %v7423_v9  ;;  %v8248_v9 = vld [vmem:[#allocation37_spill] sm:$0xff] }
 0x197   : > { %5448 = vmatprep.mubr.msk.f32.mxu0 %vm1103_vm4, %v7427_v63  ;;  %v8249_v63 = vld [vmem:[#allocation39_spill] sm:$0xff] }
 0x198   : > { %5211 = vmatmul.mubr.msk.f32.gmra.mrb[10].mxu1 %vm1103_vm4, %v8244_v23 }
 0x199   : > { %5213 = vmatprep.mubr.msk.f32.mxu1 %vm1103_vm4, %v8245_v24 }
 0x19a   : > { %5449 = vmatmul.mubr.msk.f32.gmra.mrb[2].mxu0 %vm1103_vm4, %v7440_v41  ;;  %v8250_v41 = vld [vmem:[#allocation43_spill] sm:$0xff] }
 0x19b   : > { %5451 = vmatprep.mubr.msk.f32.mxu0 %vm1103_vm4, %v7444_v42  ;;  %v8251_v42 = vld [vmem:[#allocation45_spill] sm:$0xff] }
 0x19c   : > { %5214 = vmatmul.mubr.msk.f32.gmra.mrb[12].mxu1 %vm1103_vm4, %v8246_v51 }
 0x19d   : > { %5216 = vmatprep.mubr.msk.f32.mxu1 %vm1103_vm4, %v8247_v15 }
 0x19e   : > { %5452 = vmatmul.mubr.msk.f32.gmra.mrb[4].mxu0 %vm1103_vm4, %v7457_v17  ;;  %v8252_v17 = vld [vmem:[#allocation46_spill] sm:$0xff] }
 0x19f   : > { %5454 = vmatprep.mubr.msk.f32.mxu0 %vm1103_vm4, %v7461_v32  ;;  %v8253_v32 = vld [vmem:[#allocation49_spill] sm:$0xff] }
 0x1a0   : > { %5217 = vmatmul.mubr.msk.f32.gmra.mrb[14].mxu1 %vm1103_vm4, %v8248_v9 }
 0x1a1   : > { %5219 = vmatprep.mubr.msk.f32.mxu1 %vm1103_vm4, %v8249_v63 }
 0x1a2   : > { %5455 = vmatmul.mubr.msk.f32.gmra.mrb[6].mxu0 %vm1103_vm4, %v7474_v49  ;;  %v8254_v49 = vld [vmem:[#allocation53_spill] sm:$0xff] }
 0x1a3   : > { %5457 = vmatprep.mubr.msk.f32.mxu0 %vm1103_vm4, %v7478_v43  ;;  %v8255_v43 = vld [vmem:[#allocation54_spill] sm:$0xff] }
 0x1a4   : > { %5220 = vmatmul.mubr.msk.f32.gmra.mrb[16].mxu1 %vm1103_vm4, %v8250_v41 }
 0x1a5   : > { %5222 = vmatprep.mubr.msk.f32.mxu1 %vm1103_vm4, %v8251_v42 }
 0x1a6   : > { %5458 = vmatmul.mubr.msk.f32.gmra.mrb[8].mxu0 %vm1103_vm4, %v7491_v19  ;;  %v8256_v19 = vld [vmem:[#allocation56_spill] sm:$0xff] }
 0x1a7   : > { %5460 = vmatprep.mubr.msk.f32.mxu0 %vm1103_vm4, %v7495_v60  ;;  %v8257_v60 = vld [vmem:[#allocation59_spill] sm:$0xff] }
 0x1a8   : > { %5223 = vmatmul.mubr.msk.f32.gmra.mrb[18].mxu1 %vm1103_vm4, %v8252_v17 }
 0x1a9   : > { %5225 = vmatprep.mubr.msk.f32.mxu1 %vm1103_vm4, %v8253_v32 }
 0x1aa   : > { %5461 = vmatmul.mubr.msk.f32.gmra.mrb[10].mxu0 %vm1103_vm4, %v7508_v4  ;;  %v8258_v4 = vld [vmem:[#allocation60_spill] sm:$0xff] }
 0x1ab   : > { %5463 = vmatprep.mubr.msk.f32.mxu0 %vm1103_vm4, %v7512_v38  ;;  %v8259_v38 = vld [vmem:[#allocation61_spill] sm:$0xff] }
 0x1ac   : > { %5226 = vmatmul.mubr.msk.f32.gmra.mrb[20].mxu1 %vm1103_vm4, %v8254_v49 }
 0x1ad   : > { %5228 = vmatprep.mubr.msk.f32.mxu1 %vm1103_vm4, %v8255_v43 }
 0x1ae   : > { %5464 = vmatmul.mubr.msk.f32.gmra.mrb[12].mxu0 %vm1103_vm4, %v7525_v48  ;;  %v8260_v48 = vld [vmem:[#allocation62_spill] sm:$0xff] }
 0x1af   : > { %5466 = vmatprep.mubr.msk.f32.mxu0 %vm1103_vm4, %v8226_v37 }
 0x1b0   : > { %5229 = vmatmul.mubr.msk.f32.gmra.mrb[22].mxu1 %vm1103_vm4, %v8256_v19 }
 0x1b1   : > { %5231 = vmatprep.mubr.msk.f32.mxu1 %vm1103_vm4, %v8257_v60 }
 0x1b2   : > { %5467 = vmatmul.mubr.msk.f32.gmra.mrb[14].mxu0 %vm1103_vm4, %v7542_v20  ;;  %v8262_v20 = vld [vmem:[#allocation64_spill] sm:$0xff] }
 0x1b3   : > { %5469 = vmatprep.mubr.msk.f32.mxu0 %vm1103_vm4, %v8227_v16 }
 0x1b4   : > { %5232 = vmatmul.mubr.msk.f32.gmra.mrb[24].mxu1 %vm1103_vm4, %v8258_v4 }
 0x1b5   : > { %5234 = vmatprep.mubr.msk.f32.mxu1 %vm1103_vm4, %v8259_v38 }
 0x1b6   : > { %5470 = vmatmul.mubr.msk.f32.gmra.mrb[16].mxu0 %vm1103_vm4, %v7559_v56  ;;  %v8264_v56 = vld [vmem:[#allocation66_spill] sm:$0xff] }
 0x1b7   : > { %5472 = vmatprep.mubr.msk.f32.mxu0 %vm1103_vm4, %v7563_v3  ;;  %v3911_v3 = vrot.slane %v8231_v5, 2 }
 0x1b8   : > { %5235 = vmatmul.mubr.msk.f32.gmra.mrb[26].mxu1 %vm1103_vm4, %v8260_v48 }
 0x1b9   : > { %5237 = vmatprep.mubr.msk.f32.mxu1 %vm1103_vm4, %v8261_v36 }
 0x1ba   : > { %5473 = vmatmul.mubr.msk.f32.gmra.mrb[18].mxu0 %vm1103_vm4, %v7576_v11  ;;  %v3912_v11 = vrot.slane %v8233_v59, 2 }
 0x1bb   : > { %5475 = vmatprep.mubr.msk.f32.mxu0 %vm1103_vm4, %v7580_v61  ;;  %v8265_v61 = vld [vmem:[#allocation5_spill] sm:$0xff] }
 0x1bc   : > { %5238 = vmatmul.mubr.msk.f32.gmra.mrb[28].mxu1 %vm1103_vm4, %v8262_v20 }
 0x1bd   : > { %5240 = vmatprep.mubr.msk.f32.mxu1 %vm1103_vm4, %v8263_v31 }
 0x1be   : > { %5476 = vmatmul.mubr.msk.f32.gmra.mrb[20].mxu0 %vm1103_vm4, %v7593_v52  ;;  %v3914_v52 = vrot.slane %v8265_v61, 2 }
 0x1bf   : > { %5478 = vmatprep.mubr.msk.f32.mxu0 %vm1103_vm4, %v7597_v57  ;;  %v3913_v57 = vsel %vm3239_vm0, %v3911_v3, %v3912_v11 }
 0x1c0   : > { %5241 = vmatmul.mubr.msk.f32.gmra.mrb[30].mxu1 %vm1103_vm4, %v8264_v56  ;;  %v3915_v45 = vsel %vm3239_vm0, %v3912_v11, %v3914_v52 }
 0x1c2   : > { %5479 = vmatmul.mubr.msk.f32.gmra.mrb[22].mxu0 %vm1103_vm4, %v7611_v44 }
 0x1c3   : > { %5481 = vmatprep.mubr.msk.f32.mxu0 %vm1103_vm4, %v7615_v10 }
 0x1c6   : > { %5482 = vmatmul.mubr.msk.f32.gmra.mrb[24].mxu0 %vm1103_vm4, %v7628_v8 }
 0x1c7   : > { %5484 = vmatprep.mubr.msk.f32.mxu0 %vm1103_vm4, %v7632_v7 }
 0x1ca   : > { %5485 = vmatmul.mubr.msk.f32.gmra.mrb[26].mxu0 %vm1103_vm4, %v7643_v18 }
 0x1cb   : > { %5487 = vmatprep.mubr.msk.f32.mxu0 %vm1103_vm4, %v3645_v39 }
 0x1ce   : > { %5488 = vmatmul.mubr.msk.f32.gmra.mrb[28].mxu0 %vm1103_vm4, %v3647_v46 }
 0x1cf   : > { %5490 = vmatprep.mubr.msk.f32.mxu0 %vm1103_vm4, %v3913_v57 }
 0x1d2   : > { %5491 = vmatmul.mubr.msk.f32.gmra.mrb[30].mxu0 %vm1103_vm4, %v3915_v45 }
 0x257   : > { %v5197_v44 = vpop.f32.mrb[0].mxu1 }
 0x258   : > { %v2510_v34 = vpop.f32.mrb[1].mxu1 }
 0x25b   : > { %v5200_v10 = vpop.f32.mrb[2].mxu1 }
 0x25c   : > { %v2520_v12 = vpop.f32.mrb[3].mxu1 }
 0x25f   : > { %v5203_v35 = vpop.f32.mrb[4].mxu1 }
 0x260   : > { %v2530_v8 = vpop.f32.mrb[5].mxu1 }
 0x263   : > { %v5206_v25 = vpop.f32.mrb[6].mxu1 }
 0x264   : > { %v2540_v7 = vpop.f32.mrb[7].mxu1 }
 0x267   : > { %v5209_v18 = vpop.f32.mrb[8].mxu1 }
 0x268   : > { %v2550_v37 = vpop.f32.mrb[9].mxu1 }
 0x269   : > { %v5447_v16 = vpop.f32.mrb[0].mxu0 }
 0x26a   : > { %v5493_v53 = vadd.f32 %v5447_v16, %v5197_v44  ;;  %v3988_v1 = vpop.f32.mrb[1].mxu0 }
 0x26b   : > { %v5494_v21 = vadd.f32 %v3988_v1, %v2510_v34  ;;  %v5212_v58 = vpop.f32.mrb[10].mxu1 }
 0x26c   : > { %v4187_v5 = vadd.f32 %v5493_v53, %v7900_v54  ;;  %v2560_v62 = vpop.f32.mrb[11].mxu1 }
 0x26d   : > { %v4186_v55 = vadd.f32 %v5494_v21, %v7900_v54  ;;  %v5450_v2 = vpop.f32.mrb[2].mxu0 }
 0x26e   : > { %4219 = vst.msk [vmem:[%s7907_s28 + $0x8] sm:$0xff] %vm1103_vm4, %v4187_v5  ;;  %v5495_v59 = vadd.f32 %v5450_v2, %v5200_v10  ;;  %v3998_v33 = vpop.f32.mrb[3].mxu0 }
 0x26f   : > { %4218 = vst.msk [vmem:[%s7907_s28] sm:$0xff] %vm1103_vm4, %v4186_v55  ;;  %v5496_v0 = vadd.f32 %v3998_v33, %v2520_v12  ;;  %v5215_v47 = vpop.f32.mrb[12].mxu1 }
 0x270   : > { %v4189_v30 = vadd.f32 %v5495_v59, %v7900_v54  ;;  %v2570_v28 = vpop.f32.mrb[13].mxu1 }
 0x271   : > { %v4188_v13 = vadd.f32 %v5496_v0, %v7900_v54  ;;  %v5453_v14 = vpop.f32.mrb[4].mxu0 }
 0x272   : > { %4221 = vst.msk [vmem:[%s7907_s28 + $0x18] sm:$0xff] %vm1103_vm4, %v4189_v30  ;;  %v5497_v40 = vadd.f32 %v5453_v14, %v5203_v35  ;;  %v4008_v39 = vpop.f32.mrb[5].mxu0 }
 0x273   : > { %4220 = vst.msk [vmem:[%s7907_s28 + $0x10] sm:$0xff] %vm1103_vm4, %v4188_v13  ;;  %v5498_v50 = vadd.f32 %v4008_v39, %v2530_v8  ;;  %v5218_v27 = vpop.f32.mrb[14].mxu1 }
 0x274   : > { %v4191_v46 = vadd.f32 %v5497_v40, %v7900_v54  ;;  %v2580_v26 = vpop.f32.mrb[15].mxu1 }
 0x275   : > { %v4190_v29 = vadd.f32 %v5498_v50, %v7900_v54  ;;  %v5456_v22 = vpop.f32.mrb[6].mxu0 }
 0x276   : > { %4223 = vst.msk [vmem:[%s7907_s28 + $0x28] sm:$0xff] %vm1103_vm4, %v4191_v46  ;;  %v5499_v6 = vadd.f32 %v5456_v22, %v5206_v25  ;;  %v4018_v23 = vpop.f32.mrb[7].mxu0 }
 0x277   : > { %4222 = vst.msk [vmem:[%s7907_s28 + $0x20] sm:$0xff] %vm1103_vm4, %v4190_v29  ;;  %v5500_v24 = vadd.f32 %v4018_v23, %v2540_v7  ;;  %v5221_v51 = vpop.f32.mrb[16].mxu1 }
 0x278   : > { %v4193_v15 = vadd.f32 %v5499_v6, %v7900_v54  ;;  %v2590_v9 = vpop.f32.mrb[17].mxu1 }
 0x279   : > { %v4192_v63 = vadd.f32 %v5500_v24, %v7900_v54  ;;  %v5459_v41 = vpop.f32.mrb[8].mxu0 }
 0x27a   : > { %4225 = vst.msk [vmem:[%s7907_s28 + $0x38] sm:$0xff] %vm1103_vm4, %v4193_v15  ;;  %v5501_v42 = vadd.f32 %v5459_v41, %v5209_v18  ;;  %v4028_v17 = vpop.f32.mrb[9].mxu0 }
 0x27b   : > { %4224 = vst.msk [vmem:[%s7907_s28 + $0x30] sm:$0xff] %vm1103_vm4, %v4192_v63  ;;  %v5502_v32 = vadd.f32 %v4028_v17, %v2550_v37  ;;  %v5224_v49 = vpop.f32.mrb[18].mxu1 }
 0x27c   : > { %v4195_v43 = vadd.f32 %v5501_v42, %v7900_v54  ;;  %v2600_v19 = vpop.f32.mrb[19].mxu1 }
 0x27d   : > { %v4194_v60 = vadd.f32 %v5502_v32, %v7900_v54  ;;  %v5462_v4 = vpop.f32.mrb[10].mxu0 }
 0x27e   : > { %4227 = vst.msk [vmem:[%s7907_s28 + $0x48] sm:$0xff] %vm1103_vm4, %v4195_v43  ;;  %v5503_v38 = vadd.f32 %v5462_v4, %v5212_v58  ;;  %v4038_v48 = vpop.f32.mrb[11].mxu0 }
 0x27f   : > { %4226 = vst.msk [vmem:[%s7907_s28 + $0x40] sm:$0xff] %vm1103_vm4, %v4194_v60  ;;  %v5504_v36 = vadd.f32 %v4038_v48, %v2560_v62  ;;  %v5227_v20 = vpop.f32.mrb[20].mxu1 }
 0x280   : > { %v4197_v31 = vadd.f32 %v5503_v38, %v7900_v54  ;;  %v2610_v56 = vpop.f32.mrb[21].mxu1 }
 0x281   : > { %v4196_v3 = vadd.f32 %v5504_v36, %v7900_v54  ;;  %v5465_v11 = vpop.f32.mrb[12].mxu0 }
 0x282   : > { %4229 = vst.msk [vmem:[%s7907_s28 + $0x58] sm:$0xff] %vm1103_vm4, %v4197_v31  ;;  %v5505_v61 = vadd.f32 %v5465_v11, %v5215_v47  ;;  %v4048_v52 = vpop.f32.mrb[13].mxu0 }
 0x283   : > { %4228 = vst.msk [vmem:[%s7907_s28 + $0x50] sm:$0xff] %vm1103_vm4, %v4196_v3  ;;  %v5506_v57 = vadd.f32 %v4048_v52, %v2570_v28  ;;  %v5230_v45 = vpop.f32.mrb[22].mxu1 }
 0x284   : > { %v4199_v44 = vadd.f32 %v5505_v61, %v7900_v54  ;;  %v2620_v34 = vpop.f32.mrb[23].mxu1 }
 0x285   : > { %v4198_v10 = vadd.f32 %v5506_v57, %v7900_v54  ;;  %v5468_v12 = vpop.f32.mrb[14].mxu0 }
 0x286   : > { %4231 = vst.msk [vmem:[%s7907_s28 + $0x68] sm:$0xff] %vm1103_vm4, %v4199_v44  ;;  %v5507_v35 = vadd.f32 %v5468_v12, %v5218_v27  ;;  %v4058_v8 = vpop.f32.mrb[15].mxu0 }
 0x287   : > { %4230 = vst.msk [vmem:[%s7907_s28 + $0x60] sm:$0xff] %vm1103_vm4, %v4198_v10  ;;  %v5508_v25 = vadd.f32 %v4058_v8, %v2580_v26  ;;  %v5233_v7 = vpop.f32.mrb[24].mxu1 }
 0x288   : > { %v4201_v18 = vadd.f32 %v5507_v35, %v7900_v54  ;;  %v2630_v37 = vpop.f32.mrb[25].mxu1 }
 0x289   : > { %v4200_v16 = vadd.f32 %v5508_v25, %v7900_v54  ;;  %v5471_v53 = vpop.f32.mrb[16].mxu0 }
 0x28a   : > { %4233 = vst.msk [vmem:[%s7907_s28 + $0x78] sm:$0xff] %vm1103_vm4, %v4201_v18  ;;  %v5509_v1 = vadd.f32 %v5471_v53, %v5221_v51  ;;  %v4068_v21 = vpop.f32.mrb[17].mxu0 }
 0x28b   : > { %4232 = vst.msk [vmem:[%s7907_s28 + $0x70] sm:$0xff] %vm1103_vm4, %v4200_v16  ;;  %v5510_v58 = vadd.f32 %v4068_v21, %v2590_v9  ;;  %v5236_v5 = vpop.f32.mrb[26].mxu1 }
 0x28c   : > { %v4203_v62 = vadd.f32 %v5509_v1, %v7900_v54  ;;  %v2640_v55 = vpop.f32.mrb[27].mxu1 }
 0x28d   : > { %v4202_v2 = vadd.f32 %v5510_v58, %v7900_v54  ;;  %v5474_v59 = vpop.f32.mrb[18].mxu0 }
 0x28e   : > { %4235 = vst.msk [vmem:[%s7907_s28 + $0x88] sm:$0xff] %vm1103_vm4, %v4203_v62  ;;  %v5511_v33 = vadd.f32 %v5474_v59, %v5224_v49  ;;  %v4078_v0 = vpop.f32.mrb[19].mxu0 }
 0x28f   : > { %4234 = vst.msk [vmem:[%s7907_s28 + $0x80] sm:$0xff] %vm1103_vm4, %v4202_v2  ;;  %v5512_v47 = vadd.f32 %v4078_v0, %v2600_v19  ;;  %v5239_v30 = vpop.f32.mrb[28].mxu1 }
 0x290   : > { %v4205_v28 = vadd.f32 %v5511_v33, %v7900_v54  ;;  %v2650_v13 = vpop.f32.mrb[29].mxu1 }
 0x291   : > { %v4204_v14 = vadd.f32 %v5512_v47, %v7900_v54  ;;  %v5477_v40 = vpop.f32.mrb[20].mxu0 }
 0x292   : > { %4237 = vst.msk [vmem:[%s7907_s28 + $0x98] sm:$0xff] %vm1103_vm4, %v4205_v28  ;;  %v5513_v39 = vadd.f32 %v5477_v40, %v5227_v20  ;;  %v4088_v50 = vpop.f32.mrb[21].mxu0 }
 0x293   : > { %4236 = vst.msk [vmem:[%s7907_s28 + $0x90] sm:$0xff] %vm1103_vm4, %v4204_v14  ;;  %v5514_v27 = vadd.f32 %v4088_v50, %v2610_v56  ;;  %v5242_v46 = vpop.f32.mrb[30].mxu1 }
 0x294   : > { %v4207_v26 = vadd.f32 %v5513_v39, %v7900_v54  ;;  %v2660_v29 = vpop.f32.mrb[31].mxu1 }
 0x295   : > { %v4206_v22 = vadd.f32 %v5514_v27, %v7900_v54  ;;  %v5480_v6 = vpop.f32.mrb[22].mxu0 }
 0x296   : > { %4239 = vst.msk [vmem:[%s7907_s28 + $0xa8] sm:$0xff] %vm1103_vm4, %v4207_v26  ;;  %v5515_v23 = vadd.f32 %v5480_v6, %v5230_v45  ;;  %v4098_v24 = vpop.f32.mrb[23].mxu0 }
 0x297   : > { %4238 = vst.msk [vmem:[%s7907_s28 + $0xa0] sm:$0xff] %vm1103_vm4, %v4206_v22  ;;  %v5516_v51 = vadd.f32 %v4098_v24, %v2620_v34 }
 0x298   : > { %v4209_v15 = vadd.f32 %v5515_v23, %v7900_v54 }
 0x299   : > { %v4208_v9 = vadd.f32 %v5516_v51, %v7900_v54  ;;  %v5483_v63 = vpop.f32.mrb[24].mxu0 }
 0x29a   : > { %4241 = vst.msk [vmem:[%s7907_s28 + $0xb8] sm:$0xff] %vm1103_vm4, %v4209_v15  ;;  %v5517_v41 = vadd.f32 %v5483_v63, %v5233_v7  ;;  %v4108_v42 = vpop.f32.mrb[25].mxu0 }
 0x29b   : > { %4240 = vst.msk [vmem:[%s7907_s28 + $0xb0] sm:$0xff] %vm1103_vm4, %v4208_v9  ;;  %v5518_v17 = vadd.f32 %v4108_v42, %v2630_v37 }
 0x29c   : > { %v4211_v32 = vadd.f32 %v5517_v41, %v7900_v54 }
 0x29d   : > { %v4210_v49 = vadd.f32 %v5518_v17, %v7900_v54  ;;  %v5486_v43 = vpop.f32.mrb[26].mxu0 }
 0x29e   : > { %4243 = vst.msk [vmem:[%s7907_s28 + $0xc8] sm:$0xff] %vm1103_vm4, %v4211_v32  ;;  %v5519_v19 = vadd.f32 %v5486_v43, %v5236_v5  ;;  %v4118_v60 = vpop.f32.mrb[27].mxu0 }
 0x29f   : > { %4242 = vst.msk [vmem:[%s7907_s28 + $0xc0] sm:$0xff] %vm1103_vm4, %v4210_v49  ;;  %v5520_v4 = vadd.f32 %v4118_v60, %v2640_v55 }
 0x2a0   : > { %v4213_v38 = vadd.f32 %v5519_v19, %v7900_v54 }
 0x2a1   : > { %v4212_v48 = vadd.f32 %v5520_v4, %v7900_v54  ;;  %v5489_v36 = vpop.f32.mrb[28].mxu0 }
 0x2a2   : > { %4245 = vst.msk [vmem:[%s7907_s28 + $0xd8] sm:$0xff] %vm1103_vm4, %v4213_v38  ;;  %v5521_v20 = vadd.f32 %v5489_v36, %v5239_v30  ;;  %v4128_v31 = vpop.f32.mrb[29].mxu0 }
 0x2a3   : > { %4244 = vst.msk [vmem:[%s7907_s28 + $0xd0] sm:$0xff] %vm1103_vm4, %v4212_v48  ;;  %v5522_v56 = vadd.f32 %v4128_v31, %v2650_v13 }
 0x2a4   : > { %v4215_v3 = vadd.f32 %v5521_v20, %v7900_v54 }
 0x2a5   : > { %v4214_v11 = vadd.f32 %v5522_v56, %v7900_v54  ;;  %v5492_v61 = vpop.f32.mrb[30].mxu0 }
 0x2a6   : > { %4247 = vst.msk [vmem:[%s7907_s28 + $0xe8] sm:$0xff] %vm1103_vm4, %v4215_v3  ;;  %v5523_v52 = vadd.f32 %v5492_v61, %v5242_v46  ;;  %v4138_v57 = vpop.f32.mrb[31].mxu0 }
 0x2a7   : > { %4246 = vst.msk [vmem:[%s7907_s28 + $0xe0] sm:$0xff] %vm1103_vm4, %v4214_v11  ;;  %v5524_v45 = vadd.f32 %v4138_v57, %v2660_v29 }
 0x2a8   : > { %v4217_v44 = vadd.f32 %v5523_v52, %v7900_v54 }
 0x2a9   : > { %v4216_v34 = vadd.f32 %v5524_v45, %v7900_v54 }
 0x2aa   : > { %4249 = vst.msk [vmem:[%s7907_s28 + $0xf8] sm:$0xff] %vm1103_vm4, %v4217_v44 }
 0x2ab   : > { %4248 = vst.msk [vmem:[%s7907_s28 + $0xf0] sm:$0xff] %vm1103_vm4, %v4216_v34 }
 0x2ac PF: > { %s17_s24 = sadd.s32 1, %s6016_s24  }
 0x2ad   : > { %p14_p4 = scmp.ge.s32.totalorder %s17_s24, 4  }
 0x2af   :  { %16 = sbr.rel (!%p14_p4) target bundleno = 1 (0x1), region = 89 }

</bundles_post_ra>
